<compile_context>
chip_gen: v7x
topology: tpu7x:2x2x1
jax: 0.10.0
libtpu: 0.0.40
codegen_flags: <defaults>
</compile_context>

<pallas_src>
import functools

import jax
import jax.numpy as jnp
from jax import lax
from jax.experimental import pallas as pl
from jax.experimental.pallas import tpu as pltpu

LANE = 128


def _round_up(x: int, m: int) -> int:
    return ((x + m - 1) // m) * m


def _pad1d(a, n):
    return jnp.pad(a, (0, n - a.shape[0]))


def _pad2d(a, rows, cols):
    return jnp.pad(a, ((0, rows - a.shape[0]), (0, cols - a.shape[1])))


def _vmem_capacity_bytes() -> int:
    try:
        return int(pltpu.get_tpu_info().vmem_capacity_bytes)
    except Exception:
        return 64 * 1024 * 1024  # conservative default (v7x per-TensorCore VMEM)


# Mutable feature flag so __main__ can fall back if Buffered(1) is rejected at lowering.
_USE_SINGLE_BUFFERED_WEIGHTS = [True]


def _weight_spec(shape, index_map):
    """Weight blocks are reused across the whole inner M sweep -> single-buffer them."""
    if _USE_SINGLE_BUFFERED_WEIGHTS[0]:
        try:
            return pl.BlockSpec(shape, index_map, pipeline_mode=pl.Buffered(1))
        except Exception:
            pass
    return pl.BlockSpec(shape, index_map)


# ---------------------------------------------------------------------------
# Pallas kernel: out = [relu]( sum_i x_i @ w_i (+ residual) + bias )
# ---------------------------------------------------------------------------
def _fused_mm_kernel(*refs, n_in: int, has_res: bool, apply_relu: bool):
    x_refs = refs[:n_in]
    w_refs = refs[n_in:2 * n_in]
    pos = 2 * n_in
    res_ref = refs[pos] if has_res else None
    pos += 1 if has_res else 0
    b_ref = refs[pos]
    o_ref = refs[pos + 1]

    acc = jnp.dot(x_refs[0][...], w_refs[0][...], preferred_element_type=jnp.float32)
    for t in range(1, n_in):
        acc = acc + jnp.dot(x_refs[t][...], w_refs[t][...],
                            preferred_element_type=jnp.float32)
    if has_res:
        acc = acc + res_ref[...].astype(jnp.float32)
    acc = acc + b_ref[...].astype(jnp.float32)
    if apply_relu:
        acc = jnp.maximum(acc, 0.0)
    o_ref[...] = acc.astype(o_ref.dtype)


def _fused_matmul_bias(inputs, weights, bias, *, apply_relu, residual=None,
                       out_dtype=jnp.float32):
    """inputs: list of (M, K_i); weights: list of (K_i, Nc); bias: (Nc,);
    residual: optional (M, Nc) pass-through add. bf16 MXU, f32 accumulate."""
    assert len(inputs) == len(weights) and len(inputs) >= 1
    M = int(inputs[0].shape[0])
    Nc = int(weights[0].shape[1])
    Ks = [int(w.shape[0]) for w in weights]
    for x, K in zip(inputs, Ks):
        assert x.shape == (M, K), (x.shape, M, K)
    n_in = len(inputs)
    has_res = residual is not None

    inputs = [x.astype(jnp.bfloat16) for x in inputs]
    weights = [w.astype(jnp.bfloat16) for w in weights]
    bias2d = bias.reshape(1, Nc).astype(jnp.float32)
    out_isz = jnp.dtype(out_dtype).itemsize

    # --- tile selection: target 512 rows, keep >=2 M-blocks when possible (megacore),
    #     cap by a generation-aware double-buffered VMEM budget (~half of VMEM). ---
    tn = min(Nc, 512)
    tm = 512
    if M < 2 * tm:
        tm = max(8, _round_up(-(-M // 2), 8))

    cap = _vmem_capacity_bytes()
    budget = cap // 2                 # ~64 MiB on v5e/v6e (128 MiB), ~32 MiB on v7x (64 MiB)
    vmem_limit = (cap * 3) // 4       # ~96 MiB on v5e/v6e, ~48 MiB on v7x

    def vmem_bytes(t):
        b = 0
        for K in Ks:
            b += 2 * t * K * 2        # double-buffered bf16 input block
            b += K * tn * 2           # single-buffered bf16 weight block (Buffered(1))
        b += tn * 4                   # bias row
        b += 2 * t * tn * out_isz     # double-buffered output block
        if has_res:
            b += 2 * t * tn * 4       # double-buffered f32 residual block
        return b

    while tm > 8 and vmem_bytes(tm) > budget:
        tm = max(8, _round_up(tm // 2, 8))

    # Weight-varying (output-channel) axis outermost so each weight block is DMA'd once.
    grid = (pl.cdiv(Nc, tn), pl.cdiv(M, tm))

    in_specs = (
        [pl.BlockSpec((tm, K), lambda j, i: (i, 0)) for K in Ks]
        + [_weight_spec((K, tn), lambda j, i: (0, j)) for K in Ks]
    )
    operands = list(inputs) + list(weights)
    if has_res:
        in_specs.append(pl.BlockSpec((tm, tn), lambda j, i: (i, j)))
        operands.append(residual.astype(jnp.float32))
    in_specs.append(pl.BlockSpec((1, tn), lambda j, i: (0, j)))
    operands.append(bias2d)
    out_spec = pl.BlockSpec((tm, tn), lambda j, i: (i, j))

    flops = 2 * M * sum(Ks) * Nc
    bytes_accessed = (sum(M * K * 2 for K in Ks) + sum(K * Nc * 2 for K in Ks)
                      + Nc * 4 + M * Nc * out_isz + (M * Nc * 4 if has_res else 0))

    return pl.pallas_call(
        functools.partial(_fused_mm_kernel, n_in=n_in, has_res=has_res,
                          apply_relu=apply_relu),
        out_shape=jax.ShapeDtypeStruct((M, Nc), out_dtype),
        grid=grid,
        in_specs=in_specs,
        out_specs=out_spec,
        compiler_params=pltpu.CompilerParams(
            dimension_semantics=("parallel", "parallel"),
            vmem_limit_bytes=int(vmem_limit),
        ),
        cost_estimate=pl.CostEstimate(flops=int(flops), transcendentals=0,
                                      bytes_accessed=int(bytes_accessed)),
    )(*operands)


# ---------------------------------------------------------------------------
# ResNeXt block forward
# ---------------------------------------------------------------------------
def _fold_bn(gamma, beta, mean, var, eps):
    s = gamma / jnp.sqrt(var + eps)
    return s, beta - mean * s


@functools.partial(jax.jit, static_argnames=("stride", "cardinality", "eps"))
def resnext_block_forward(x_nchw, params, *, stride, cardinality, eps=1e-5):
    N, Cin, H, W = x_nchw.shape
    w1 = params["conv1_w"]            # (Gw, Cin, 1, 1)
    w2 = params["conv2_w"]            # (Gw, Gw//card, 3, 3)
    w3 = params["conv3_w"]            # (Cout, Gw, 1, 1)
    Gw = int(w1.shape[0])
    Cout = int(w3.shape[0])
    cg = Gw // cardinality
    Gw_pad = _round_up(Gw, LANE)      # lane-dense intermediate / output channel widths
    Cout_pad = _round_up(Cout, LANE)

    s1, b1 = _fold_bn(params["bn1_gamma"], params["bn1_beta"],
                      params["bn1_mean"], params["bn1_var"], eps)
    s2, b2 = _fold_bn(params["bn2_gamma"], params["bn2_beta"],
                      params["bn2_mean"], params["bn2_var"], eps)
    s3, b3 = _fold_bn(params["bn3_gamma"], params["bn3_beta"],
                      params["bn3_mean"], params["bn3_var"], eps)

    # BN (eval) folded into the conv weights; channel (N) axes padded to a lane multiple.
    W1f = _pad2d(w1.reshape(Gw, Cin).T * s1[None, :], Cin, Gw_pad)       # (Cin, Gw_pad)
    W3f = _pad2d(w3.reshape(Cout, Gw).T * s3[None, :], Gw_pad, Cout_pad)  # (Gw_pad, Cout_pad)
    b1p = _pad1d(b1, Gw_pad)
    b2p = _pad1d(b2, Gw_pad)
    b3p = _pad1d(b3, Cout_pad)

    # Grouped 3x3 conv -> 9 per-tap dense block-diagonal weights, BN2 folded in.
    # TODO(synk): per-super-group contraction would avoid cardinality-x zero-block FLOPs.
    w2g = w2.reshape(cardinality, cg, cg, 3, 3)                          # (g, o, i, ky, kx)
    dense = jnp.einsum("goikl,gh->klhigo", w2g,
                       jnp.eye(cardinality, dtype=w2.dtype))
    dense = dense.reshape(3, 3, Gw, Gw) * s2[None, None, None, :]
    W2_taps = [_pad2d(dense[ky, kx], Gw_pad, Gw_pad)
               for ky in range(3) for kx in range(3)]

    use_proj = (stride != 1) or (Cin != Cout)
    if use_proj:
        ss, bs = _fold_bn(params["bns_gamma"], params["bns_beta"],
                          params["bns_mean"], params["bns_var"], eps)
        Wsf = _pad2d(params["convs_w"].reshape(Cout, Cin).T * ss[None, :],
                     Cin, Cout_pad)                                       # (Cin, Cout_pad)
        bsp = _pad1d(bs, Cout_pad)

    # Single layout transpose (NCHW -> NHWC); channels ride the lane axis from here on.
    x_nhwc = jnp.transpose(x_nchw, (0, 2, 3, 1)).astype(jnp.float32)

    # --- stage 1: 1x1 conv + BN1 + ReLU (bf16 matmul, bf16 intermediate) ---
    Mp = N * H * W
    h1 = _fused_matmul_bias([x_nhwc.reshape(Mp, Cin)], [W1f], b1p,
                            apply_relu=True, out_dtype=jnp.bfloat16)
    h1 = h1.reshape(N, H, W, Gw_pad)

    # --- stage 2: grouped 3x3 conv (stride, pad=1) + BN2 + ReLU.
    # 9 shifted taps passed as 9 separate inputs -> no 9x-wide im2col tensor in HBM.
    # TODO(synk): fused halo-DMA variant would avoid materializing the taps entirely.
    Ho = (H - 1) // stride + 1
    Wo = (W - 1) // stride + 1
    Mo = N * Ho * Wo
    h1p = jnp.pad(h1, ((0, 0), (1, 1), (1, 1), (0, 0)))
    taps = [h1p[:, ky:ky + (Ho - 1) * stride + 1:stride,
                   kx:kx + (Wo - 1) * stride + 1:stride, :].reshape(Mo, Gw_pad)
            for ky in range(3) for kx in range(3)]
    h2 = _fused_matmul_bias(taps, W2_taps, b2p, apply_relu=True,
                            out_dtype=jnp.bfloat16)

    # --- stage 3 + shortcut + residual add + final ReLU, one fused kernel ---
    xs = x_nhwc[:, 0:(Ho - 1) * stride + 1:stride,
                   0:(Wo - 1) * stride + 1:stride, :].reshape(Mo, Cin)
    if use_proj:
        out = _fused_matmul_bias([h2, xs], [W3f, Wsf], b3p + bsp, apply_relu=True)
    else:
        # Identity shortcut: pass-through residual add (no eye-matmul).
        res = _pad2d(xs, Mo, Cout_pad)
        out = _fused_matmul_bias([h2], [W3f], b3p, apply_relu=True, residual=res)

    out = out.reshape(N, Ho, Wo, Cout_pad)[..., :Cout]
    return jnp.transpose(out, (0, 3, 1, 2))


# ---------------------------------------------------------------------------
# Pure-JAX reference (mirrors the PyTorch forward exactly, eval-mode BN, f32)
# ---------------------------------------------------------------------------
def _reference_resnext(x, params, *, stride, cardinality, eps=1e-5):
    def bn(y, g, b, m, v):
        return ((y - m[None, :, None, None])
                / jnp.sqrt(v + eps)[None, :, None, None]
                * g[None, :, None, None] + b[None, :, None, None])

    def conv(y, w, s, pad, groups=1):
        return lax.conv_general_dilated(
            y, w, window_strides=(s, s), padding=((pad, pad), (pad, pad)),
            dimension_numbers=("NCHW", "OIHW", "NCHW"),
            feature_group_count=groups)

    out = jax.nn.relu(bn(conv(x, params["conv1_w"], 1, 0),
                         params["bn1_gamma"], params["bn1_beta"],
                         params["bn1_mean"], params["bn1_var"]))
    out = jax.nn.relu(bn(conv(out, params["conv2_w"], stride, 1, groups=cardinality),
                         params["bn2_gamma"], params["bn2_beta"],
                         params["bn2_mean"], params["bn2_var"]))
    out = bn(conv(out, params["conv3_w"], 1, 0),
             params["bn3_gamma"], params["bn3_beta"],
             params["bn3_mean"], params["bn3_var"])
    Cin = x.shape[1]
    Cout = params["conv3_w"].shape[0]
    if stride != 1 or Cin != Cout:
        sc = bn(conv(x, params["convs_w"], stride, 0),
                params["bns_gamma"], params["bns_beta"],
                params["bns_mean"], params["bns_var"])
    else:
        sc = x
    return jax.nn.relu(out + sc)


def make_params(key, in_channels, out_channels, stride, cardinality):
    Gw = out_channels // cardinality * cardinality
    cg = Gw // cardinality
    keys = jax.random.split(key, 20)
    ki = iter(keys)

    def bn_params(C):
        return (jax.random.uniform(next(ki), (C,), minval=0.5, maxval=1.5),
                jax.random.normal(next(ki), (C,)) * 0.1,
                jax.random.normal(next(ki), (C,)) * 0.1,
                jax.random.uniform(next(ki), (C,), minval=0.5, maxval=1.5))

    p = {}
    p["conv1_w"] = jax.random.normal(next(ki), (Gw, in_channels, 1, 1)) * 0.3
    p["bn1_gamma"], p["bn1_beta"], p["bn1_mean"], p["bn1_var"] = bn_params(Gw)
    p["conv2_w"] = jax.random.normal(next(ki), (Gw, cg, 3, 3)) * 0.2
    p["bn2_gamma"], p["bn2_beta"], p["bn2_mean"], p["bn2_var"] = bn_params(Gw)
    p["conv3_w"] = jax.random.normal(next(ki), (out_channels, Gw, 1, 1)) * 0.3
    p["bn3_gamma"], p["bn3_beta"], p["bn3_mean"], p["bn3_var"] = bn_params(out_channels)
    if stride != 1 or in_channels != out_channels:
        p["convs_w"] = jax.random.normal(next(ki), (out_channels, in_channels, 1, 1)) * 0.3
        p["bns_gamma"], p["bns_beta"], p["bns_mean"], p["bns_var"] = bn_params(out_channels)
    return p


if __name__ == "__main__":
    def run_all():
        root = jax.random.PRNGKey(0)
        N, H, W = 2, 16, 16
        configs = [
            dict(in_channels=4, out_channels=4, stride=1, cardinality=2),  # identity shortcut
            dict(in_channels=4, out_channels=8, stride=2, cardinality=2),  # projection shortcut
        ]
        for i, cfg in enumerate(configs):
            kx, kp = jax.random.split(jax.random.fold_in(root, i))
            x = jax.random.normal(kx, (N, cfg["in_channels"], H, W), dtype=jnp.float32)
            params = make_params(kp, **cfg)

            out = resnext_block_forward(x, params, stride=cfg["stride"],
                                        cardinality=cfg["cardinality"])
            out = jax.block_until_ready(out)

            ref = _reference_resnext(x, params, stride=cfg["stride"],
                                     cardinality=cfg["cardinality"])
            Ho = (H - 1) // cfg["stride"] + 1
            assert out.shape == (N, cfg["out_channels"], Ho, Ho), out.shape
            # bf16 MXU inputs with f32 accumulation -> relative tolerance check.
            rel = float(jnp.max(jnp.abs(out - ref) / (jnp.abs(ref) + 1.0)))
            assert rel < 5e-2, f"config {i}: max rel err {rel}"

    try:
        run_all()
    except Exception:
        # Fallback: some Pallas versions reject single-buffered weight blocks at lowering
        # time; retry with default double-buffered weight BlockSpecs.
        _USE_SINGLE_BUFFERED_WEIGHTS[0] = False
        jax.clear_caches()
        run_all()

    print("KERNEL_OK")
</pallas_src>

<mosaic_0001>
module attributes {stable_mosaic.version = 11 : i64} {
  func.func @_fused_mm_kernel(%arg0: i32, %arg1: i32, %arg2: memref<256x4xbf16, #tpu.memory_space<vmem>>, %arg3: memref<4x128xbf16, #tpu.memory_space<vmem>>, %arg4: memref<1x128xf32, #tpu.memory_space<vmem>>, %arg5: memref<256x128xbf16, #tpu.memory_space<vmem>>) attributes {dimension_semantics = [#tpu.dimension_semantics<parallel>, #tpu.dimension_semantics<parallel>], iteration_bounds = array<i64: 1, 2>, scalar_prefetch = 0 : i64, scratch_operands = 0 : i64, tpu.core_type = #tpu.core_type<tc>, window_params = [{transform_indices = @transform_0, window_bounds = array<i64: 256, 4>}, {pipeline_mode = #tpu.pipeline_mode<synchronous>, transform_indices = @transform_1, window_bounds = array<i64: 4, 128>}, {transform_indices = @transform_2, window_bounds = array<i64: 1, 128>}, {transform_indices = @transform_3, window_bounds = array<i64: 256, 128>}]} {
    %c0 = arith.constant 0 : index
    %c0_0 = arith.constant 0 : index
    %0 = vector.load %arg2[%c0, %c0_0] : memref<256x4xbf16, #tpu.memory_space<vmem>>, vector<256x4xbf16>
    %c0_1 = arith.constant 0 : index
    %c0_2 = arith.constant 0 : index
    %1 = vector.load %arg3[%c0_1, %c0_2] : memref<4x128xbf16, #tpu.memory_space<vmem>>, vector<4x128xbf16>
    %cst = arith.constant dense<0.000000e+00> : vector<256x128xf32>
    %2 = tpu.matmul %0, %1, %cst {dimension_numbers = #tpu.dot_dimension_numbers<[1], [0], [0], [1], [0, 0, 1, 1], [], []>} : vector<256x4xbf16>, vector<4x128xbf16>, vector<256x128xf32> -> vector<256x128xf32>
    %c0_3 = arith.constant 0 : index
    %c0_4 = arith.constant 0 : index
    %3 = vector.load %arg4[%c0_3, %c0_4] : memref<1x128xf32, #tpu.memory_space<vmem>>, vector<1x128xf32>
    %4 = vector.broadcast %3 : vector<1x128xf32> to vector<256x128xf32>
    %5 = arith.addf %2, %4 : vector<256x128xf32>
    %cst_5 = arith.constant 0.000000e+00 : f32
    %6 = vector.broadcast %cst_5 : f32 to vector<256x128xf32>
    %7 = arith.maximumf %5, %6 : vector<256x128xf32>
    %8 = arith.truncf %7 : vector<256x128xf32> to vector<256x128xbf16>
    %c0_6 = arith.constant 0 : index
    %c0_7 = arith.constant 0 : index
    %9 = vector.load %arg5[%c0_6, %c0_7] : memref<256x128xbf16, #tpu.memory_space<vmem>>, vector<256x128xbf16>
    tpu.vector_store %arg5[%c0_6, %c0_7], %8 {strides = array<i32>} : memref<256x128xbf16, #tpu.memory_space<vmem>>, vector<256x128xbf16>,
    return
  }
  func.func @transform_0(%arg0: i32, %arg1: i32) -> (i32, i32) {
    %c0_i32 = arith.constant 0 : i32
    %c0_i32_0 = arith.constant 0 : i32
    return %arg1, %c0_i32 : i32, i32
  }
  func.func @transform_1(%arg0: i32, %arg1: i32) -> (i32, i32) {
    %c0_i32 = arith.constant 0 : i32
    %c0_i32_0 = arith.constant 0 : i32
    return %c0_i32, %arg0 : i32, i32
  }
  func.func @transform_2(%arg0: i32, %arg1: i32) -> (i32, i32) {
    %c0_i32 = arith.constant 0 : i32
    %c0_i32_0 = arith.constant 0 : i32
    return %c0_i32, %arg0 : i32, i32
  }
  func.func @transform_3(%arg0: i32, %arg1: i32) -> (i32, i32) {
    %c0_i32 = arith.constant 0 : i32
    return %arg1, %arg0 : i32, i32
  }
}

module attributes {stable_mosaic.version = 11 : i64} {
  func.func @_fused_mm_kernel(%arg0: i32, %arg1: i32, %arg2: memref<256x128xbf16, #tpu.memory_space<vmem>>, %arg3: memref<256x128xbf16, #tpu.memory_space<vmem>>, %arg4: memref<256x128xbf16, #tpu.memory_space<vmem>>, %arg5: memref<256x128xbf16, #tpu.memory_space<vmem>>, %arg6: memref<256x128xbf16, #tpu.memory_space<vmem>>, %arg7: memref<256x128xbf16, #tpu.memory_space<vmem>>, %arg8: memref<256x128xbf16, #tpu.memory_space<vmem>>, %arg9: memref<256x128xbf16, #tpu.memory_space<vmem>>, %arg10: memref<256x128xbf16, #tpu.memory_space<vmem>>, %arg11: memref<128x128xbf16, #tpu.memory_space<vmem>>, %arg12: memref<128x128xbf16, #tpu.memory_space<vmem>>, %arg13: memref<128x128xbf16, #tpu.memory_space<vmem>>, %arg14: memref<128x128xbf16, #tpu.memory_space<vmem>>, %arg15: memref<128x128xbf16, #tpu.memory_space<vmem>>, %arg16: memref<128x128xbf16, #tpu.memory_space<vmem>>, %arg17: memref<128x128xbf16, #tpu.memory_space<vmem>>, %arg18: memref<128x128xbf16, #tpu.memory_space<vmem>>, %arg19: memref<128x128xbf16, #tpu.memory_space<vmem>>, %arg20: memref<1x128xf32, #tpu.memory_space<vmem>>, %arg21: memref<256x128xbf16, #tpu.memory_space<vmem>>) attributes {dimension_semantics = [#tpu.dimension_semantics<parallel>, #tpu.dimension_semantics<parallel>], iteration_bounds = array<i64: 1, 2>, scalar_prefetch = 0 : i64, scratch_operands = 0 : i64, tpu.core_type = #tpu.core_type<tc>, window_params = [{transform_indices = @transform_0, window_bounds = array<i64: 256, 128>}, {transform_indices = @transform_1, window_bounds = array<i64: 256, 128>}, {transform_indices = @transform_2, window_bounds = array<i64: 256, 128>}, {transform_indices = @transform_3, window_bounds = array<i64: 256, 128>}, {transform_indices = @transform_4, window_bounds = array<i64: 256, 128>}, {transform_indices = @transform_5, window_bounds = array<i64: 256, 128>}, {transform_indices = @transform_6, window_bounds = array<i64: 256, 128>}, {transform_indices = @transform_7, window_bounds = array<i64: 256, 128>}, {transform_indices = @transform_8, window_bounds = array<i64: 256, 128>}, {pipeline_mode = #tpu.pipeline_mode<synchronous>, transform_indices = @transform_9, window_bounds = array<i64: 128, 128>}, {pipeline_mode = #tpu.pipeline_mode<synchronous>, transform_indices = @transform_10, window_bounds = array<i64: 128, 128>}, {pipeline_mode = #tpu.pipeline_mode<synchronous>, transform_indices = @transform_11, window_bounds = array<i64: 128, 128>}, {pipeline_mode = #tpu.pipeline_mode<synchronous>, transform_indices = @transform_12, window_bounds = array<i64: 128, 128>}, {pipeline_mode = #tpu.pipeline_mode<synchronous>, transform_indices = @transform_13, window_bounds = array<i64: 128, 128>}, {pipeline_mode = #tpu.pipeline_mode<synchronous>, transform_indices = @transform_14, window_bounds = array<i64: 128, 128>}, {pipeline_mode = #tpu.pipeline_mode<synchronous>, transform_indices = @transform_15, window_bounds = array<i64: 128, 128>}, {pipeline_mode = #tpu.pipeline_mode<synchronous>, transform_indices = @transform_16, window_bounds = array<i64: 128, 128>}, {pipeline_mode = #tpu.pipeline_mode<synchronous>, transform_indices = @transform_17, window_bounds = array<i64: 128, 128>}, {transform_indices = @transform_18, window_bounds = array<i64: 1, 128>}, {transform_indices = @transform_19, window_bounds = array<i64: 256, 128>}]} {
    %c0 = arith.constant 0 : index
    %c0_0 = arith.constant 0 : index
    %0 = vector.load %arg2[%c0, %c0_0] : memref<256x128xbf16, #tpu.memory_space<vmem>>, vector<256x128xbf16>
    %c0_1 = arith.constant 0 : index
    %c0_2 = arith.constant 0 : index
    %1 = vector.load %arg11[%c0_1, %c0_2] : memref<128x128xbf16, #tpu.memory_space<vmem>>, vector<128x128xbf16>
    %cst = arith.constant dense<0.000000e+00> : vector<256x128xf32>
    %2 = tpu.matmul %0, %1, %cst {dimension_numbers = #tpu.dot_dimension_numbers<[1], [0], [0], [1], [0, 0, 1, 1], [], []>} : vector<256x128xbf16>, vector<128x128xbf16>, vector<256x128xf32> -> vector<256x128xf32>
    %c0_3 = arith.constant 0 : index
    %c0_4 = arith.constant 0 : index
    %3 = vector.load %arg3[%c0_3, %c0_4] : memref<256x128xbf16, #tpu.memory_space<vmem>>, vector<256x128xbf16>
    %c0_5 = arith.constant 0 : index
    %c0_6 = arith.constant 0 : index
    %4 = vector.load %arg12[%c0_5, %c0_6] : memref<128x128xbf16, #tpu.memory_space<vmem>>, vector<128x128xbf16>
    %cst_7 = arith.constant dense<0.000000e+00> : vector<256x128xf32>
    %5 = tpu.matmul %3, %4, %cst_7 {dimension_numbers = #tpu.dot_dimension_numbers<[1], [0], [0], [1], [0, 0, 1, 1], [], []>} : vector<256x128xbf16>, vector<128x128xbf16>, vector<256x128xf32> -> vector<256x128xf32>
    %6 = arith.addf %2, %5 : vector<256x128xf32>
    %c0_8 = arith.constant 0 : index
    %c0_9 = arith.constant 0 : index
    %7 = vector.load %arg4[%c0_8, %c0_9] : memref<256x128xbf16, #tpu.memory_space<vmem>>, vector<256x128xbf16>
    %c0_10 = arith.constant 0 : index
    %c0_11 = arith.constant 0 : index
    %8 = vector.load %arg13[%c0_10, %c0_11] : memref<128x128xbf16, #tpu.memory_space<vmem>>, vector<128x128xbf16>
    %cst_12 = arith.constant dense<0.000000e+00> : vector<256x128xf32>
    %9 = tpu.matmul %7, %8, %cst_12 {dimension_numbers = #tpu.dot_dimension_numbers<[1], [0], [0], [1], [0, 0, 1, 1], [], []>} : vector<256x128xbf16>, vector<128x128xbf16>, vector<256x128xf32> -> vector<256x128xf32>
    %10 = arith.addf %6, %9 : vector<256x128xf32>
    %c0_13 = arith.constant 0 : index
    %c0_14 = arith.constant 0 : index
    %11 = vector.load %arg5[%c0_13, %c0_14] : memref<256x128xbf16, #tpu.memory_space<vmem>>, vector<256x128xbf16>
    %c0_15 = arith.constant 0 : index
    %c0_16 = arith.constant 0 : index
    %12 = vector.load %arg14[%c0_15, %c0_16] : memref<128x128xbf16, #tpu.memory_space<vmem>>, vector<128x128xbf16>
    %cst_17 = arith.constant dense<0.000000e+00> : vector<256x128xf32>
    %13 = tpu.matmul %11, %12, %cst_17 {dimension_numbers = #tpu.dot_dimension_numbers<[1], [0], [0], [1], [0, 0, 1, 1], [], []>} : vector<256x128xbf16>, vector<128x128xbf16>, vector<256x128xf32> -> vector<256x128xf32>
    %14 = arith.addf %10, %13 : vector<256x128xf32>
    %c0_18 = arith.constant 0 : index
    %c0_19 = arith.constant 0 : index
    %15 = vector.load %arg6[%c0_18, %c0_19] : memref<256x128xbf16, #tpu.memory_space<vmem>>, vector<256x128xbf16>
    %c0_20 = arith.constant 0 : index
    %c0_21 = arith.constant 0 : index
    %16 = vector.load %arg15[%c0_20, %c0_21] : memref<128x128xbf16, #tpu.memory_space<vmem>>, vector<128x128xbf16>
    %cst_22 = arith.constant dense<0.000000e+00> : vector<256x128xf32>
    %17 = tpu.matmul %15, %16, %cst_22 {dimension_numbers = #tpu.dot_dimension_numbers<[1], [0], [0], [1], [0, 0, 1, 1], [], []>} : vector<256x128xbf16>, vector<128x128xbf16>, vector<256x128xf32> -> vector<256x128xf32>
    %18 = arith.addf %14, %17 : vector<256x128xf32>
    %c0_23 = arith.constant 0 : index
    %c0_24 = arith.constant 0 : index
    %19 = vector.load %arg7[%c0_23, %c0_24] : memref<256x128xbf16, #tpu.memory_space<vmem>>, vector<256x128xbf16>
    %c0_25 = arith.constant 0 : index
    %c0_26 = arith.constant 0 : index
    %20 = vector.load %arg16[%c0_25, %c0_26] : memref<128x128xbf16, #tpu.memory_space<vmem>>, vector<128x128xbf16>
    %cst_27 = arith.constant dense<0.000000e+00> : vector<256x128xf32>
    %21 = tpu.matmul %19, %20, %cst_27 {dimension_numbers = #tpu.dot_dimension_numbers<[1], [0], [0], [1], [0, 0, 1, 1], [], []>} : vector<256x128xbf16>, vector<128x128xbf16>, vector<256x128xf32> -> vector<256x128xf32>
    %22 = arith.addf %18, %21 : vector<256x128xf32>
    %c0_28 = arith.constant 0 : index
    %c0_29 = arith.constant 0 : index
    %23 = vector.load %arg8[%c0_28, %c0_29] : memref<256x128xbf16, #tpu.memory_space<vmem>>, vector<256x128xbf16>
    %c0_30 = arith.constant 0 : index
    %c0_31 = arith.constant 0 : index
    %24 = vector.load %arg17[%c0_30, %c0_31] : memref<128x128xbf16, #tpu.memory_space<vmem>>, vector<128x128xbf16>
    %cst_32 = arith.constant dense<0.000000e+00> : vector<256x128xf32>
    %25 = tpu.matmul %23, %24, %cst_32 {dimension_numbers = #tpu.dot_dimension_numbers<[1], [0], [0], [1], [0, 0, 1, 1], [], []>} : vector<256x128xbf16>, vector<128x128xbf16>, vector<256x128xf32> -> vector<256x128xf32>
    %26 = arith.addf %22, %25 : vector<256x128xf32>
    %c0_33 = arith.constant 0 : index
    %c0_34 = arith.constant 0 : index
    %27 = vector.load %arg9[%c0_33, %c0_34] : memref<256x128xbf16, #tpu.memory_space<vmem>>, vector<256x128xbf16>
    %c0_35 = arith.constant 0 : index
    %c0_36 = arith.constant 0 : index
    %28 = vector.load %arg18[%c0_35, %c0_36] : memref<128x128xbf16, #tpu.memory_space<vmem>>, vector<128x128xbf16>
    %cst_37 = arith.constant dense<0.000000e+00> : vector<256x128xf32>
    %29 = tpu.matmul %27, %28, %cst_37 {dimension_numbers = #tpu.dot_dimension_numbers<[1], [0], [0], [1], [0, 0, 1, 1], [], []>} : vector<256x128xbf16>, vector<128x128xbf16>, vector<256x128xf32> -> vector<256x128xf32>
    %30 = arith.addf %26, %29 : vector<256x128xf32>
    %c0_38 = arith.constant 0 : index
    %c0_39 = arith.constant 0 : index
    %31 = vector.load %arg10[%c0_38, %c0_39] : memref<256x128xbf16, #tpu.memory_space<vmem>>, vector<256x128xbf16>
    %c0_40 = arith.constant 0 : index
    %c0_41 = arith.constant 0 : index
    %32 = vector.load %arg19[%c0_40, %c0_41] : memref<128x128xbf16, #tpu.memory_space<vmem>>, vector<128x128xbf16>
    %cst_42 = arith.constant dense<0.000000e+00> : vector<256x128xf32>
    %33 = tpu.matmul %31, %32, %cst_42 {dimension_numbers = #tpu.dot_dimension_numbers<[1], [0], [0], [1], [0, 0, 1, 1], [], []>} : vector<256x128xbf16>, vector<128x128xbf16>, vector<256x128xf32> -> vector<256x128xf32>
    %34 = arith.addf %30, %33 : vector<256x128xf32>
    %c0_43 = arith.constant 0 : index
    %c0_44 = arith.constant 0 : index
    %35 = vector.load %arg20[%c0_43, %c0_44] : memref<1x128xf32, #tpu.memory_space<vmem>>, vector<1x128xf32>
    %36 = vector.broadcast %35 : vector<1x128xf32> to vector<256x128xf32>
    %37 = arith.addf %34, %36 : vector<256x128xf32>
    %cst_45 = arith.constant 0.000000e+00 : f32
    %38 = vector.broadcast %cst_45 : f32 to vector<256x128xf32>
    %39 = arith.maximumf %37, %38 : vector<256x128xf32>
    %40 = arith.truncf %39 : vector<256x128xf32> to vector<256x128xbf16>
    %c0_46 = arith.constant 0 : index
    %c0_47 = arith.constant 0 : index
    %41 = vector.load %arg21[%c0_46, %c0_47] : memref<256x128xbf16, #tpu.memory_space<vmem>>, vector<256x128xbf16>
    tpu.vector_store %arg21[%c0_46, %c0_47], %40 {strides = array<i32>} : memref<256x128xbf16, #tpu.memory_space<vmem>>, vector<256x128xbf16>,
    return
  }
  func.func @transform_0(%arg0: i32, %arg1: i32) -> (i32, i32) {
    %c0_i32 = arith.constant 0 : i32
    %c0_i32_0 = arith.constant 0 : i32
    return %arg1, %c0_i32 : i32, i32
  }
  func.func @transform_1(%arg0: i32, %arg1: i32) -> (i32, i32) {
    %c0_i32 = arith.constant 0 : i32
    %c0_i32_0 = arith.constant 0 : i32
    return %arg1, %c0_i32 : i32, i32
  }
  func.func @transform_2(%arg0: i32, %arg1: i32) -> (i32, i32) {
    %c0_i32 = arith.constant 0 : i32
    %c0_i32_0 = arith.constant 0 : i32
    return %arg1, %c0_i32 : i32, i32
  }
  func.func @transform_3(%arg0: i32, %arg1: i32) -> (i32, i32) {
    %c0_i32 = arith.constant 0 : i32
    %c0_i32_0 = arith.constant 0 : i32
    return %arg1, %c0_i32 : i32, i32
  }
  func.func @transform_4(%arg0: i32, %arg1: i32) -> (i32, i32) {
    %c0_i32 = arith.constant 0 : i32
    %c0_i32_0 = arith.constant 0 : i32
    return %arg1, %c0_i32 : i32, i32
  }
  func.func @transform_5(%arg0: i32, %arg1: i32) -> (i32, i32) {
    %c0_i32 = arith.constant 0 : i32
    %c0_i32_0 = arith.constant 0 : i32
    return %arg1, %c0_i32 : i32, i32
  }
  func.func @transform_6(%arg0: i32, %arg1: i32) -> (i32, i32) {
    %c0_i32 = arith.constant 0 : i32
    %c0_i32_0 = arith.constant 0 : i32
    return %arg1, %c0_i32 : i32, i32
  }
  func.func @transform_7(%arg0: i32, %arg1: i32) -> (i32, i32) {
    %c0_i32 = arith.constant 0 : i32
    %c0_i32_0 = arith.constant 0 : i32
    return %arg1, %c0_i32 : i32, i32
  }
  func.func @transform_8(%arg0: i32, %arg1: i32) -> (i32, i32) {
    %c0_i32 = arith.constant 0 : i32
    %c0_i32_0 = arith.constant 0 : i32
    return %arg1, %c0_i32 : i32, i32
  }
  func.func @transform_9(%arg0: i32, %arg1: i32) -> (i32, i32) {
    %c0_i32 = arith.constant 0 : i32
    %c0_i32_0 = arith.constant 0 : i32
    return %c0_i32, %arg0 : i32, i32
  }
  func.func @transform_10(%arg0: i32, %arg1: i32) -> (i32, i32) {
    %c0_i32 = arith.constant 0 : i32
    %c0_i32_0 = arith.constant 0 : i32
    return %c0_i32, %arg0 : i32, i32
  }
  func.func @transform_11(%arg0: i32, %arg1: i32) -> (i32, i32) {
    %c0_i32 = arith.constant 0 : i32
    %c0_i32_0 = arith.constant 0 : i32
    return %c0_i32, %arg0 : i32, i32
  }
  func.func @transform_12(%arg0: i32, %arg1: i32) -> (i32, i32) {
    %c0_i32 = arith.constant 0 : i32
    %c0_i32_0 = arith.constant 0 : i32
    return %c0_i32, %arg0 : i32, i32
  }
  func.func @transform_13(%arg0: i32, %arg1: i32) -> (i32, i32) {
    %c0_i32 = arith.constant 0 : i32
    %c0_i32_0 = arith.constant 0 : i32
    return %c0_i32, %arg0 : i32, i32
  }
  func.func @transform_14(%arg0: i32, %arg1: i32) -> (i32, i32) {
    %c0_i32 = arith.constant 0 : i32
    %c0_i32_0 = arith.constant 0 : i32
    return %c0_i32, %arg0 : i32, i32
  }
  func.func @transform_15(%arg0: i32, %arg1: i32) -> (i32, i32) {
    %c0_i32 = arith.constant 0 : i32
    %c0_i32_0 = arith.constant 0 : i32
    return %c0_i32, %arg0 : i32, i32
  }
  func.func @transform_16(%arg0: i32, %arg1: i32) -> (i32, i32) {
    %c0_i32 = arith.constant 0 : i32
    %c0_i32_0 = arith.constant 0 : i32
    return %c0_i32, %arg0 : i32, i32
  }
  func.func @transform_17(%arg0: i32, %arg1: i32) -> (i32, i32) {
    %c0_i32 = arith.constant 0 : i32
    %c0_i32_0 = arith.constant 0 : i32
    return %c0_i32, %arg0 : i32, i32
  }
  func.func @transform_18(%arg0: i32, %arg1: i32) -> (i32, i32) {
    %c0_i32 = arith.constant 0 : i32
    %c0_i32_0 = arith.constant 0 : i32
    return %c0_i32, %arg0 : i32, i32
  }
  func.func @transform_19(%arg0: i32, %arg1: i32) -> (i32, i32) {
    %c0_i32 = arith.constant 0 : i32
    return %arg1, %arg0 : i32, i32
  }
}

module attributes {stable_mosaic.version = 11 : i64} {
  func.func @_fused_mm_kernel(%arg0: i32, %arg1: i32, %arg2: memref<256x128xbf16, #tpu.memory_space<vmem>>, %arg3: memref<128x128xbf16, #tpu.memory_space<vmem>>, %arg4: memref<256x128xf32, #tpu.memory_space<vmem>>, %arg5: memref<1x128xf32, #tpu.memory_space<vmem>>, %arg6: memref<256x128xf32, #tpu.memory_space<vmem>>) attributes {dimension_semantics = [#tpu.dimension_semantics<parallel>, #tpu.dimension_semantics<parallel>], iteration_bounds = array<i64: 1, 2>, scalar_prefetch = 0 : i64, scratch_operands = 0 : i64, tpu.core_type = #tpu.core_type<tc>, window_params = [{transform_indices = @transform_0, window_bounds = array<i64: 256, 128>}, {pipeline_mode = #tpu.pipeline_mode<synchronous>, transform_indices = @transform_1, window_bounds = array<i64: 128, 128>}, {transform_indices = @transform_2, window_bounds = array<i64: 256, 128>}, {transform_indices = @transform_3, window_bounds = array<i64: 1, 128>}, {transform_indices = @transform_4, window_bounds = array<i64: 256, 128>}]} {
    %c0 = arith.constant 0 : index
    %c0_0 = arith.constant 0 : index
    %0 = vector.load %arg2[%c0, %c0_0] : memref<256x128xbf16, #tpu.memory_space<vmem>>, vector<256x128xbf16>
    %c0_1 = arith.constant 0 : index
    %c0_2 = arith.constant 0 : index
    %1 = vector.load %arg3[%c0_1, %c0_2] : memref<128x128xbf16, #tpu.memory_space<vmem>>, vector<128x128xbf16>
    %cst = arith.constant dense<0.000000e+00> : vector<256x128xf32>
    %2 = tpu.matmul %0, %1, %cst {dimension_numbers = #tpu.dot_dimension_numbers<[1], [0], [0], [1], [0, 0, 1, 1], [], []>} : vector<256x128xbf16>, vector<128x128xbf16>, vector<256x128xf32> -> vector<256x128xf32>
    %c0_3 = arith.constant 0 : index
    %c0_4 = arith.constant 0 : index
    %3 = vector.load %arg4[%c0_3, %c0_4] : memref<256x128xf32, #tpu.memory_space<vmem>>, vector<256x128xf32>
    %4 = arith.addf %2, %3 : vector<256x128xf32>
    %c0_5 = arith.constant 0 : index
    %c0_6 = arith.constant 0 : index
    %5 = vector.load %arg5[%c0_5, %c0_6] : memref<1x128xf32, #tpu.memory_space<vmem>>, vector<1x128xf32>
    %6 = vector.broadcast %5 : vector<1x128xf32> to vector<256x128xf32>
    %7 = arith.addf %4, %6 : vector<256x128xf32>
    %cst_7 = arith.constant 0.000000e+00 : f32
    %8 = vector.broadcast %cst_7 : f32 to vector<256x128xf32>
    %9 = arith.maximumf %7, %8 : vector<256x128xf32>
    %c0_8 = arith.constant 0 : index
    %c0_9 = arith.constant 0 : index
    %10 = vector.load %arg6[%c0_8, %c0_9] : memref<256x128xf32, #tpu.memory_space<vmem>>, vector<256x128xf32>
    tpu.vector_store %arg6[%c0_8, %c0_9], %9 {strides = array<i32>} : memref<256x128xf32, #tpu.memory_space<vmem>>, vector<256x128xf32>,
    return
  }
  func.func @transform_0(%arg0: i32, %arg1: i32) -> (i32, i32) {
    %c0_i32 = arith.constant 0 : i32
    %c0_i32_0 = arith.constant 0 : i32
    return %arg1, %c0_i32 : i32, i32
  }
  func.func @transform_1(%arg0: i32, %arg1: i32) -> (i32, i32) {
    %c0_i32 = arith.constant 0 : i32
    %c0_i32_0 = arith.constant 0 : i32
    return %c0_i32, %arg0 : i32, i32
  }
  func.func @transform_2(%arg0: i32, %arg1: i32) -> (i32, i32) {
    %c0_i32 = arith.constant 0 : i32
    return %arg1, %arg0 : i32, i32
  }
  func.func @transform_3(%arg0: i32, %arg1: i32) -> (i32, i32) {
    %c0_i32 = arith.constant 0 : i32
    %c0_i32_0 = arith.constant 0 : i32
    return %c0_i32, %arg0 : i32, i32
  }
  func.func @transform_4(%arg0: i32, %arg1: i32) -> (i32, i32) {
    %c0_i32 = arith.constant 0 : i32
    return %arg1, %arg0 : i32, i32
  }
}

module attributes {stable_mosaic.version = 11 : i64} {
  func.func @_fused_mm_kernel(%arg0: i32, %arg1: i32, %arg2: memref<256x4xbf16, #tpu.memory_space<vmem>>, %arg3: memref<4x128xbf16, #tpu.memory_space<vmem>>, %arg4: memref<1x128xf32, #tpu.memory_space<vmem>>, %arg5: memref<256x128xbf16, #tpu.memory_space<vmem>>) attributes {dimension_semantics = [#tpu.dimension_semantics<parallel>, #tpu.dimension_semantics<parallel>], iteration_bounds = array<i64: 1, 2>, scalar_prefetch = 0 : i64, scratch_operands = 0 : i64, tpu.core_type = #tpu.core_type<tc>, window_params = [{transform_indices = @transform_0, window_bounds = array<i64: 256, 4>}, {transform_indices = @transform_1, window_bounds = array<i64: 4, 128>}, {transform_indices = @transform_2, window_bounds = array<i64: 1, 128>}, {transform_indices = @transform_3, window_bounds = array<i64: 256, 128>}]} {
    %c0 = arith.constant 0 : index
    %c0_0 = arith.constant 0 : index
    %0 = vector.load %arg2[%c0, %c0_0] : memref<256x4xbf16, #tpu.memory_space<vmem>>, vector<256x4xbf16>
    %c0_1 = arith.constant 0 : index
    %c0_2 = arith.constant 0 : index
    %1 = vector.load %arg3[%c0_1, %c0_2] : memref<4x128xbf16, #tpu.memory_space<vmem>>, vector<4x128xbf16>
    %cst = arith.constant dense<0.000000e+00> : vector<256x128xf32>
    %2 = tpu.matmul %0, %1, %cst {dimension_numbers = #tpu.dot_dimension_numbers<[1], [0], [0], [1], [0, 0, 1, 1], [], []>} : vector<256x4xbf16>, vector<4x128xbf16>, vector<256x128xf32> -> vector<256x128xf32>
    %c0_3 = arith.constant 0 : index
    %c0_4 = arith.constant 0 : index
    %3 = vector.load %arg4[%c0_3, %c0_4] : memref<1x128xf32, #tpu.memory_space<vmem>>, vector<1x128xf32>
    %4 = vector.broadcast %3 : vector<1x128xf32> to vector<256x128xf32>
    %5 = arith.addf %2, %4 : vector<256x128xf32>
    %cst_5 = arith.constant 0.000000e+00 : f32
    %6 = vector.broadcast %cst_5 : f32 to vector<256x128xf32>
    %7 = arith.maximumf %5, %6 : vector<256x128xf32>
    %8 = arith.truncf %7 : vector<256x128xf32> to vector<256x128xbf16>
    %c0_6 = arith.constant 0 : index
    %c0_7 = arith.constant 0 : index
    %9 = vector.load %arg5[%c0_6, %c0_7] : memref<256x128xbf16, #tpu.memory_space<vmem>>, vector<256x128xbf16>
    tpu.vector_store %arg5[%c0_6, %c0_7], %8 {strides = array<i32>} : memref<256x128xbf16, #tpu.memory_space<vmem>>, vector<256x128xbf16>,
    return
  }
  func.func @transform_0(%arg0: i32, %arg1: i32) -> (i32, i32) {
    %c0_i32 = arith.constant 0 : i32
    %c0_i32_0 = arith.constant 0 : i32
    return %arg1, %c0_i32 : i32, i32
  }
  func.func @transform_1(%arg0: i32, %arg1: i32) -> (i32, i32) {
    %c0_i32 = arith.constant 0 : i32
    %c0_i32_0 = arith.constant 0 : i32
    return %c0_i32, %arg0 : i32, i32
  }
  func.func @transform_2(%arg0: i32, %arg1: i32) -> (i32, i32) {
    %c0_i32 = arith.constant 0 : i32
    %c0_i32_0 = arith.constant 0 : i32
    return %c0_i32, %arg0 : i32, i32
  }
  func.func @transform_3(%arg0: i32, %arg1: i32) -> (i32, i32) {
    %c0_i32 = arith.constant 0 : i32
    return %arg1, %arg0 : i32, i32
  }
}

module attributes {stable_mosaic.version = 11 : i64} {
  func.func @_fused_mm_kernel(%arg0: i32, %arg1: i32, %arg2: memref<256x128xbf16, #tpu.memory_space<vmem>>, %arg3: memref<128x128xbf16, #tpu.memory_space<vmem>>, %arg4: memref<256x128xf32, #tpu.memory_space<vmem>>, %arg5: memref<1x128xf32, #tpu.memory_space<vmem>>, %arg6: memref<256x128xf32, #tpu.memory_space<vmem>>) attributes {dimension_semantics = [#tpu.dimension_semantics<parallel>, #tpu.dimension_semantics<parallel>], iteration_bounds = array<i64: 1, 2>, scalar_prefetch = 0 : i64, scratch_operands = 0 : i64, tpu.core_type = #tpu.core_type<tc>, window_params = [{transform_indices = @transform_0, window_bounds = array<i64: 256, 128>}, {transform_indices = @transform_1, window_bounds = array<i64: 128, 128>}, {transform_indices = @transform_2, window_bounds = array<i64: 256, 128>}, {transform_indices = @transform_3, window_bounds = array<i64: 1, 128>}, {transform_indices = @transform_4, window_bounds = array<i64: 256, 128>}]} {
    %c0 = arith.constant 0 : index
    %c0_0 = arith.constant 0 : index
    %0 = vector.load %arg2[%c0, %c0_0] : memref<256x128xbf16, #tpu.memory_space<vmem>>, vector<256x128xbf16>
    %c0_1 = arith.constant 0 : index
    %c0_2 = arith.constant 0 : index
    %1 = vector.load %arg3[%c0_1, %c0_2] : memref<128x128xbf16, #tpu.memory_space<vmem>>, vector<128x128xbf16>
    %cst = arith.constant dense<0.000000e+00> : vector<256x128xf32>
    %2 = tpu.matmul %0, %1, %cst {dimension_numbers = #tpu.dot_dimension_numbers<[1], [0], [0], [1], [0, 0, 1, 1], [], []>} : vector<256x128xbf16>, vector<128x128xbf16>, vector<256x128xf32> -> vector<256x128xf32>
    %c0_3 = arith.constant 0 : index
    %c0_4 = arith.constant 0 : index
    %3 = vector.load %arg4[%c0_3, %c0_4] : memref<256x128xf32, #tpu.memory_space<vmem>>, vector<256x128xf32>
    %4 = arith.addf %2, %3 : vector<256x128xf32>
    %c0_5 = arith.constant 0 : index
    %c0_6 = arith.constant 0 : index
    %5 = vector.load %arg5[%c0_5, %c0_6] : memref<1x128xf32, #tpu.memory_space<vmem>>, vector<1x128xf32>
    %6 = vector.broadcast %5 : vector<1x128xf32> to vector<256x128xf32>
    %7 = arith.addf %4, %6 : vector<256x128xf32>
    %cst_7 = arith.constant 0.000000e+00 : f32
    %8 = vector.broadcast %cst_7 : f32 to vector<256x128xf32>
    %9 = arith.maximumf %7, %8 : vector<256x128xf32>
    %c0_8 = arith.constant 0 : index
    %c0_9 = arith.constant 0 : index
    %10 = vector.load %arg6[%c0_8, %c0_9] : memref<256x128xf32, #tpu.memory_space<vmem>>, vector<256x128xf32>
    tpu.vector_store %arg6[%c0_8, %c0_9], %9 {strides = array<i32>} : memref<256x128xf32, #tpu.memory_space<vmem>>, vector<256x128xf32>,
    return
  }
  func.func @transform_0(%arg0: i32, %arg1: i32) -> (i32, i32) {
    %c0_i32 = arith.constant 0 : i32
    %c0_i32_0 = arith.constant 0 : i32
    return %arg1, %c0_i32 : i32, i32
  }
  func.func @transform_1(%arg0: i32, %arg1: i32) -> (i32, i32) {
    %c0_i32 = arith.constant 0 : i32
    %c0_i32_0 = arith.constant 0 : i32
    return %c0_i32, %arg0 : i32, i32
  }
  func.func @transform_2(%arg0: i32, %arg1: i32) -> (i32, i32) {
    %c0_i32 = arith.constant 0 : i32
    return %arg1, %arg0 : i32, i32
  }
  func.func @transform_3(%arg0: i32, %arg1: i32) -> (i32, i32) {
    %c0_i32 = arith.constant 0 : i32
    %c0_i32_0 = arith.constant 0 : i32
    return %c0_i32, %arg0 : i32, i32
  }
  func.func @transform_4(%arg0: i32, %arg1: i32) -> (i32, i32) {
    %c0_i32 = arith.constant 0 : i32
    return %arg1, %arg0 : i32, i32
  }
}

module attributes {stable_mosaic.version = 11 : i64} {
  func.func @_fused_mm_kernel(%arg0: i32, %arg1: i32, %arg2: memref<256x128xbf16, #tpu.memory_space<vmem>>, %arg3: memref<256x128xbf16, #tpu.memory_space<vmem>>, %arg4: memref<256x128xbf16, #tpu.memory_space<vmem>>, %arg5: memref<256x128xbf16, #tpu.memory_space<vmem>>, %arg6: memref<256x128xbf16, #tpu.memory_space<vmem>>, %arg7: memref<256x128xbf16, #tpu.memory_space<vmem>>, %arg8: memref<256x128xbf16, #tpu.memory_space<vmem>>, %arg9: memref<256x128xbf16, #tpu.memory_space<vmem>>, %arg10: memref<256x128xbf16, #tpu.memory_space<vmem>>, %arg11: memref<128x128xbf16, #tpu.memory_space<vmem>>, %arg12: memref<128x128xbf16, #tpu.memory_space<vmem>>, %arg13: memref<128x128xbf16, #tpu.memory_space<vmem>>, %arg14: memref<128x128xbf16, #tpu.memory_space<vmem>>, %arg15: memref<128x128xbf16, #tpu.memory_space<vmem>>, %arg16: memref<128x128xbf16, #tpu.memory_space<vmem>>, %arg17: memref<128x128xbf16, #tpu.memory_space<vmem>>, %arg18: memref<128x128xbf16, #tpu.memory_space<vmem>>, %arg19: memref<128x128xbf16, #tpu.memory_space<vmem>>, %arg20: memref<1x128xf32, #tpu.memory_space<vmem>>, %arg21: memref<256x128xbf16, #tpu.memory_space<vmem>>) attributes {dimension_semantics = [#tpu.dimension_semantics<parallel>, #tpu.dimension_semantics<parallel>], iteration_bounds = array<i64: 1, 2>, scalar_prefetch = 0 : i64, scratch_operands = 0 : i64, tpu.core_type = #tpu.core_type<tc>, window_params = [{transform_indices = @transform_0, window_bounds = array<i64: 256, 128>}, {transform_indices = @transform_1, window_bounds = array<i64: 256, 128>}, {transform_indices = @transform_2, window_bounds = array<i64: 256, 128>}, {transform_indices = @transform_3, window_bounds = array<i64: 256, 128>}, {transform_indices = @transform_4, window_bounds = array<i64: 256, 128>}, {transform_indices = @transform_5, window_bounds = array<i64: 256, 128>}, {transform_indices = @transform_6, window_bounds = array<i64: 256, 128>}, {transform_indices = @transform_7, window_bounds = array<i64: 256, 128>}, {transform_indices = @transform_8, window_bounds = array<i64: 256, 128>}, {transform_indices = @transform_9, window_bounds = array<i64: 128, 128>}, {transform_indices = @transform_10, window_bounds = array<i64: 128, 128>}, {transform_indices = @transform_11, window_bounds = array<i64: 128, 128>}, {transform_indices = @transform_12, window_bounds = array<i64: 128, 128>}, {transform_indices = @transform_13, window_bounds = array<i64: 128, 128>}, {transform_indices = @transform_14, window_bounds = array<i64: 128, 128>}, {transform_indices = @transform_15, window_bounds = array<i64: 128, 128>}, {transform_indices = @transform_16, window_bounds = array<i64: 128, 128>}, {transform_indices = @transform_17, window_bounds = array<i64: 128, 128>}, {transform_indices = @transform_18, window_bounds = array<i64: 1, 128>}, {transform_indices = @transform_19, window_bounds = array<i64: 256, 128>}]} {
    %c0 = arith.constant 0 : index
    %c0_0 = arith.constant 0 : index
    %0 = vector.load %arg2[%c0, %c0_0] : memref<256x128xbf16, #tpu.memory_space<vmem>>, vector<256x128xbf16>
    %c0_1 = arith.constant 0 : index
    %c0_2 = arith.constant 0 : index
    %1 = vector.load %arg11[%c0_1, %c0_2] : memref<128x128xbf16, #tpu.memory_space<vmem>>, vector<128x128xbf16>
    %cst = arith.constant dense<0.000000e+00> : vector<256x128xf32>
    %2 = tpu.matmul %0, %1, %cst {dimension_numbers = #tpu.dot_dimension_numbers<[1], [0], [0], [1], [0, 0, 1, 1], [], []>} : vector<256x128xbf16>, vector<128x128xbf16>, vector<256x128xf32> -> vector<256x128xf32>
    %c0_3 = arith.constant 0 : index
    %c0_4 = arith.constant 0 : index
    %3 = vector.load %arg3[%c0_3, %c0_4] : memref<256x128xbf16, #tpu.memory_space<vmem>>, vector<256x128xbf16>
    %c0_5 = arith.constant 0 : index
    %c0_6 = arith.constant 0 : index
    %4 = vector.load %arg12[%c0_5, %c0_6] : memref<128x128xbf16, #tpu.memory_space<vmem>>, vector<128x128xbf16>
    %cst_7 = arith.constant dense<0.000000e+00> : vector<256x128xf32>
    %5 = tpu.matmul %3, %4, %cst_7 {dimension_numbers = #tpu.dot_dimension_numbers<[1], [0], [0], [1], [0, 0, 1, 1], [], []>} : vector<256x128xbf16>, vector<128x128xbf16>, vector<256x128xf32> -> vector<256x128xf32>
    %6 = arith.addf %2, %5 : vector<256x128xf32>
    %c0_8 = arith.constant 0 : index
    %c0_9 = arith.constant 0 : index
    %7 = vector.load %arg4[%c0_8, %c0_9] : memref<256x128xbf16, #tpu.memory_space<vmem>>, vector<256x128xbf16>
    %c0_10 = arith.constant 0 : index
    %c0_11 = arith.constant 0 : index
    %8 = vector.load %arg13[%c0_10, %c0_11] : memref<128x128xbf16, #tpu.memory_space<vmem>>, vector<128x128xbf16>
    %cst_12 = arith.constant dense<0.000000e+00> : vector<256x128xf32>
    %9 = tpu.matmul %7, %8, %cst_12 {dimension_numbers = #tpu.dot_dimension_numbers<[1], [0], [0], [1], [0, 0, 1, 1], [], []>} : vector<256x128xbf16>, vector<128x128xbf16>, vector<256x128xf32> -> vector<256x128xf32>
    %10 = arith.addf %6, %9 : vector<256x128xf32>
    %c0_13 = arith.constant 0 : index
    %c0_14 = arith.constant 0 : index
    %11 = vector.load %arg5[%c0_13, %c0_14] : memref<256x128xbf16, #tpu.memory_space<vmem>>, vector<256x128xbf16>
    %c0_15 = arith.constant 0 : index
    %c0_16 = arith.constant 0 : index
    %12 = vector.load %arg14[%c0_15, %c0_16] : memref<128x128xbf16, #tpu.memory_space<vmem>>, vector<128x128xbf16>
    %cst_17 = arith.constant dense<0.000000e+00> : vector<256x128xf32>
    %13 = tpu.matmul %11, %12, %cst_17 {dimension_numbers = #tpu.dot_dimension_numbers<[1], [0], [0], [1], [0, 0, 1, 1], [], []>} : vector<256x128xbf16>, vector<128x128xbf16>, vector<256x128xf32> -> vector<256x128xf32>
    %14 = arith.addf %10, %13 : vector<256x128xf32>
    %c0_18 = arith.constant 0 : index
    %c0_19 = arith.constant 0 : index
    %15 = vector.load %arg6[%c0_18, %c0_19] : memref<256x128xbf16, #tpu.memory_space<vmem>>, vector<256x128xbf16>
    %c0_20 = arith.constant 0 : index
    %c0_21 = arith.constant 0 : index
    %16 = vector.load %arg15[%c0_20, %c0_21] : memref<128x128xbf16, #tpu.memory_space<vmem>>, vector<128x128xbf16>
    %cst_22 = arith.constant dense<0.000000e+00> : vector<256x128xf32>
    %17 = tpu.matmul %15, %16, %cst_22 {dimension_numbers = #tpu.dot_dimension_numbers<[1], [0], [0], [1], [0, 0, 1, 1], [], []>} : vector<256x128xbf16>, vector<128x128xbf16>, vector<256x128xf32> -> vector<256x128xf32>
    %18 = arith.addf %14, %17 : vector<256x128xf32>
    %c0_23 = arith.constant 0 : index
    %c0_24 = arith.constant 0 : index
    %19 = vector.load %arg7[%c0_23, %c0_24] : memref<256x128xbf16, #tpu.memory_space<vmem>>, vector<256x128xbf16>
    %c0_25 = arith.constant 0 : index
    %c0_26 = arith.constant 0 : index
    %20 = vector.load %arg16[%c0_25, %c0_26] : memref<128x128xbf16, #tpu.memory_space<vmem>>, vector<128x128xbf16>
    %cst_27 = arith.constant dense<0.000000e+00> : vector<256x128xf32>
    %21 = tpu.matmul %19, %20, %cst_27 {dimension_numbers = #tpu.dot_dimension_numbers<[1], [0], [0], [1], [0, 0, 1, 1], [], []>} : vector<256x128xbf16>, vector<128x128xbf16>, vector<256x128xf32> -> vector<256x128xf32>
    %22 = arith.addf %18, %21 : vector<256x128xf32>
    %c0_28 = arith.constant 0 : index
    %c0_29 = arith.constant 0 : index
    %23 = vector.load %arg8[%c0_28, %c0_29] : memref<256x128xbf16, #tpu.memory_space<vmem>>, vector<256x128xbf16>
    %c0_30 = arith.constant 0 : index
    %c0_31 = arith.constant 0 : index
    %24 = vector.load %arg17[%c0_30, %c0_31] : memref<128x128xbf16, #tpu.memory_space<vmem>>, vector<128x128xbf16>
    %cst_32 = arith.constant dense<0.000000e+00> : vector<256x128xf32>
    %25 = tpu.matmul %23, %24, %cst_32 {dimension_numbers = #tpu.dot_dimension_numbers<[1], [0], [0], [1], [0, 0, 1, 1], [], []>} : vector<256x128xbf16>, vector<128x128xbf16>, vector<256x128xf32> -> vector<256x128xf32>
    %26 = arith.addf %22, %25 : vector<256x128xf32>
    %c0_33 = arith.constant 0 : index
    %c0_34 = arith.constant 0 : index
    %27 = vector.load %arg9[%c0_33, %c0_34] : memref<256x128xbf16, #tpu.memory_space<vmem>>, vector<256x128xbf16>
    %c0_35 = arith.constant 0 : index
    %c0_36 = arith.constant 0 : index
    %28 = vector.load %arg18[%c0_35, %c0_36] : memref<128x128xbf16, #tpu.memory_space<vmem>>, vector<128x128xbf16>
    %cst_37 = arith.constant dense<0.000000e+00> : vector<256x128xf32>
    %29 = tpu.matmul %27, %28, %cst_37 {dimension_numbers = #tpu.dot_dimension_numbers<[1], [0], [0], [1], [0, 0, 1, 1], [], []>} : vector<256x128xbf16>, vector<128x128xbf16>, vector<256x128xf32> -> vector<256x128xf32>
    %30 = arith.addf %26, %29 : vector<256x128xf32>
    %c0_38 = arith.constant 0 : index
    %c0_39 = arith.constant 0 : index
    %31 = vector.load %arg10[%c0_38, %c0_39] : memref<256x128xbf16, #tpu.memory_space<vmem>>, vector<256x128xbf16>
    %c0_40 = arith.constant 0 : index
    %c0_41 = arith.constant 0 : index
    %32 = vector.load %arg19[%c0_40, %c0_41] : memref<128x128xbf16, #tpu.memory_space<vmem>>, vector<128x128xbf16>
    %cst_42 = arith.constant dense<0.000000e+00> : vector<256x128xf32>
    %33 = tpu.matmul %31, %32, %cst_42 {dimension_numbers = #tpu.dot_dimension_numbers<[1], [0], [0], [1], [0, 0, 1, 1], [], []>} : vector<256x128xbf16>, vector<128x128xbf16>, vector<256x128xf32> -> vector<256x128xf32>
    %34 = arith.addf %30, %33 : vector<256x128xf32>
    %c0_43 = arith.constant 0 : index
    %c0_44 = arith.constant 0 : index
    %35 = vector.load %arg20[%c0_43, %c0_44] : memref<1x128xf32, #tpu.memory_space<vmem>>, vector<1x128xf32>
    %36 = vector.broadcast %35 : vector<1x128xf32> to vector<256x128xf32>
    %37 = arith.addf %34, %36 : vector<256x128xf32>
    %cst_45 = arith.constant 0.000000e+00 : f32
    %38 = vector.broadcast %cst_45 : f32 to vector<256x128xf32>
    %39 = arith.maximumf %37, %38 : vector<256x128xf32>
    %40 = arith.truncf %39 : vector<256x128xf32> to vector<256x128xbf16>
    %c0_46 = arith.constant 0 : index
    %c0_47 = arith.constant 0 : index
    %41 = vector.load %arg21[%c0_46, %c0_47] : memref<256x128xbf16, #tpu.memory_space<vmem>>, vector<256x128xbf16>
    tpu.vector_store %arg21[%c0_46, %c0_47], %40 {strides = array<i32>} : memref<256x128xbf16, #tpu.memory_space<vmem>>, vector<256x128xbf16>,
    return
  }
  func.func @transform_0(%arg0: i32, %arg1: i32) -> (i32, i32) {
    %c0_i32 = arith.constant 0 : i32
    %c0_i32_0 = arith.constant 0 : i32
    return %arg1, %c0_i32 : i32, i32
  }
  func.func @transform_1(%arg0: i32, %arg1: i32) -> (i32, i32) {
    %c0_i32 = arith.constant 0 : i32
    %c0_i32_0 = arith.constant 0 : i32
    return %arg1, %c0_i32 : i32, i32
  }
  func.func @transform_2(%arg0: i32, %arg1: i32) -> (i32, i32) {
    %c0_i32 = arith.constant 0 : i32
    %c0_i32_0 = arith.constant 0 : i32
    return %arg1, %c0_i32 : i32, i32
  }
  func.func @transform_3(%arg0: i32, %arg1: i32) -> (i32, i32) {
    %c0_i32 = arith.constant 0 : i32
    %c0_i32_0 = arith.constant 0 : i32
    return %arg1, %c0_i32 : i32, i32
  }
  func.func @transform_4(%arg0: i32, %arg1: i32) -> (i32, i32) {
    %c0_i32 = arith.constant 0 : i32
    %c0_i32_0 = arith.constant 0 : i32
    return %arg1, %c0_i32 : i32, i32
  }
  func.func @transform_5(%arg0: i32, %arg1: i32) -> (i32, i32) {
    %c0_i32 = arith.constant 0 : i32
    %c0_i32_0 = arith.constant 0 : i32
    return %arg1, %c0_i32 : i32, i32
  }
  func.func @transform_6(%arg0: i32, %arg1: i32) -> (i32, i32) {
    %c0_i32 = arith.constant 0 : i32
    %c0_i32_0 = arith.constant 0 : i32
    return %arg1, %c0_i32 : i32, i32
  }
  func.func @transform_7(%arg0: i32, %arg1: i32) -> (i32, i32) {
    %c0_i32 = arith.constant 0 : i32
    %c0_i32_0 = arith.constant 0 : i32
    return %arg1, %c0_i32 : i32, i32
  }
  func.func @transform_8(%arg0: i32, %arg1: i32) -> (i32, i32) {
    %c0_i32 = arith.constant 0 : i32
    %c0_i32_0 = arith.constant 0 : i32
    return %arg1, %c0_i32 : i32, i32
  }
  func.func @transform_9(%arg0: i32, %arg1: i32) -> (i32, i32) {
    %c0_i32 = arith.constant 0 : i32
    %c0_i32_0 = arith.constant 0 : i32
    return %c0_i32, %arg0 : i32, i32
  }
  func.func @transform_10(%arg0: i32, %arg1: i32) -> (i32, i32) {
    %c0_i32 = arith.constant 0 : i32
    %c0_i32_0 = arith.constant 0 : i32
    return %c0_i32, %arg0 : i32, i32
  }
  func.func @transform_11(%arg0: i32, %arg1: i32) -> (i32, i32) {
    %c0_i32 = arith.constant 0 : i32
    %c0_i32_0 = arith.constant 0 : i32
    return %c0_i32, %arg0 : i32, i32
  }
  func.func @transform_12(%arg0: i32, %arg1: i32) -> (i32, i32) {
    %c0_i32 = arith.constant 0 : i32
    %c0_i32_0 = arith.constant 0 : i32
    return %c0_i32, %arg0 : i32, i32
  }
  func.func @transform_13(%arg0: i32, %arg1: i32) -> (i32, i32) {
    %c0_i32 = arith.constant 0 : i32
    %c0_i32_0 = arith.constant 0 : i32
    return %c0_i32, %arg0 : i32, i32
  }
  func.func @transform_14(%arg0: i32, %arg1: i32) -> (i32, i32) {
    %c0_i32 = arith.constant 0 : i32
    %c0_i32_0 = arith.constant 0 : i32
    return %c0_i32, %arg0 : i32, i32
  }
  func.func @transform_15(%arg0: i32, %arg1: i32) -> (i32, i32) {
    %c0_i32 = arith.constant 0 : i32
    %c0_i32_0 = arith.constant 0 : i32
    return %c0_i32, %arg0 : i32, i32
  }
  func.func @transform_16(%arg0: i32, %arg1: i32) -> (i32, i32) {
    %c0_i32 = arith.constant 0 : i32
    %c0_i32_0 = arith.constant 0 : i32
    return %c0_i32, %arg0 : i32, i32
  }
  func.func @transform_17(%arg0: i32, %arg1: i32) -> (i32, i32) {
    %c0_i32 = arith.constant 0 : i32
    %c0_i32_0 = arith.constant 0 : i32
    return %c0_i32, %arg0 : i32, i32
  }
  func.func @transform_18(%arg0: i32, %arg1: i32) -> (i32, i32) {
    %c0_i32 = arith.constant 0 : i32
    %c0_i32_0 = arith.constant 0 : i32
    return %c0_i32, %arg0 : i32, i32
  }
  func.func @transform_19(%arg0: i32, %arg1: i32) -> (i32, i32) {
    %c0_i32 = arith.constant 0 : i32
    return %arg1, %arg0 : i32, i32
  }
}

</mosaic_0001>

<bundles_post_ra>
// kernel: resnext_block_forward.3
= control target key start
LH: loop header
LB: loop body
LE: loop exit
PB: predicated region body
PF: predicated region fallthrough
CT: control target
= control target key end

     0   :  { %s1198_s12 = smov 0   ;;  %s1200_s13 = smov 0   ;;  %s1330_s0 = inlined_call_operand.vmem [shape: bf16[512,4], index: 0, kind: input, shape index: {}]   ;;  %s1331_s1 = inlined_call_operand.vmem [shape: bf16[4,128], index: 1, kind: input, shape index: {}]   ;;  %s1332_s2 = inlined_call_operand.vmem [shape: f32[1,128], index: 2, kind: input, shape index: {}]   ;;  %s1333_s3 = inlined_call_operand.vmem [shape: bf16[512,128], index: 3, kind: output, shape index: {}]  }
   0x1   :  { %s1202_s14 = smov 0  }
   0x2 LB: > { %s22_s15 = sadd.s32 1, %s1172_s13  ;;  %p860_p0 = scmp.ge.s32.totalorder %s1176_s14, 1  ;;  %s1176_s14 = sphi %s1202_s14, %s13_s14   ;;  %s1172_s13 = sphi %s1200_s13, %s1335_s13   ;;  %s1168_s12 = sphi %s1198_s12, %s1334_s12  }
   0x3   : > { %p23_p1 = scmp.ge.s32.totalorder %s22_s15, 2  ;;  %p169_p2 = scmp.lt.s32.totalorder %s1176_s14, 3 }
   0x5   : > { %s1337_s15 = smov (%p23_p1, %s22_s15), 0  ;;  %p170_p3 = pnand %p860_p0, %p169_p2 }
   0x6   : > { %v258_v0 = vld [vmem:[%s1331_s1] sm:$0x3] (!%p170_p3)  ;;  %vm395_vm0 = vcmask (!%p170_p3), 1041408   ;;  %s861_s18 = sshll.u32 (!%p170_p3), %s1168_s12, 5  ;;  %vm346_vm1 = vcmask (!%p170_p3), 31744  }
   0x7   : > { %173 = sbr.rel (%p170_p3) target bundleno = 266 (0x10a), region = 32  ;;  %1112 = vmatprep.subr.msk.bf16.mxu0 (!%p170_p3), %vm395_vm0, %v258_v0  ;;  %1113 = vmatprep.subr.msk.bf16.mxu1 (!%p170_p3), %vm395_vm0, %v258_v0  ;;  %v397_v1 = vsel (!%p170_p3), %vm395_vm0, %v258_v0, 0  ;;  %p204_p4 = scmp.lt.s32.totalorder (!%p170_p3), %s861_s18, 63  ;;  %v1264_v18 = vld [vmem:[%s1332_s2] ss:$0 sm:$0xff] (!%p170_p3) }
   0x8   : > { %1077 = vmatpush3.bf16.msra.mxu0 (!%p170_p3), %v397_v1  ;;  %1111 = vmatpush3.bf16.msra.mxu1 (!%p170_p3), %v397_v1 }
   0xe   : > { %s1339_s18 = smov (!%p204_p4, %s861_s18), 63 }
   0xf   : > { %s862_s19 = sshll.u32 %s1339_s18, 2 }
  0x10   : > { %s1227_s22 = scalar_lea.vmem %s1330_s0, %s862_s19  ;;  %s1279_s27 = scalar_lea.vmem %s1333_s3, %s862_s19 }
  0x11   : > { %v1138_v2 = vld [vmem:[%s1227_s22] sm:$0xff]   ;;  %v1140_v4 = vld [vmem:[%s1227_s22 + $0x8] sm:$0xff]   ;;  %v1142_v6 = vld [vmem:[%s1227_s22 + $0x10] sm:$0xff]  }
  0x12   : > { %v1139_v3 = vld [vmem:[%s1227_s22 + $0x40] sm:$0xff]   ;;  %1078 = vmatprep.mubr.msk.bf16.mxu0 %vm346_vm1, %v1138_v2  ;;  %v1141_v5 = vld [vmem:[%s1227_s22 + $0x48] sm:$0xff]   ;;  %v1143_v7 = vld [vmem:[%s1227_s22 + $0x50] sm:$0xff]  }
  0x13   : > { %1094 = vmatprep.mubr.msk.bf16.mxu1 %vm346_vm1, %v1139_v3  ;;  %1079 = vmatmul.mubr.msk.bf16.vlgmr.msra.gmra.mrb[0].mxu0 %vm346_vm1, %v1140_v4  ;;  %v1144_v8 = vld [vmem:[%s1227_s22 + $0x18] sm:$0xff]   ;;  %v1146_v10 = vld [vmem:[%s1227_s22 + $0x20] sm:$0xff]   ;;  %v1148_v12 = vld [vmem:[%s1227_s22 + $0x28] sm:$0xff]  }
  0x14   : > { %1095 = vmatmul.mubr.msk.bf16.vlgmr.msra.gmra.mrb[0].mxu1 %vm346_vm1, %v1141_v5  ;;  %1082 = vmatprep.mubr.msk.bf16.mxu0 %vm346_vm1, %v1142_v6  ;;  %v1145_v9 = vld [vmem:[%s1227_s22 + $0x58] sm:$0xff]   ;;  %v1147_v11 = vld [vmem:[%s1227_s22 + $0x60] sm:$0xff]   ;;  %v1149_v13 = vld [vmem:[%s1227_s22 + $0x68] sm:$0xff]  }
  0x15   : > { %1098 = vmatprep.mubr.msk.bf16.mxu1 %vm346_vm1, %v1143_v7  ;;  %v1150_v14 = vld [vmem:[%s1227_s22 + $0x30] sm:$0xff]   ;;  %v1152_v16 = vld [vmem:[%s1227_s22 + $0x38] sm:$0xff]  }
  0x16   : > { %v1151_v15 = vld [vmem:[%s1227_s22 + $0x70] sm:$0xff]   ;;  %v1153_v17 = vld [vmem:[%s1227_s22 + $0x78] sm:$0xff]  }
  0x1b   : > { %1083 = vmatmul.mubr.msk.bf16.gmra.mrb[4].mxu0 %vm346_vm1, %v1144_v8 }
  0x1c   : > { %1099 = vmatmul.mubr.msk.bf16.gmra.mrb[4].mxu1 %vm346_vm1, %v1145_v9  ;;  %1086 = vmatprep.mubr.msk.bf16.mxu0 %vm346_vm1, %v1146_v10 }
  0x1d   : > { %1102 = vmatprep.mubr.msk.bf16.mxu1 %vm346_vm1, %v1147_v11 }
  0x23   : > { %1087 = vmatmul.mubr.msk.bf16.gmra.mrb[8].mxu0 %vm346_vm1, %v1148_v12 }
  0x24   : > { %1103 = vmatmul.mubr.msk.bf16.gmra.mrb[8].mxu1 %vm346_vm1, %v1149_v13  ;;  %1090 = vmatprep.mubr.msk.bf16.mxu0 %vm346_vm1, %v1150_v14 }
  0x25   : > { %1106 = vmatprep.mubr.msk.bf16.mxu1 %vm346_vm1, %v1151_v15 }
  0x2b   : > { %1091 = vmatmul.mubr.msk.bf16.gmra.mrb[12].mxu0 %vm346_vm1, %v1152_v16 }
  0x2c   : > { %1107 = vmatmul.mubr.msk.bf16.gmra.mrb[12].mxu1 %vm346_vm1, %v1153_v17 }
  0xe6   : > { %v1080_v19 = vpop.f32.mrb[0].mxu0 }
  0xe7   : > { %v442_v20 = vadd.f32 %v1080_v19, %v1264_v18  ;;  %v1096_v21 = vpop.f32.mrb[0].mxu1  ;;  %v433_v22 = vpop.f32.mrb[1].mxu0 }
  0xe8   : > { %v506_v23 = vadd.f32 %v1096_v21, %v1264_v18  ;;  %v434_v24 = vadd.f32 %v1264_v18, %v433_v22  ;;  %v497_v25 = vpop.f32.mrb[1].mxu1  ;;  %v1081_v26 = vpop.f32.mrb[2].mxu0 }
  0xe9   : > { %v498_v27 = vadd.f32 %v1264_v18, %v497_v25  ;;  %v445_v28 = vadd.f32 %v1081_v26, %v1264_v18  ;;  %v1097_v29 = vpop.f32.mrb[2].mxu1  ;;  %v436_v30 = vpop.f32.mrb[3].mxu0  ;;  %v562_v34 = vmax.f32 %v442_v20, 0.0 }
  0xea   : > { %v509_v31 = vadd.f32 %v1097_v29, %v1264_v18  ;;  %v437_v32 = vadd.f32 %v1264_v18, %v436_v30  ;;  %v500_v33 = vpop.f32.mrb[3].mxu1  ;;  %v578_v37 = vmax.f32 %v506_v23, 0.0  ;;  %v560_v38 = vmax.f32 %v434_v24, 0.0 }
  0xeb   : > { %v563_v35 = vmax.f32 %v445_v28, 0.0  ;;  %v501_v36 = vadd.f32 %v1264_v18, %v500_v33  ;;  %v576_v41 = vmax.f32 %v498_v27, 0.0 }
  0xec   : > { %v579_v39 = vmax.f32 %v509_v31, 0.0  ;;  %v561_v40 = vmax.f32 %v437_v32, 0.0 }
  0xed   : > { %v972_v42 = vpack.c.bf16 %v563_v35, %v562_v34  ;;  %v577_v43 = vmax.f32 %v501_v36, 0.0 }
  0xee   : > { %v1012_v44 = vpack.c.bf16 %v579_v39, %v578_v37  ;;  %v967_v45 = vpack.c.bf16 %v561_v40, %v560_v38  ;;  %v1084_v46 = vpop.f32.mrb[4].mxu0 }
  0xef   : > { %1044 = vst [vmem:[%s1279_s27 + $0x8] sm:$0xff] %v972_v42   ;;  %v1007_v47 = vpack.c.bf16 %v577_v43, %v576_v41  ;;  %v458_v48 = vadd.f32 %v1084_v46, %v1264_v18  ;;  %v1100_v49 = vpop.f32.mrb[4].mxu1  ;;  %v449_v50 = vpop.f32.mrb[5].mxu0 }
  0xf0   : > { %1052 = vst [vmem:[%s1279_s27 + $0x48] sm:$0xff] %v1012_v44   ;;  %968 = vst [vmem:[%s1279_s27] sm:$0xff] %v967_v45   ;;  %v522_v51 = vadd.f32 %v1100_v49, %v1264_v18  ;;  %v450_v52 = vadd.f32 %v1264_v18, %v449_v50  ;;  %v513_v53 = vpop.f32.mrb[5].mxu1  ;;  %v1085_v54 = vpop.f32.mrb[6].mxu0 }
  0xf1   : > { %1051 = vst [vmem:[%s1279_s27 + $0x40] sm:$0xff] %v1007_v47   ;;  %v514_v55 = vadd.f32 %v1264_v18, %v513_v53  ;;  %v461_v56 = vadd.f32 %v1085_v54, %v1264_v18  ;;  %v1101_v57 = vpop.f32.mrb[6].mxu1  ;;  %v452_v58 = vpop.f32.mrb[7].mxu0  ;;  %v566_v62 = vmax.f32 %v458_v48, 0.0 }
  0xf2   : > { %v525_v59 = vadd.f32 %v1101_v57, %v1264_v18  ;;  %v453_v60 = vadd.f32 %v1264_v18, %v452_v58  ;;  %v516_v61 = vpop.f32.mrb[7].mxu1  ;;  %v582_v1 = vmax.f32 %v522_v51, 0.0  ;;  %v564_v2 = vmax.f32 %v450_v52, 0.0 }
  0xf3   : > { %v567_v63 = vmax.f32 %v461_v56, 0.0  ;;  %v517_v0 = vadd.f32 %v1264_v18, %v516_v61  ;;  %v580_v5 = vmax.f32 %v514_v55, 0.0 }
  0xf4   : > { %v583_v3 = vmax.f32 %v525_v59, 0.0  ;;  %v565_v4 = vmax.f32 %v453_v60, 0.0 }
  0xf5   : > { %v982_v6 = vpack.c.bf16 %v567_v63, %v566_v62  ;;  %v581_v7 = vmax.f32 %v517_v0, 0.0 }
  0xf6   : > { %v1022_v8 = vpack.c.bf16 %v583_v3, %v582_v1  ;;  %v977_v9 = vpack.c.bf16 %v565_v4, %v564_v2  ;;  %v1088_v10 = vpop.f32.mrb[8].mxu0 }
  0xf7   : > { %1046 = vst [vmem:[%s1279_s27 + $0x18] sm:$0xff] %v982_v6   ;;  %v1017_v11 = vpack.c.bf16 %v581_v7, %v580_v5  ;;  %v474_v12 = vadd.f32 %v1088_v10, %v1264_v18  ;;  %v1104_v13 = vpop.f32.mrb[8].mxu1  ;;  %v465_v14 = vpop.f32.mrb[9].mxu0 }
  0xf8   : > { %1054 = vst [vmem:[%s1279_s27 + $0x58] sm:$0xff] %v1022_v8   ;;  %1045 = vst [vmem:[%s1279_s27 + $0x10] sm:$0xff] %v977_v9   ;;  %v538_v15 = vadd.f32 %v1104_v13, %v1264_v18  ;;  %v466_v16 = vadd.f32 %v1264_v18, %v465_v14  ;;  %v529_v17 = vpop.f32.mrb[9].mxu1  ;;  %v1089_v19 = vpop.f32.mrb[10].mxu0 }
  0xf9   : > { %1053 = vst [vmem:[%s1279_s27 + $0x50] sm:$0xff] %v1017_v11   ;;  %v530_v20 = vadd.f32 %v1264_v18, %v529_v17  ;;  %v477_v21 = vadd.f32 %v1089_v19, %v1264_v18  ;;  %v1105_v22 = vpop.f32.mrb[10].mxu1  ;;  %v468_v23 = vpop.f32.mrb[11].mxu0  ;;  %v570_v27 = vmax.f32 %v474_v12, 0.0 }
  0xfa   : > { %v541_v24 = vadd.f32 %v1105_v22, %v1264_v18  ;;  %v469_v25 = vadd.f32 %v1264_v18, %v468_v23  ;;  %v532_v26 = vpop.f32.mrb[11].mxu1  ;;  %v586_v30 = vmax.f32 %v538_v15, 0.0  ;;  %v568_v31 = vmax.f32 %v466_v16, 0.0 }
  0xfb   : > { %v571_v28 = vmax.f32 %v477_v21, 0.0  ;;  %v533_v29 = vadd.f32 %v1264_v18, %v532_v26  ;;  %v584_v34 = vmax.f32 %v530_v20, 0.0 }
  0xfc   : > { %v587_v32 = vmax.f32 %v541_v24, 0.0  ;;  %v569_v33 = vmax.f32 %v469_v25, 0.0 }
  0xfd   : > { %v992_v35 = vpack.c.bf16 %v571_v28, %v570_v27  ;;  %v585_v36 = vmax.f32 %v533_v29, 0.0 }
  0xfe   : > { %v1032_v37 = vpack.c.bf16 %v587_v32, %v586_v30  ;;  %v987_v38 = vpack.c.bf16 %v569_v33, %v568_v31  ;;  %v1092_v39 = vpop.f32.mrb[12].mxu0 }
  0xff   : > { %1048 = vst [vmem:[%s1279_s27 + $0x28] sm:$0xff] %v992_v35   ;;  %v1027_v40 = vpack.c.bf16 %v585_v36, %v584_v34  ;;  %v490_v41 = vadd.f32 %v1092_v39, %v1264_v18  ;;  %v1108_v42 = vpop.f32.mrb[12].mxu1  ;;  %v481_v43 = vpop.f32.mrb[13].mxu0 }
 0x100   : > { %1056 = vst [vmem:[%s1279_s27 + $0x68] sm:$0xff] %v1032_v37   ;;  %1047 = vst [vmem:[%s1279_s27 + $0x20] sm:$0xff] %v987_v38   ;;  %v554_v44 = vadd.f32 %v1108_v42, %v1264_v18  ;;  %v482_v45 = vadd.f32 %v1264_v18, %v481_v43  ;;  %v545_v46 = vpop.f32.mrb[13].mxu1  ;;  %v1093_v47 = vpop.f32.mrb[14].mxu0 }
 0x101   : > { %1055 = vst [vmem:[%s1279_s27 + $0x60] sm:$0xff] %v1027_v40   ;;  %v546_v48 = vadd.f32 %v1264_v18, %v545_v46  ;;  %v493_v49 = vadd.f32 %v1093_v47, %v1264_v18  ;;  %v1109_v50 = vpop.f32.mrb[14].mxu1  ;;  %v484_v51 = vpop.f32.mrb[15].mxu0  ;;  %v574_v55 = vmax.f32 %v490_v41, 0.0 }
 0x102   : > { %v557_v52 = vadd.f32 %v1109_v50, %v1264_v18  ;;  %v485_v53 = vadd.f32 %v1264_v18, %v484_v51  ;;  %v548_v54 = vpop.f32.mrb[15].mxu1  ;;  %v590_v58 = vmax.f32 %v554_v44, 0.0  ;;  %v572_v59 = vmax.f32 %v482_v45, 0.0 }
 0x103   : > { %v575_v56 = vmax.f32 %v493_v49, 0.0  ;;  %v549_v57 = vadd.f32 %v1264_v18, %v548_v54  ;;  %v588_v62 = vmax.f32 %v546_v48, 0.0 }
 0x104   : > { %v591_v60 = vmax.f32 %v557_v52, 0.0  ;;  %v573_v61 = vmax.f32 %v485_v53, 0.0 }
 0x105   : > { %v1002_v63 = vpack.c.bf16 %v575_v56, %v574_v55  ;;  %v589_v0 = vmax.f32 %v549_v57, 0.0 }
 0x106   : > { %v1042_v1 = vpack.c.bf16 %v591_v60, %v590_v58  ;;  %v997_v2 = vpack.c.bf16 %v573_v61, %v572_v59 }
 0x107   : > { %1050 = vst [vmem:[%s1279_s27 + $0x38] sm:$0xff] %v1002_v63   ;;  %v1037_v3 = vpack.c.bf16 %v589_v0, %v588_v62 }
 0x108   : > { %1058 = vst [vmem:[%s1279_s27 + $0x78] sm:$0xff] %v1042_v1   ;;  %1049 = vst [vmem:[%s1279_s27 + $0x30] sm:$0xff] %v997_v2  }
 0x109   : > { %1057 = vst [vmem:[%s1279_s27 + $0x70] sm:$0xff] %v1037_v3  }
 0x10a PF: > { %s13_s14 = sadd.s32 1, %s1176_s14   ;;  %s1334_s12 = smov %s1172_s13 }
 0x10b   : > { %p10_p5 = scmp.ge.s32.totalorder %s13_s14, 4   ;;  %s1335_s13 = smov %s1337_s15 }
 0x10d   :  { %12 = sbr.rel (!%p10_p5) target bundleno = 2 (0x2), region = 68 }

// kernel: resnext_block_forward.5
= control target key start
LH: loop header
LB: loop body
LE: loop exit
PB: predicated region body
PF: predicated region fallthrough
CT: control target
= control target key end

     0   :  { %s1116_s15 = smov 0   ;;  %s1118_s16 = smov 0   ;;  %s1303_s0 = inlined_call_operand.vmem [shape: bf16[512,128], index: 0, kind: input, shape index: {}]   ;;  %s1304_s1 = inlined_call_operand.vmem [shape: bf16[128,128], index: 1, kind: input, shape index: {}]   ;;  %s1305_s2 = inlined_call_operand.vmem [shape: f32[512,128], index: 2, kind: input, shape index: {}]   ;;  %s1306_s3 = inlined_call_operand.vmem [shape: f32[1,128], index: 3, kind: input, shape index: {}]   ;;  %s1307_s4 = inlined_call_operand.vmem [shape: f32[512,128], index: 4, kind: output, shape index: {}]  }
   0x1   :  { %s1120_s17 = smov 0  }
   0x2 LB: > { %s23_s18 = sadd.s32 1, %s1085_s16  ;;  %p897_p0 = scmp.ge.s32.totalorder %s1089_s17, 1  ;;  %s1089_s17 = sphi %s1120_s17, %s14_s17   ;;  %s1085_s16 = sphi %s1118_s16, %s1309_s16   ;;  %s1081_s15 = sphi %s1116_s15, %s1308_s15  }
   0x3   : > { %p24_p1 = scmp.ge.s32.totalorder %s23_s18, 2  ;;  %p210_p2 = scmp.lt.s32.totalorder %s1089_s17, 3 }
   0x5   : > { %s1311_s18 = smov (%p24_p1, %s23_s18), 0  ;;  %p211_p3 = pnand %p897_p0, %p210_p2 }
   0x6   : > { %v1043_v0 = vld [vmem:[%s1304_s1] sm:$0xff] (!%p211_p3)   ;;  %s898_s21 = sshll.u32 (!%p211_p3), %s1081_s15, 5  ;;  %v1044_v1 = vld [vmem:[%s1304_s1 + $0x8] sm:$0xff] (!%p211_p3)   ;;  %v1045_v2 = vld [vmem:[%s1304_s1 + $0x10] sm:$0xff] (!%p211_p3)  }
   0x7   : > { %214 = sbr.rel (%p211_p3) target bundleno = 285 (0x11d), region = 36  ;;  %p255_p4 = scmp.lt.s32.totalorder (!%p211_p3), %s898_s21, 63  ;;  %955 = vmatprep.subr.bf16.mxu0 (!%p211_p3), %v1043_v0  ;;  %1003 = vmatprep.subr.bf16.mxu1 (!%p211_p3), %v1043_v0  ;;  %v1046_v3 = vld [vmem:[%s1304_s1 + $0x18] sm:$0xff] (!%p211_p3)   ;;  %v1047_v6 = vld [vmem:[%s1304_s1 + $0x20] sm:$0xff] (!%p211_p3)   ;;  %v1048_v7 = vld [vmem:[%s1304_s1 + $0x28] sm:$0xff] (!%p211_p3)  }
   0x8   : > { %956 = vmatpush3.bf16.msra.mxu0 (!%p211_p3), %v1043_v0  ;;  %1011 = vmatpush3.bf16.msra.mxu1 (!%p211_p3), %v1043_v0  ;;  %v1049_v8 = vld [vmem:[%s1304_s1 + $0x30] sm:$0xff] (!%p211_p3)   ;;  %v1050_v9 = vld [vmem:[%s1304_s1 + $0x38] sm:$0xff] (!%p211_p3)   ;;  %v1195_v29 = vld [vmem:[%s1306_s3] ss:$0 sm:$0xff] (!%p211_p3) }
   0x9   : > { %957 = vmatprep.subr.bf16.mxu0 (!%p211_p3), %v1044_v1  ;;  %1004 = vmatprep.subr.bf16.mxu1 (!%p211_p3), %v1044_v1 }
   0xc   : > { %958 = vmatpush3.bf16.msra.mxu0 (!%p211_p3), %v1044_v1  ;;  %1012 = vmatpush3.bf16.msra.mxu1 (!%p211_p3), %v1044_v1 }
   0xd   : > { %959 = vmatprep.subr.bf16.mxu0 (!%p211_p3), %v1045_v2  ;;  %1005 = vmatprep.subr.bf16.mxu1 (!%p211_p3), %v1045_v2 }
   0xe   : > { %s1313_s21 = smov (!%p255_p4, %s898_s21), 63 }
   0xf   : > { %s899_s26 = sshll.u32 %s1313_s21, 2  ;;  %s901_s14 = sshll.u32 %s1313_s21, 3 }
  0x10   : > { %s1149_s29 = scalar_lea.vmem %s1303_s0, %s899_s26  ;;  %960 = vmatpush3.bf16.msra.mxu0 %v1045_v2  ;;  %1013 = vmatpush3.bf16.msra.mxu1 %v1045_v2  ;;  %s1186_s20 = scalar_lea.vmem %s1305_s2, %s901_s14 }
  0x11   : > { %v1051_v4 = vld [vmem:[%s1149_s29] sm:$0xff]   ;;  %961 = vmatprep.subr.bf16.mxu0 %v1046_v3  ;;  %1006 = vmatprep.subr.bf16.mxu1 %v1046_v3  ;;  %v1053_v10 = vld [vmem:[%s1149_s29 + $0x8] sm:$0xff]   ;;  %v1055_v12 = vld [vmem:[%s1149_s29 + $0x10] sm:$0xff]   ;;  %s1206_s25 = scalar_lea.vmem %s1307_s4, %s901_s14 }
  0x12   : > { %v1052_v5 = vld [vmem:[%s1149_s29 + $0x40] sm:$0xff]   ;;  %971 = vmatprep.mubr.bf16.mxu0 %v1051_v4  ;;  %v1054_v11 = vld [vmem:[%s1149_s29 + $0x48] sm:$0xff]   ;;  %v1056_v13 = vld [vmem:[%s1149_s29 + $0x50] sm:$0xff]  }
  0x13   : > { %987 = vmatprep.mubr.bf16.mxu1 %v1052_v5  ;;  %v1057_v14 = vld [vmem:[%s1149_s29 + $0x18] sm:$0xff]   ;;  %v1059_v16 = vld [vmem:[%s1149_s29 + $0x20] sm:$0xff]   ;;  %v1061_v18 = vld [vmem:[%s1149_s29 + $0x28] sm:$0xff]  }
  0x14   : > { %962 = vmatpush3.bf16.msra.mxu0 %v1046_v3  ;;  %1014 = vmatpush3.bf16.msra.mxu1 %v1046_v3  ;;  %v1058_v15 = vld [vmem:[%s1149_s29 + $0x58] sm:$0xff]   ;;  %v1060_v17 = vld [vmem:[%s1149_s29 + $0x60] sm:$0xff]   ;;  %v1062_v19 = vld [vmem:[%s1149_s29 + $0x68] sm:$0xff]  }
  0x15   : > { %963 = vmatprep.subr.bf16.mxu0 %v1047_v6  ;;  %1007 = vmatprep.subr.bf16.mxu1 %v1047_v6  ;;  %v1063_v20 = vld [vmem:[%s1149_s29 + $0x30] sm:$0xff]   ;;  %v1065_v22 = vld [vmem:[%s1149_s29 + $0x38] sm:$0xff]   ;;  %v334_v26 = vld [vmem:[%s1186_s20] sm:$0xff] }
  0x16   : > { %v1064_v21 = vld [vmem:[%s1149_s29 + $0x70] sm:$0xff]   ;;  %v1066_v23 = vld [vmem:[%s1149_s29 + $0x78] sm:$0xff]   ;;  %v350_v27 = vld [vmem:[%s1186_s20 + $0x80] sm:$0xff] }
  0x17   : > { %v336_v24 = vld [vmem:[%s1186_s20 + $0x10] sm:$0xff]  ;;  %v337_v31 = vld [vmem:[%s1186_s20 + $0x18] sm:$0xff]  ;;  %v335_v37 = vld [vmem:[%s1186_s20 + $0x8] sm:$0xff] }
  0x18   : > { %964 = vmatpush3.bf16.msra.mxu0 %v1047_v6  ;;  %1015 = vmatpush3.bf16.msra.mxu1 %v1047_v6  ;;  %v352_v25 = vld [vmem:[%s1186_s20 + $0x90] sm:$0xff]  ;;  %v353_v32 = vld [vmem:[%s1186_s20 + $0x98] sm:$0xff]  ;;  %v351_v38 = vld [vmem:[%s1186_s20 + $0x88] sm:$0xff] }
  0x19   : > { %965 = vmatprep.subr.bf16.mxu0 %v1048_v7  ;;  %1008 = vmatprep.subr.bf16.mxu1 %v1048_v7  ;;  %v340_v61 = vld [vmem:[%s1186_s20 + $0x30] sm:$0xff]  ;;  %v338_v1 = vld [vmem:[%s1186_s20 + $0x20] sm:$0xff] }
  0x1a   : > { %v356_v62 = vld [vmem:[%s1186_s20 + $0xb0] sm:$0xff]  ;;  %v354_v2 = vld [vmem:[%s1186_s20 + $0xa0] sm:$0xff] }
  0x1c   : > { %966 = vmatpush3.bf16.msra.mxu0 %v1048_v7  ;;  %1016 = vmatpush3.bf16.msra.mxu1 %v1048_v7  ;;  %v341_v7 = vld [vmem:[%s1186_s20 + $0x38] sm:$0xff] }
  0x1d   : > { %967 = vmatprep.subr.bf16.mxu0 %v1049_v8  ;;  %1009 = vmatprep.subr.bf16.mxu1 %v1049_v8 }
  0x20   : > { %968 = vmatpush3.bf16.msra.mxu0 %v1049_v8  ;;  %1017 = vmatpush3.bf16.msra.mxu1 %v1049_v8  ;;  %v357_v8 = vld [vmem:[%s1186_s20 + $0xb8] sm:$0xff] }
  0x21   : > { %969 = vmatprep.subr.bf16.mxu0 %v1050_v9  ;;  %1010 = vmatprep.subr.bf16.mxu1 %v1050_v9 }
  0x24   : > { %970 = vmatpush3.bf16.msra.mxu0 %v1050_v9  ;;  %1018 = vmatpush3.bf16.msra.mxu1 %v1050_v9 }
  0x27   : > { %972 = vmatmul.mubr.bf16.vlgmr.msra.gmra.mrb[0].mxu0 %v1053_v10  ;;  %988 = vmatmul.mubr.bf16.vlgmr.msra.gmra.mrb[0].mxu1 %v1054_v11 }
  0x28   : > { %975 = vmatprep.mubr.bf16.mxu0 %v1055_v12  ;;  %991 = vmatprep.mubr.bf16.mxu1 %v1056_v13  ;;  %v339_v13 = vld [vmem:[%s1186_s20 + $0x28] sm:$0xff] }
  0x2f   : > { %976 = vmatmul.mubr.bf16.gmra.mrb[4].mxu0 %v1057_v14  ;;  %992 = vmatmul.mubr.bf16.gmra.mrb[4].mxu1 %v1058_v15  ;;  %v355_v14 = vld [vmem:[%s1186_s20 + $0xa8] sm:$0xff] }
  0x30   : > { %979 = vmatprep.mubr.bf16.mxu0 %v1059_v16  ;;  %995 = vmatprep.mubr.bf16.mxu1 %v1060_v17 }
  0x37   : > { %980 = vmatmul.mubr.bf16.gmra.mrb[8].mxu0 %v1061_v18  ;;  %996 = vmatmul.mubr.bf16.gmra.mrb[8].mxu1 %v1062_v19 }
  0x38   : > { %983 = vmatprep.mubr.bf16.mxu0 %v1063_v20  ;;  %999 = vmatprep.mubr.bf16.mxu1 %v1064_v21 }
  0x3f   : > { %984 = vmatmul.mubr.bf16.gmra.mrb[12].mxu0 %v1065_v22  ;;  %1000 = vmatmul.mubr.bf16.gmra.mrb[12].mxu1 %v1066_v23 }
  0xfa   : > { %v973_v28 = vpop.f32.mrb[0].mxu0  ;;  %v989_v30 = vpop.f32.mrb[0].mxu1 }
  0xfb   : > { %v553_v33 = vadd.f32 %v973_v28, %v336_v24  ;;  %v617_v34 = vadd.f32 %v989_v30, %v352_v25  ;;  %v544_v35 = vpop.f32.mrb[1].mxu0  ;;  %v608_v36 = vpop.f32.mrb[1].mxu1 }
  0xfc   : > { %v545_v39 = vadd.f32 %v544_v35, %v334_v26  ;;  %v609_v40 = vadd.f32 %v608_v36, %v350_v27  ;;  %v974_v41 = vpop.f32.mrb[2].mxu0  ;;  %v990_v42 = vpop.f32.mrb[2].mxu1 }
  0xfd   : > { %v680_v43 = vadd.f32 %v1195_v29, %v553_v33  ;;  %v696_v44 = vadd.f32 %v1195_v29, %v617_v34  ;;  %v556_v45 = vadd.f32 %v974_v41, %v337_v31  ;;  %v620_v46 = vadd.f32 %v990_v42, %v353_v32  ;;  %v547_v47 = vpop.f32.mrb[3].mxu0  ;;  %v611_v48 = vpop.f32.mrb[3].mxu1  ;;  %v342_v42 = vld [vmem:[%s1186_s20 + $0x40] sm:$0xff] }
  0xfe   : > { %v678_v49 = vadd.f32 %v1195_v29, %v545_v39  ;;  %v694_v50 = vadd.f32 %v1195_v29, %v609_v40  ;;  %v548_v51 = vadd.f32 %v547_v47, %v335_v37  ;;  %v612_v52 = vadd.f32 %v611_v48, %v351_v38  ;;  %v344_v38 = vld [vmem:[%s1186_s20 + $0x50] sm:$0xff]  ;;  %v345_v48 = vld [vmem:[%s1186_s20 + $0x58] sm:$0xff] }
  0xff   : > { %v712_v53 = vmax.f32 %v680_v43, 0.0  ;;  %v728_v54 = vmax.f32 %v696_v44, 0.0  ;;  %v681_v55 = vadd.f32 %v1195_v29, %v556_v45  ;;  %v697_v56 = vadd.f32 %v1195_v29, %v620_v46  ;;  %v360_v39 = vld [vmem:[%s1186_s20 + $0xd0] sm:$0xff]  ;;  %v358_v43 = vld [vmem:[%s1186_s20 + $0xc0] sm:$0xff] }
 0x100   : > { %v710_v57 = vmax.f32 %v678_v49, 0.0  ;;  %v726_v58 = vmax.f32 %v694_v50, 0.0  ;;  %v679_v59 = vadd.f32 %v1195_v29, %v548_v51  ;;  %v695_v60 = vadd.f32 %v1195_v29, %v612_v52  ;;  %v361_v49 = vld [vmem:[%s1186_s20 + $0xd8] sm:$0xff] }
 0x101   : > { %744 = vst [vmem:[%s1206_s25 + $0x10] sm:$0xff] %v712_v53  ;;  %760 = vst [vmem:[%s1206_s25 + $0x90] sm:$0xff] %v728_v54  ;;  %v713_v63 = vmax.f32 %v681_v55, 0.0  ;;  %v729_v0 = vmax.f32 %v697_v56, 0.0  ;;  %v343_v54 = vld [vmem:[%s1186_s20 + $0x48] sm:$0xff] }
 0x102   : > { %742 = vst [vmem:[%s1206_s25] sm:$0xff] %v710_v57  ;;  %758 = vst [vmem:[%s1206_s25 + $0x80] sm:$0xff] %v726_v58  ;;  %v711_v3 = vmax.f32 %v679_v59, 0.0  ;;  %v727_v4 = vmax.f32 %v695_v60, 0.0  ;;  %v977_v5 = vpop.f32.mrb[4].mxu0  ;;  %v993_v6 = vpop.f32.mrb[4].mxu1  ;;  %v359_v55 = vld [vmem:[%s1186_s20 + $0xc8] sm:$0xff] }
 0x103   : > { %745 = vst [vmem:[%s1206_s25 + $0x18] sm:$0xff] %v713_v63  ;;  %761 = vst [vmem:[%s1206_s25 + $0x98] sm:$0xff] %v729_v0  ;;  %v569_v9 = vadd.f32 %v977_v5, %v340_v61  ;;  %v633_v10 = vadd.f32 %v993_v6, %v356_v62  ;;  %v560_v11 = vpop.f32.mrb[5].mxu0  ;;  %v624_v12 = vpop.f32.mrb[5].mxu1 }
 0x104   : > { %743 = vst [vmem:[%s1206_s25 + $0x8] sm:$0xff] %v711_v3  ;;  %759 = vst [vmem:[%s1206_s25 + $0x88] sm:$0xff] %v727_v4  ;;  %v561_v15 = vadd.f32 %v560_v11, %v338_v1  ;;  %v625_v16 = vadd.f32 %v624_v12, %v354_v2  ;;  %v978_v17 = vpop.f32.mrb[6].mxu0  ;;  %v994_v18 = vpop.f32.mrb[6].mxu1 }
 0x105   : > { %v684_v19 = vadd.f32 %v1195_v29, %v569_v9  ;;  %v700_v20 = vadd.f32 %v1195_v29, %v633_v10  ;;  %v572_v21 = vadd.f32 %v978_v17, %v341_v7  ;;  %v636_v22 = vadd.f32 %v994_v18, %v357_v8  ;;  %v563_v23 = vpop.f32.mrb[7].mxu0  ;;  %v627_v24 = vpop.f32.mrb[7].mxu1  ;;  %v346_v18 = vld [vmem:[%s1186_s20 + $0x60] sm:$0xff] }
 0x106   : > { %v682_v25 = vadd.f32 %v1195_v29, %v561_v15  ;;  %v698_v26 = vadd.f32 %v1195_v29, %v625_v16  ;;  %v564_v27 = vadd.f32 %v563_v23, %v339_v13  ;;  %v628_v28 = vadd.f32 %v627_v24, %v355_v14  ;;  %v348_v14 = vld [vmem:[%s1186_s20 + $0x70] sm:$0xff]  ;;  %v349_v24 = vld [vmem:[%s1186_s20 + $0x78] sm:$0xff] }
 0x107   : > { %v716_v30 = vmax.f32 %v684_v19, 0.0  ;;  %v732_v31 = vmax.f32 %v700_v20, 0.0  ;;  %v685_v32 = vadd.f32 %v1195_v29, %v572_v21  ;;  %v701_v33 = vadd.f32 %v1195_v29, %v636_v22  ;;  %v364_v15 = vld [vmem:[%s1186_s20 + $0xf0] sm:$0xff]  ;;  %v362_v19 = vld [vmem:[%s1186_s20 + $0xe0] sm:$0xff] }
 0x108   : > { %v714_v34 = vmax.f32 %v682_v25, 0.0  ;;  %v730_v35 = vmax.f32 %v698_v26, 0.0  ;;  %v683_v36 = vadd.f32 %v1195_v29, %v564_v27  ;;  %v699_v37 = vadd.f32 %v1195_v29, %v628_v28  ;;  %v365_v25 = vld [vmem:[%s1186_s20 + $0xf8] sm:$0xff] }
 0x109   : > { %748 = vst [vmem:[%s1206_s25 + $0x30] sm:$0xff] %v716_v30  ;;  %764 = vst [vmem:[%s1206_s25 + $0xb0] sm:$0xff] %v732_v31  ;;  %v717_v40 = vmax.f32 %v685_v32, 0.0  ;;  %v733_v41 = vmax.f32 %v701_v33, 0.0  ;;  %v347_v31 = vld [vmem:[%s1186_s20 + $0x68] sm:$0xff] }
 0x10a   : > { %746 = vst [vmem:[%s1206_s25 + $0x20] sm:$0xff] %v714_v34  ;;  %762 = vst [vmem:[%s1206_s25 + $0xa0] sm:$0xff] %v730_v35  ;;  %v715_v44 = vmax.f32 %v683_v36, 0.0  ;;  %v731_v45 = vmax.f32 %v699_v37, 0.0  ;;  %v981_v46 = vpop.f32.mrb[8].mxu0  ;;  %v997_v47 = vpop.f32.mrb[8].mxu1 }
 0x10b   : > { %749 = vst [vmem:[%s1206_s25 + $0x38] sm:$0xff] %v717_v40  ;;  %765 = vst [vmem:[%s1206_s25 + $0xb8] sm:$0xff] %v733_v41  ;;  %v585_v50 = vadd.f32 %v981_v46, %v344_v38  ;;  %v649_v51 = vadd.f32 %v997_v47, %v360_v39  ;;  %v576_v52 = vpop.f32.mrb[9].mxu0  ;;  %v640_v53 = vpop.f32.mrb[9].mxu1  ;;  %v363_v32 = vld [vmem:[%s1186_s20 + $0xe8] sm:$0xff] }
 0x10c   : > { %747 = vst [vmem:[%s1206_s25 + $0x28] sm:$0xff] %v715_v44  ;;  %763 = vst [vmem:[%s1206_s25 + $0xa8] sm:$0xff] %v731_v45  ;;  %v577_v56 = vadd.f32 %v576_v52, %v342_v42  ;;  %v641_v57 = vadd.f32 %v640_v53, %v358_v43  ;;  %v982_v58 = vpop.f32.mrb[10].mxu0  ;;  %v998_v59 = vpop.f32.mrb[10].mxu1 }
 0x10d   : > { %v688_v60 = vadd.f32 %v1195_v29, %v585_v50  ;;  %v704_v61 = vadd.f32 %v1195_v29, %v649_v51  ;;  %v588_v62 = vadd.f32 %v982_v58, %v345_v48  ;;  %v652_v63 = vadd.f32 %v998_v59, %v361_v49  ;;  %v579_v0 = vpop.f32.mrb[11].mxu0  ;;  %v643_v1 = vpop.f32.mrb[11].mxu1 }
 0x10e   : > { %v686_v2 = vadd.f32 %v1195_v29, %v577_v56  ;;  %v702_v3 = vadd.f32 %v1195_v29, %v641_v57  ;;  %v580_v4 = vadd.f32 %v579_v0, %v343_v54  ;;  %v644_v5 = vadd.f32 %v643_v1, %v359_v55 }
 0x10f   : > { %v720_v6 = vmax.f32 %v688_v60, 0.0  ;;  %v736_v7 = vmax.f32 %v704_v61, 0.0  ;;  %v689_v8 = vadd.f32 %v1195_v29, %v588_v62  ;;  %v705_v9 = vadd.f32 %v1195_v29, %v652_v63 }
 0x110   : > { %v718_v10 = vmax.f32 %v686_v2, 0.0  ;;  %v734_v11 = vmax.f32 %v702_v3, 0.0  ;;  %v687_v12 = vadd.f32 %v1195_v29, %v580_v4  ;;  %v703_v13 = vadd.f32 %v1195_v29, %v644_v5 }
 0x111   : > { %752 = vst [vmem:[%s1206_s25 + $0x50] sm:$0xff] %v720_v6  ;;  %768 = vst [vmem:[%s1206_s25 + $0xd0] sm:$0xff] %v736_v7  ;;  %v721_v16 = vmax.f32 %v689_v8, 0.0  ;;  %v737_v17 = vmax.f32 %v705_v9, 0.0 }
 0x112   : > { %750 = vst [vmem:[%s1206_s25 + $0x40] sm:$0xff] %v718_v10  ;;  %766 = vst [vmem:[%s1206_s25 + $0xc0] sm:$0xff] %v734_v11  ;;  %v719_v20 = vmax.f32 %v687_v12, 0.0  ;;  %v735_v21 = vmax.f32 %v703_v13, 0.0  ;;  %v985_v22 = vpop.f32.mrb[12].mxu0  ;;  %v1001_v23 = vpop.f32.mrb[12].mxu1 }
 0x113   : > { %753 = vst [vmem:[%s1206_s25 + $0x58] sm:$0xff] %v721_v16  ;;  %769 = vst [vmem:[%s1206_s25 + $0xd8] sm:$0xff] %v737_v17  ;;  %v601_v26 = vadd.f32 %v985_v22, %v348_v14  ;;  %v665_v27 = vadd.f32 %v1001_v23, %v364_v15  ;;  %v592_v28 = vpop.f32.mrb[13].mxu0  ;;  %v656_v30 = vpop.f32.mrb[13].mxu1 }
 0x114   : > { %751 = vst [vmem:[%s1206_s25 + $0x48] sm:$0xff] %v719_v20  ;;  %767 = vst [vmem:[%s1206_s25 + $0xc8] sm:$0xff] %v735_v21  ;;  %v593_v33 = vadd.f32 %v592_v28, %v346_v18  ;;  %v657_v34 = vadd.f32 %v656_v30, %v362_v19  ;;  %v986_v35 = vpop.f32.mrb[14].mxu0  ;;  %v1002_v36 = vpop.f32.mrb[14].mxu1 }
 0x115   : > { %v692_v37 = vadd.f32 %v1195_v29, %v601_v26  ;;  %v708_v38 = vadd.f32 %v1195_v29, %v665_v27  ;;  %v604_v39 = vadd.f32 %v986_v35, %v349_v24  ;;  %v668_v40 = vadd.f32 %v1002_v36, %v365_v25  ;;  %v595_v41 = vpop.f32.mrb[15].mxu0  ;;  %v659_v42 = vpop.f32.mrb[15].mxu1 }
 0x116   : > { %v690_v43 = vadd.f32 %v1195_v29, %v593_v33  ;;  %v706_v44 = vadd.f32 %v1195_v29, %v657_v34  ;;  %v596_v45 = vadd.f32 %v595_v41, %v347_v31  ;;  %v660_v46 = vadd.f32 %v659_v42, %v363_v32 }
 0x117   : > { %v724_v47 = vmax.f32 %v692_v37, 0.0  ;;  %v740_v48 = vmax.f32 %v708_v38, 0.0  ;;  %v693_v49 = vadd.f32 %v1195_v29, %v604_v39  ;;  %v709_v50 = vadd.f32 %v1195_v29, %v668_v40 }
 0x118   : > { %v722_v51 = vmax.f32 %v690_v43, 0.0  ;;  %v738_v52 = vmax.f32 %v706_v44, 0.0  ;;  %v691_v53 = vadd.f32 %v1195_v29, %v596_v45  ;;  %v707_v54 = vadd.f32 %v1195_v29, %v660_v46 }
 0x119   : > { %756 = vst [vmem:[%s1206_s25 + $0x70] sm:$0xff] %v724_v47  ;;  %772 = vst [vmem:[%s1206_s25 + $0xf0] sm:$0xff] %v740_v48  ;;  %v725_v55 = vmax.f32 %v693_v49, 0.0  ;;  %v741_v56 = vmax.f32 %v709_v50, 0.0 }
 0x11a   : > { %754 = vst [vmem:[%s1206_s25 + $0x60] sm:$0xff] %v722_v51  ;;  %770 = vst [vmem:[%s1206_s25 + $0xe0] sm:$0xff] %v738_v52  ;;  %v723_v57 = vmax.f32 %v691_v53, 0.0  ;;  %v739_v58 = vmax.f32 %v707_v54, 0.0 }
 0x11b   : > { %757 = vst [vmem:[%s1206_s25 + $0x78] sm:$0xff] %v725_v55  ;;  %773 = vst [vmem:[%s1206_s25 + $0xf8] sm:$0xff] %v741_v56 }
 0x11c   : > { %755 = vst [vmem:[%s1206_s25 + $0x68] sm:$0xff] %v723_v57  ;;  %771 = vst [vmem:[%s1206_s25 + $0xe8] sm:$0xff] %v739_v58 }
 0x11d PF: > { %s14_s17 = sadd.s32 1, %s1089_s17   ;;  %s1308_s15 = smov %s1085_s16 }
 0x11e   : > { %p11_p5 = scmp.ge.s32.totalorder %s14_s17, 4   ;;  %s1309_s16 = smov %s1311_s18 }
 0x120   :  { %13 = sbr.rel (!%p11_p5) target bundleno = 2 (0x2), region = 75 }

// kernel: resnext_block_forward.4
= control target key start
LH: loop header
LB: loop body
LE: loop exit
PB: predicated region body
PF: predicated region fallthrough
CT: control target
= control target key end

     0   :  { %s6627_s30 = smov 0   ;;  %s6629_s20 = smov 0   ;;  %s7171_s0 = inlined_call_operand.vmem [shape: bf16[512,128], index: 0, kind: input, shape index: {}]   ;;  %s7172_s1 = inlined_call_operand.vmem [shape: bf16[512,128], index: 1, kind: input, shape index: {}]   ;;  %s7173_s2 = inlined_call_operand.vmem [shape: bf16[512,128], index: 2, kind: input, shape index: {}]   ;;  %s7174_s3 = inlined_call_operand.vmem [shape: bf16[512,128], index: 3, kind: input, shape index: {}]   ;;  %s7175_s4 = inlined_call_operand.vmem [shape: bf16[512,128], index: 4, kind: input, shape index: {}]   ;;  %s7176_s5 = inlined_call_operand.vmem [shape: bf16[512,128], index: 5, kind: input, shape index: {}]   ;;  %s7177_s6 = inlined_call_operand.vmem [shape: bf16[512,128], index: 6, kind: input, shape index: {}]   ;;  %s7178_s7 = inlined_call_operand.vmem [shape: bf16[512,128], index: 7, kind: input, shape index: {}]   ;;  %s7179_s8 = inlined_call_operand.vmem [shape: bf16[512,128], index: 8, kind: input, shape index: {}]   ;;  %s7180_s9 = inlined_call_operand.vmem [shape: bf16[128,128], index: 9, kind: input, shape index: {}]   ;;  %s7181_s10 = inlined_call_operand.vmem [shape: bf16[128,128], index: 10, kind: input, shape index: {}]   ;;  %s7182_s11 = inlined_call_operand.vmem [shape: bf16[128,128], index: 11, kind: input, shape index: {}]   ;;  %s7183_s12 = inlined_call_operand.vmem [shape: bf16[128,128], index: 12, kind: input, shape index: {}]   ;;  %s7184_s13 = inlined_call_operand.vmem [shape: bf16[128,128], index: 13, kind: input, shape index: {}]   ;;  %s7185_s14 = inlined_call_operand.vmem [shape: bf16[128,128], index: 14, kind: input, shape index: {}]   ;;  %s7186_s15 = inlined_call_operand.vmem [shape: bf16[128,128], index: 15, kind: input, shape index: {}]   ;;  %s7187_s16 = inlined_call_operand.vmem [shape: bf16[128,128], index: 16, kind: input, shape index: {}]   ;;  %s7188_s17 = inlined_call_operand.vmem [shape: bf16[128,128], index: 17, kind: input, shape index: {}]   ;;  %s7189_s18 = inlined_call_operand.vmem [shape: f32[1,128], index: 18, kind: input, shape index: {}]   ;;  %s7190_s19 = inlined_call_operand.vmem [shape: bf16[512,128], index: 19, kind: output, shape index: {}]  }
   0x1   :  { %7191 = sst [smem:[#allocation3_spill]] %s7171_s0  ;;  %s6625_s0 = smov 0  }
   0x2   :  { %7192 = sst [smem:[#allocation4_spill]] %s7172_s1 }
   0x3   :  { %7193 = sst [smem:[#allocation5_spill]] %s7173_s2 }
   0x4   :  { %7194 = sst [smem:[#allocation6_spill]] %s7174_s3 }
   0x5 LB: > { %s38_s21 = sadd.s32 1, %s6519_s30  ;;  %p4934_p0 = scmp.ge.s32.totalorder %s6523_s20, 1  ;;  %s6523_s20 = sphi %s6629_s20, %s29_s20   ;;  %s6519_s30 = sphi %s6627_s30, %s7202_s30   ;;  %s6515_s0 = sphi %s6625_s0, %s7201_s0  }
   0x6   : > { %p39_p1 = scmp.ge.s32.totalorder %s38_s21, 2  ;;  %p729_p2 = scmp.lt.s32.totalorder %s6523_s20, 3 }
   0x8   : > { %s7204_s21 = smov (%p39_p1, %s38_s21), 0  ;;  %p730_p3 = pnand %p4934_p0, %p729_p2 }
   0x9   : > { %7195 = sst [smem:[#allocation2_spill]] %s7204_s21  ;;  %v6277_v0 = vld [vmem:[%s7181_s10] sm:$0xff] (!%p730_p3)   ;;  %s4935_s2 = sshll.u32 (!%p730_p3), %s6515_s0, 5  ;;  %v6279_v2 = vld [vmem:[%s7181_s10 + $0x8] sm:$0xff] (!%p730_p3)   ;;  %v6281_v4 = vld [vmem:[%s7181_s10 + $0x10] sm:$0xff] (!%p730_p3)  }
   0xa   : > { %733 = sbr.rel (%p730_p3) target bundleno = 547 (0x223), region = 96  ;;  %v6278_v1 = vld [vmem:[%s7184_s13] sm:$0xff] (!%p730_p3)   ;;  %5549 = vmatprep.subr.bf16.mxu1 (!%p730_p3), %v6277_v0  ;;  %p868_p4 = scmp.lt.s32.totalorder (!%p730_p3), %s4935_s2, 63  ;;  %v6280_v3 = vld [vmem:[%s7184_s13 + $0x8] sm:$0xff] (!%p730_p3)   ;;  %v6282_v5 = vld [vmem:[%s7184_s13 + $0x10] sm:$0xff] (!%p730_p3)  }
   0xb   : > { %5741 = vmatprep.subr.bf16.mxu0 (!%p730_p3), %v6278_v1  ;;  %5550 = vmatpush3.bf16.msra.mxu1 (!%p730_p3), %v6277_v0  ;;  %v6283_v6 = vld [vmem:[%s7181_s10 + $0x18] sm:$0xff] (!%p730_p3)   ;;  %v6285_v8 = vld [vmem:[%s7181_s10 + $0x20] sm:$0xff] (!%p730_p3)   ;;  %s7196_s22 = sld [smem:[#allocation4_spill]] (!%p730_p3)  ;;  %v6287_v10 = vld [vmem:[%s7181_s10 + $0x28] sm:$0xff] (!%p730_p3)   ;;  %s7197_s29 = sld [smem:[#allocation3_spill]] (!%p730_p3) }
   0xc   : > { %5742 = vmatpush3.bf16.msra.mxu0 (!%p730_p3), %v6278_v1  ;;  %5551 = vmatprep.subr.bf16.mxu1 (!%p730_p3), %v6279_v2  ;;  %v6284_v7 = vld [vmem:[%s7184_s13 + $0x18] sm:$0xff] (!%p730_p3)   ;;  %v6286_v9 = vld [vmem:[%s7184_s13 + $0x20] sm:$0xff] (!%p730_p3)   ;;  %v6288_v11 = vld [vmem:[%s7184_s13 + $0x28] sm:$0xff] (!%p730_p3)   ;;  %s7198_s28 = sld [smem:[#allocation5_spill]] (!%p730_p3) }
   0xd   : > { %5743 = vmatprep.subr.bf16.mxu0 (!%p730_p3), %v6280_v3  ;;  %v6289_v14 = vld [vmem:[%s7181_s10 + $0x30] sm:$0xff] (!%p730_p3)   ;;  %v6291_v16 = vld [vmem:[%s7181_s10 + $0x38] sm:$0xff] (!%p730_p3)   ;;  %v6296_v19 = vld [vmem:[%s7180_s9] sm:$0xff] (!%p730_p3)  }
   0xe   : > { %v6290_v15 = vld [vmem:[%s7184_s13 + $0x30] sm:$0xff] (!%p730_p3)   ;;  %v6292_v17 = vld [vmem:[%s7184_s13 + $0x38] sm:$0xff] (!%p730_p3)   ;;  %v6298_v20 = vld [vmem:[%s7185_s14] sm:$0xff] (!%p730_p3)  }
   0xf   : > { %5552 = vmatpush3.bf16.msra.mxu1 (!%p730_p3), %v6279_v2  ;;  %v6299_v22 = vld [vmem:[%s7185_s14 + $0x8] sm:$0xff] (!%p730_p3)   ;;  %v6310_v27 = vld [vmem:[%s7180_s9 + $0x10] sm:$0xff] (!%p730_p3)   ;;  %v6306_v32 = vld [vmem:[%s7185_s14 + $0x18] sm:$0xff] (!%p730_p3)  }
  0x10   : > { %5744 = vmatpush3.bf16.msra.mxu0 (!%p730_p3), %v6280_v3  ;;  %5553 = vmatprep.subr.bf16.mxu1 (!%p730_p3), %v6281_v4  ;;  %v6303_v25 = vld [vmem:[%s7180_s9 + $0x8] sm:$0xff] (!%p730_p3)   ;;  %v6305_v28 = vld [vmem:[%s7185_s14 + $0x10] sm:$0xff] (!%p730_p3)   ;;  %v6317_v33 = vld [vmem:[%s7180_s9 + $0x18] sm:$0xff] (!%p730_p3)  }
  0x11   : > { %s7206_s2 = smov (!%p868_p4, %s4935_s2), 63  ;;  %5745 = vmatprep.subr.bf16.mxu0 %v6282_v5  ;;  %v6312_v36 = vld [vmem:[%s7185_s14 + $0x20] sm:$0xff]   ;;  %v6313_v40 = vld [vmem:[%s7185_s14 + $0x28] sm:$0xff]   ;;  %v6319_v42 = vld [vmem:[%s7185_s14 + $0x30] sm:$0xff]  }
  0x12   : > { %s6667_s3 = sshll.u32 %s7206_s2, 2  ;;  %v6324_v38 = vld [vmem:[%s7180_s9 + $0x20] sm:$0xff]   ;;  %v6330_v43 = vld [vmem:[%s7180_s9 + $0x28] sm:$0xff]   ;;  %v6320_v47 = vld [vmem:[%s7185_s14 + $0x38] sm:$0xff]  }
  0x13   : > { %5554 = vmatpush3.bf16.msra.mxu1 %v6281_v4  ;;  %s6679_s23 = scalar_lea.vmem %s7196_s22, %s6667_s3  ;;  %s6688_s26 = scalar_lea.vmem %s7175_s4, %s6667_s3  ;;  %v6336_v48 = vld [vmem:[%s7180_s9 + $0x30] sm:$0xff]   ;;  %v6326_v51 = vld [vmem:[%s7186_s15] sm:$0xff]   ;;  %v6332_v54 = vld [vmem:[%s7186_s15 + $0x8] sm:$0xff]  }
  0x14   : > { %5746 = vmatpush3.bf16.msra.mxu0 %v6282_v5  ;;  %5555 = vmatprep.subr.bf16.mxu1 %v6283_v6  ;;  %v6293_v12 = vld [vmem:[%s6679_s23] sm:$0xff]   ;;  %v6295_v18 = vld [vmem:[%s6679_s23 + $0x8] sm:$0xff]   ;;  %v6300_v23 = vld [vmem:[%s6679_s23 + $0x10] sm:$0xff]   ;;  %s6744_s24 = scalar_lea.vmem %s7176_s5, %s6667_s3  ;;  %s6791_s0 = scalar_lea.vmem %s7197_s29, %s6667_s3 }
  0x15   : > { %5747 = vmatprep.subr.bf16.mxu0 %v6284_v7  ;;  %v6294_v13 = vld [vmem:[%s6688_s26] sm:$0xff]   ;;  %5565 = vmatprep.mubr.bf16.mxu1 %v6293_v12  ;;  %v6297_v21 = vld [vmem:[%s6688_s26 + $0x8] sm:$0xff]   ;;  %v6301_v24 = vld [vmem:[%s6688_s26 + $0x10] sm:$0xff]   ;;  %s6831_s29 = scalar_lea.vmem %s7177_s6, %s6667_s3  ;;  %s6866_s21 = scalar_lea.vmem %s7198_s28, %s6667_s3 }
  0x16   : > { %5757 = vmatprep.mubr.bf16.mxu0 %v6294_v13  ;;  %v6302_v26 = vld [vmem:[%s6679_s23 + $0x18] sm:$0xff]   ;;  %v6307_v30 = vld [vmem:[%s6679_s23 + $0x20] sm:$0xff]   ;;  %v6309_v34 = vld [vmem:[%s6679_s23 + $0x28] sm:$0xff]   ;;  %s6978_s27 = scalar_lea.vmem %s7179_s8, %s6667_s3 }
  0x17   : > { %5556 = vmatpush3.bf16.msra.mxu1 %v6283_v6  ;;  %v6304_v29 = vld [vmem:[%s6688_s26 + $0x18] sm:$0xff]   ;;  %v6308_v31 = vld [vmem:[%s6688_s26 + $0x20] sm:$0xff]   ;;  %v6311_v35 = vld [vmem:[%s6688_s26 + $0x28] sm:$0xff]  }
  0x18   : > { %5748 = vmatpush3.bf16.msra.mxu0 %v6284_v7  ;;  %5557 = vmatprep.subr.bf16.mxu1 %v6285_v8  ;;  %v6314_v37 = vld [vmem:[%s6679_s23 + $0x30] sm:$0xff]   ;;  %v6316_v41 = vld [vmem:[%s6679_s23 + $0x38] sm:$0xff]   ;;  %v6321_v45 = vld [vmem:[%s6679_s23 + $0x40] sm:$0xff]  }
  0x19   : > { %5749 = vmatprep.subr.bf16.mxu0 %v6286_v9  ;;  %v6315_v39 = vld [vmem:[%s6688_s26 + $0x30] sm:$0xff]   ;;  %v6318_v44 = vld [vmem:[%s6688_s26 + $0x38] sm:$0xff]   ;;  %v6322_v46 = vld [vmem:[%s6744_s24] sm:$0xff]  }
  0x1a   : > { %v6323_v49 = vld [vmem:[%s6679_s23 + $0x48] sm:$0xff]   ;;  %v6327_v52 = vld [vmem:[%s6679_s23 + $0x50] sm:$0xff]   ;;  %v6342_v55 = vld [vmem:[%s7180_s9 + $0x38] sm:$0xff]  }
  0x1b   : > { %5558 = vmatpush3.bf16.msra.mxu1 %v6285_v8  ;;  %v6325_v50 = vld [vmem:[%s6744_s24 + $0x8] sm:$0xff]   ;;  %v6328_v53 = vld [vmem:[%s6744_s24 + $0x10] sm:$0xff]   ;;  %v6329_v56 = vld [vmem:[%s6679_s23 + $0x58] sm:$0xff]  }
  0x1c   : > { %5750 = vmatpush3.bf16.msra.mxu0 %v6286_v9  ;;  %5559 = vmatprep.subr.bf16.mxu1 %v6287_v10  ;;  %v6331_v57 = vld [vmem:[%s6744_s24 + $0x18] sm:$0xff]   ;;  %v6338_v58 = vld [vmem:[%s7186_s15 + $0x10] sm:$0xff]   ;;  %v6333_v59 = vld [vmem:[%s6679_s23 + $0x60] sm:$0xff]  }
  0x1d   : > { %5751 = vmatprep.subr.bf16.mxu0 %v6288_v11  ;;  %v6348_v60 = vld [vmem:[%s7182_s11] sm:$0xff]   ;;  %v6344_v62 = vld [vmem:[%s7186_s15 + $0x18] sm:$0xff]   ;;  %v6335_v63 = vld [vmem:[%s6679_s23 + $0x68] sm:$0xff]  }
  0x1e   : > { %v6334_v61 = vld [vmem:[%s6744_s24 + $0x20] sm:$0xff]   ;;  %v6337_v1 = vld [vmem:[%s6744_s24 + $0x28] sm:$0xff]   ;;  %v6339_v2 = vld [vmem:[%s6679_s23 + $0x70] sm:$0xff]  }
  0x1f   : > { %5560 = vmatpush3.bf16.msra.mxu1 %v6287_v10  ;;  %v6350_v0 = vld [vmem:[%s7186_s15 + $0x20] sm:$0xff]   ;;  %v6340_v3 = vld [vmem:[%s6744_s24 + $0x30] sm:$0xff]   ;;  %v6356_v4 = vld [vmem:[%s7186_s15 + $0x28] sm:$0xff]  }
  0x20   : > { %5752 = vmatpush3.bf16.msra.mxu0 %v6288_v11  ;;  %5561 = vmatprep.subr.bf16.mxu1 %v6289_v14  ;;  %v6341_v5 = vld [vmem:[%s6679_s23 + $0x78] sm:$0xff]   ;;  %v6362_v6 = vld [vmem:[%s7186_s15 + $0x30] sm:$0xff]   ;;  %v6345_v8 = vld [vmem:[%s6791_s0] sm:$0xff]   ;;  %s7199_s23 = sld [smem:[#allocation6_spill]] }
  0x21   : > { %5753 = vmatprep.subr.bf16.mxu0 %v6290_v15  ;;  %v6343_v7 = vld [vmem:[%s6744_s24 + $0x38] sm:$0xff]   ;;  %v6346_v9 = vld [vmem:[%s6744_s24 + $0x40] sm:$0xff]   ;;  %v6347_v11 = vld [vmem:[%s6791_s0 + $0x8] sm:$0xff]  }
  0x22   : > { %v6368_v10 = vld [vmem:[%s7186_s15 + $0x38] sm:$0xff]   ;;  %v6349_v12 = vld [vmem:[%s6744_s24 + $0x48] sm:$0xff]   ;;  %v6351_v13 = vld [vmem:[%s6791_s0 + $0x10] sm:$0xff]  }
  0x23   : > { %5562 = vmatpush3.bf16.msra.mxu1 %v6289_v14  ;;  %v6352_v14 = vld [vmem:[%s6744_s24 + $0x50] sm:$0xff]  }
  0x24   : > { %5754 = vmatpush3.bf16.msra.mxu0 %v6290_v15  ;;  %5563 = vmatprep.subr.bf16.mxu1 %v6291_v16  ;;  %v6354_v15 = vld [vmem:[%s7182_s11 + $0x8] sm:$0xff]  }
  0x25   : > { %5755 = vmatprep.subr.bf16.mxu0 %v6292_v17 }
  0x26   : > { %s6945_s28 = scalar_lea.vmem %s7199_s23, %s6667_s3 }
  0x27   : > { %5564 = vmatpush3.bf16.msra.mxu1 %v6291_v16  ;;  %v6374_v16 = vld [vmem:[%s7187_s16] sm:$0xff]  }
  0x28   : > { %5756 = vmatpush3.bf16.msra.mxu0 %v6292_v17  ;;  %5597 = vmatprep.subr.bf16.mxu1 %v6296_v19  ;;  %v6360_v17 = vld [vmem:[%s7182_s11 + $0x10] sm:$0xff]  }
  0x29   : > { %5789 = vmatprep.subr.bf16.mxu0 %v6298_v20 }
  0x2a   : > { %5566 = vmatmul.mubr.bf16.vlgmr.msra.gmra.mrb[0].mxu1 %v6295_v18  ;;  %v6353_v18 = vld [vmem:[%s6791_s0 + $0x18] sm:$0xff]  }
  0x2b   : > { %5758 = vmatmul.mubr.bf16.vlgmr.msra.gmra.mrb[0].mxu0 %v6297_v21  ;;  %5598 = vmatpush3.bf16.msra.mxu1 %v6296_v19  ;;  %v6355_v19 = vld [vmem:[%s6744_s24 + $0x58] sm:$0xff]   ;;  %v6358_v21 = vld [vmem:[%s6744_s24 + $0x60] sm:$0xff]  }
  0x2c   : > { %5790 = vmatpush3.bf16.msra.mxu0 %v6298_v20  ;;  %5569 = vmatprep.mubr.bf16.mxu1 %v6300_v23  ;;  %v6357_v20 = vld [vmem:[%s6791_s0 + $0x20] sm:$0xff]   ;;  %v6359_v23 = vld [vmem:[%s6791_s0 + $0x28] sm:$0xff]  }
  0x2d   : > { %5791 = vmatprep.subr.bf16.mxu0 %v6299_v22  ;;  %5761 = vmatprep.mubr.bf16.mxu0 %v6301_v24  ;;  %v6372_v24 = vld [vmem:[%s7182_s11 + $0x20] sm:$0xff]  }
  0x2e   : > { %5599 = vmatprep.subr.bf16.mxu1 %v6303_v25 }
  0x2f   : > { %5600 = vmatpush3.bf16.msra.mxu1 %v6303_v25  ;;  %v6361_v25 = vld [vmem:[%s6744_s24 + $0x68] sm:$0xff]  }
  0x30   : > { %5792 = vmatpush3.bf16.msra.mxu0 %v6299_v22  ;;  %5601 = vmatprep.subr.bf16.mxu1 %v6310_v27  ;;  %v6366_v22 = vld [vmem:[%s7182_s11 + $0x18] sm:$0xff]  }
  0x31   : > { %5793 = vmatprep.subr.bf16.mxu0 %v6305_v28 }
  0x32   : > { %5570 = vmatmul.mubr.bf16.gmra.mrb[4].mxu1 %v6302_v26  ;;  %v6363_v26 = vld [vmem:[%s6791_s0 + $0x30] sm:$0xff]  }
  0x33   : > { %5762 = vmatmul.mubr.bf16.gmra.mrb[4].mxu0 %v6304_v29  ;;  %5573 = vmatprep.mubr.bf16.mxu1 %v6307_v30  ;;  %v6365_v29 = vld [vmem:[%s6791_s0 + $0x38] sm:$0xff]   ;;  %v6384_v30 = vld [vmem:[%s7182_s11 + $0x30] sm:$0xff]  }
  0x34   : > { %5794 = vmatpush3.bf16.msra.mxu0 %v6305_v28  ;;  %5765 = vmatprep.mubr.bf16.mxu0 %v6308_v31  ;;  %v6378_v28 = vld [vmem:[%s7182_s11 + $0x28] sm:$0xff]   ;;  %v6367_v31 = vld [vmem:[%s6744_s24 + $0x78] sm:$0xff]  }
  0x35   : > { %5795 = vmatprep.subr.bf16.mxu0 %v6306_v32  ;;  %5602 = vmatpush3.bf16.msra.mxu1 %v6310_v27  ;;  %v6364_v27 = vld [vmem:[%s6744_s24 + $0x70] sm:$0xff]   ;;  %s6906_s24 = scalar_lea.vmem %s7178_s7, %s6667_s3 }
  0x36   : > { %5603 = vmatprep.subr.bf16.mxu1 %v6317_v33 }
  0x38   : > { %5796 = vmatpush3.bf16.msra.mxu0 %v6306_v32  ;;  %v6369_v32 = vld [vmem:[%s6791_s0 + $0x40] sm:$0xff]  }
  0x39   : > { %5797 = vmatprep.subr.bf16.mxu0 %v6312_v36  ;;  %5604 = vmatpush3.bf16.msra.mxu1 %v6317_v33  ;;  %v6370_v33 = vld [vmem:[%s6831_s29] sm:$0xff]  }
  0x3a   : > { %5574 = vmatmul.mubr.bf16.gmra.mrb[8].mxu1 %v6309_v34  ;;  %5605 = vmatprep.subr.bf16.mxu1 %v6324_v38  ;;  %v6390_v34 = vld [vmem:[%s7182_s11 + $0x38] sm:$0xff]  }
  0x3b   : > { %5766 = vmatmul.mubr.bf16.gmra.mrb[8].mxu0 %v6311_v35  ;;  %5577 = vmatprep.mubr.bf16.mxu1 %v6314_v37  ;;  %v6371_v35 = vld [vmem:[%s6791_s0 + $0x48] sm:$0xff]  }
  0x3c   : > { %5798 = vmatpush3.bf16.msra.mxu0 %v6312_v36  ;;  %5769 = vmatprep.mubr.bf16.mxu0 %v6315_v39  ;;  %v6882_v36 = vld [vmem:[%s7183_s12] sm:$0xff]   ;;  %v6373_v37 = vld [vmem:[%s6831_s29 + $0x8] sm:$0xff]   ;;  %v6376_v39 = vld [vmem:[%s6831_s29 + $0x10] sm:$0xff]  }
  0x3d   : > { %5799 = vmatprep.subr.bf16.mxu0 %v6313_v40  ;;  %5606 = vmatpush3.bf16.msra.mxu1 %v6324_v38  ;;  %v6375_v38 = vld [vmem:[%s6791_s0 + $0x50] sm:$0xff]  }
  0x3e   : > { %5607 = vmatprep.subr.bf16.mxu1 %v6330_v43 }
  0x40   : > { %5800 = vmatpush3.bf16.msra.mxu0 %v6313_v40  ;;  %v6380_v40 = vld [vmem:[%s7187_s16 + $0x8] sm:$0xff]  }
  0x41   : > { %5801 = vmatprep.subr.bf16.mxu0 %v6319_v42  ;;  %5608 = vmatpush3.bf16.msra.mxu1 %v6330_v43  ;;  %v6379_v43 = vld [vmem:[%s6831_s29 + $0x18] sm:$0xff]  }
  0x42   : > { %5578 = vmatmul.mubr.bf16.gmra.mrb[12].mxu1 %v6316_v41  ;;  %5609 = vmatprep.subr.bf16.mxu1 %v6336_v48  ;;  %v6377_v41 = vld [vmem:[%s6791_s0 + $0x58] sm:$0xff]  }
  0x43   : > { %5770 = vmatmul.mubr.bf16.gmra.mrb[12].mxu0 %v6318_v44  ;;  %5581 = vmatprep.mubr.bf16.mxu1 %v6321_v45  ;;  %v6381_v44 = vld [vmem:[%s6791_s0 + $0x60] sm:$0xff]  }
  0x44   : > { %5802 = vmatpush3.bf16.msra.mxu0 %v6319_v42  ;;  %5805 = vmatprep.mubr.bf16.mxu0 %v6322_v46  ;;  %v6386_v42 = vld [vmem:[%s7187_s16 + $0x10] sm:$0xff]   ;;  %v6382_v45 = vld [vmem:[%s6831_s29 + $0x20] sm:$0xff]   ;;  %v6392_v46 = vld [vmem:[%s7187_s16 + $0x18] sm:$0xff]  }
  0x45   : > { %5803 = vmatprep.subr.bf16.mxu0 %v6320_v47  ;;  %5610 = vmatpush3.bf16.msra.mxu1 %v6336_v48  ;;  %v6398_v48 = vld [vmem:[%s7187_s16 + $0x20] sm:$0xff]  }
  0x46   : > { %5611 = vmatprep.subr.bf16.mxu1 %v6342_v55 }
  0x48   : > { %5804 = vmatpush3.bf16.msra.mxu0 %v6320_v47  ;;  %v6383_v47 = vld [vmem:[%s6791_s0 + $0x68] sm:$0xff]  }
  0x49   : > { %5837 = vmatprep.subr.bf16.mxu0 %v6326_v51  ;;  %5612 = vmatpush3.bf16.msra.mxu1 %v6342_v55  ;;  %v6391_v55 = vld [vmem:[%s6831_s29 + $0x38] sm:$0xff]  }
  0x4a   : > { %5582 = vmatmul.mubr.bf16.gmra.mrb[16].mxu1 %v6323_v49  ;;  %5645 = vmatprep.subr.bf16.mxu1 %v6348_v60  ;;  %v6385_v49 = vld [vmem:[%s6831_s29 + $0x28] sm:$0xff]  }
  0x4b   : > { %5806 = vmatmul.mubr.bf16.vlgmr.msra.gmra.mrb[0].mxu0 %v6325_v50  ;;  %5585 = vmatprep.mubr.bf16.mxu1 %v6327_v52  ;;  %v6387_v50 = vld [vmem:[%s6791_s0 + $0x70] sm:$0xff]   ;;  %v6404_v52 = vld [vmem:[%s7187_s16 + $0x28] sm:$0xff]  }
  0x4c   : > { %5838 = vmatpush3.bf16.msra.mxu0 %v6326_v51  ;;  %5809 = vmatprep.mubr.bf16.mxu0 %v6328_v53  ;;  %v6388_v51 = vld [vmem:[%s6831_s29 + $0x30] sm:$0xff]   ;;  %v6389_v53 = vld [vmem:[%s6791_s0 + $0x78] sm:$0xff]  }
  0x4d   : > { %5839 = vmatprep.subr.bf16.mxu0 %v6332_v54 }
  0x50   : > { %5840 = vmatpush3.bf16.msra.mxu0 %v6332_v54  ;;  %v6410_v54 = vld [vmem:[%s7187_s16 + $0x30] sm:$0xff]  }
  0x51   : > { %5841 = vmatprep.subr.bf16.mxu0 %v6338_v58 }
  0x52   : > { %5586 = vmatmul.mubr.bf16.gmra.mrb[20].mxu1 %v6329_v56  ;;  %v6393_v56 = vld [vmem:[%s6866_s21] sm:$0xff]  }
  0x53   : > { %5810 = vmatmul.mubr.bf16.gmra.mrb[4].mxu0 %v6331_v57  ;;  %5589 = vmatprep.mubr.bf16.mxu1 %v6333_v59  ;;  %v6394_v57 = vld [vmem:[%s6831_s29 + $0x40] sm:$0xff]   ;;  %v6395_v59 = vld [vmem:[%s6866_s21 + $0x8] sm:$0xff]  }
  0x54   : > { %5813 = vmatprep.mubr.bf16.mxu0 %v6334_v61  ;;  %5842 = vmatpush3.bf16.msra.mxu0 %v6338_v58  ;;  %v6416_v58 = vld [vmem:[%s7187_s16 + $0x38] sm:$0xff]   ;;  %v6397_v61 = vld [vmem:[%s6831_s29 + $0x48] sm:$0xff]  }
  0x55   : > { %5843 = vmatprep.subr.bf16.mxu0 %v6344_v62 }
  0x58   : > { %5844 = vmatpush3.bf16.msra.mxu0 %v6344_v62  ;;  %v6399_v62 = vld [vmem:[%s6866_s21 + $0x10] sm:$0xff]  }
  0x59   : > { %5845 = vmatprep.subr.bf16.mxu0 %v6350_v0 }
  0x5a   : > { %5590 = vmatmul.mubr.bf16.gmra.mrb[24].mxu1 %v6335_v63  ;;  %v6400_v63 = vld [vmem:[%s6831_s29 + $0x50] sm:$0xff]  }
  0x5b   : > { %5814 = vmatmul.mubr.bf16.gmra.mrb[8].mxu0 %v6337_v1  ;;  %5593 = vmatprep.mubr.bf16.mxu1 %v6339_v2  ;;  %v6408_v1 = vld [vmem:[%s7183_s12 + $0x10] sm:$0xff]   ;;  %v6401_v2 = vld [vmem:[%s6866_s21 + $0x18] sm:$0xff]  }
  0x5c   : > { %5817 = vmatprep.mubr.bf16.mxu0 %v6340_v3  ;;  %5846 = vmatpush3.bf16.msra.mxu0 %v6350_v0  ;;  %v6402_v0 = vld [vmem:[%s7183_s12 + $0x8] sm:$0xff]   ;;  %v6403_v3 = vld [vmem:[%s6831_s29 + $0x58] sm:$0xff]  }
  0x5d   : > { %5847 = vmatprep.subr.bf16.mxu0 %v6356_v4 }
  0x60   : > { %5848 = vmatpush3.bf16.msra.mxu0 %v6356_v4  ;;  %v6405_v4 = vld [vmem:[%s6866_s21 + $0x20] sm:$0xff]  }
  0x61   : > { %5849 = vmatprep.subr.bf16.mxu0 %v6362_v6 }
  0x62   : > { %5594 = vmatmul.mubr.bf16.gmra.mrb[28].mxu1 %v6341_v5  ;;  %v6406_v5 = vld [vmem:[%s6831_s29 + $0x60] sm:$0xff]  }
  0x63   : > { %5818 = vmatmul.mubr.bf16.gmra.mrb[12].mxu0 %v6343_v7  ;;  %5613 = vmatprep.mubr.bf16.mxu1 %v6345_v8  ;;  %v6407_v7 = vld [vmem:[%s6866_s21 + $0x28] sm:$0xff]   ;;  %v6420_v8 = vld [vmem:[%s7183_s12 + $0x20] sm:$0xff]  }
  0x64   : > { %5821 = vmatprep.mubr.bf16.mxu0 %v6346_v9  ;;  %5850 = vmatpush3.bf16.msra.mxu0 %v6362_v6  ;;  %v6414_v6 = vld [vmem:[%s7183_s12 + $0x18] sm:$0xff]   ;;  %v6409_v9 = vld [vmem:[%s6831_s29 + $0x68] sm:$0xff]  }
  0x65   : > { %5851 = vmatprep.subr.bf16.mxu0 %v6368_v10 }
  0x68   : > { %5852 = vmatpush3.bf16.msra.mxu0 %v6368_v10  ;;  %v6411_v10 = vld [vmem:[%s6866_s21 + $0x30] sm:$0xff]  }
  0x69   : > { %5885 = vmatprep.subr.bf16.mxu0 %v6374_v16 }
  0x6a   : > { %5614 = vmatmul.mubr.bf16.vlgmr.msra.gmra.mrb[0].mxu1 %v6347_v11  ;;  %v6412_v11 = vld [vmem:[%s6831_s29 + $0x70] sm:$0xff]  }
  0x6b   : > { %5822 = vmatmul.mubr.bf16.gmra.mrb[16].mxu0 %v6349_v12  ;;  %5646 = vmatpush3.bf16.msra.mxu1 %v6348_v60  ;;  %v6931_v60 = vld [vmem:[%s7188_s17] sm:$0xff]   ;;  %v6426_v12 = vld [vmem:[%s7183_s12 + $0x28] sm:$0xff]  }
  0x6c   : > { %5617 = vmatprep.mubr.bf16.mxu1 %v6351_v13  ;;  %5825 = vmatprep.mubr.bf16.mxu0 %v6352_v14  ;;  %v6413_v13 = vld [vmem:[%s6866_s21 + $0x38] sm:$0xff]   ;;  %v6432_v14 = vld [vmem:[%s7183_s12 + $0x30] sm:$0xff]  }
  0x6d   : > { %5647 = vmatprep.subr.bf16.mxu1 %v6354_v15 }
  0x6f   : > { %5648 = vmatpush3.bf16.msra.mxu1 %v6354_v15  ;;  %v6415_v15 = vld [vmem:[%s6831_s29 + $0x78] sm:$0xff]   ;;  %s7112_s29 = scalar_lea.vmem %s7190_s19, %s6667_s3 }
  0x70   : > { %5649 = vmatprep.subr.bf16.mxu1 %v6360_v17 }
  0x72   : > { %5618 = vmatmul.mubr.bf16.gmra.mrb[4].mxu1 %v6353_v18  ;;  %v6438_v18 = vld [vmem:[%s7183_s12 + $0x38] sm:$0xff]  }
  0x73   : > { %5826 = vmatmul.mubr.bf16.gmra.mrb[20].mxu0 %v6355_v19  ;;  %5621 = vmatprep.mubr.bf16.mxu1 %v6357_v20  ;;  %v6419_v19 = vld [vmem:[%s6866_s21 + $0x48] sm:$0xff]  }
  0x74   : > { %5829 = vmatprep.mubr.bf16.mxu0 %v6358_v21  ;;  %5650 = vmatpush3.bf16.msra.mxu1 %v6360_v17  ;;  %v6418_v17 = vld [vmem:[%s6906_s24] sm:$0xff]   ;;  %v6421_v20 = vld [vmem:[%s6906_s24 + $0x8] sm:$0xff]   ;;  %v6423_v21 = vld [vmem:[%s6866_s21 + $0x50] sm:$0xff]  }
  0x75   : > { %5651 = vmatprep.subr.bf16.mxu1 %v6366_v22 }
  0x78   : > { %5652 = vmatpush3.bf16.msra.mxu1 %v6366_v22  ;;  %v6424_v22 = vld [vmem:[%s6906_s24 + $0x10] sm:$0xff]  }
  0x79   : > { %5653 = vmatprep.subr.bf16.mxu1 %v6372_v24 }
  0x7a   : > { %5622 = vmatmul.mubr.bf16.gmra.mrb[8].mxu1 %v6359_v23  ;;  %v6428_v23 = vld [vmem:[%s7188_s17 + $0x8] sm:$0xff]  }
  0x7b   : > { %5830 = vmatmul.mubr.bf16.gmra.mrb[24].mxu0 %v6361_v25  ;;  %5625 = vmatprep.mubr.bf16.mxu1 %v6363_v26  ;;  %v6425_v25 = vld [vmem:[%s6866_s21 + $0x58] sm:$0xff]   ;;  %v6434_v26 = vld [vmem:[%s7188_s17 + $0x10] sm:$0xff]  }
  0x7c   : > { %5833 = vmatprep.mubr.bf16.mxu0 %v6364_v27  ;;  %5654 = vmatpush3.bf16.msra.mxu1 %v6372_v24  ;;  %v6493_v24 = vld [vmem:[%s7184_s13] sm:$0xff]   ;;  %v6427_v27 = vld [vmem:[%s6906_s24 + $0x18] sm:$0xff]  }
  0x7d   : > { %5655 = vmatprep.subr.bf16.mxu1 %v6378_v28 }
  0x80   : > { %5656 = vmatpush3.bf16.msra.mxu1 %v6378_v28  ;;  %v6429_v28 = vld [vmem:[%s6866_s21 + $0x60] sm:$0xff]  }
  0x81   : > { %5657 = vmatprep.subr.bf16.mxu1 %v6384_v30 }
  0x82   : > { %5626 = vmatmul.mubr.bf16.gmra.mrb[12].mxu1 %v6365_v29  ;;  %v6430_v29 = vld [vmem:[%s6906_s24 + $0x20] sm:$0xff]  }
  0x83   : > { %5834 = vmatmul.mubr.bf16.gmra.mrb[28].mxu0 %v6367_v31  ;;  %5629 = vmatprep.mubr.bf16.mxu1 %v6369_v32  ;;  %v6431_v31 = vld [vmem:[%s6866_s21 + $0x68] sm:$0xff]   ;;  %v6445_v32 = vld [vmem:[%s7188_s17 + $0x20] sm:$0xff]  }
  0x84   : > { %5853 = vmatprep.mubr.bf16.mxu0 %v6370_v33  ;;  %5658 = vmatpush3.bf16.msra.mxu1 %v6384_v30  ;;  %v6440_v30 = vld [vmem:[%s7188_s17 + $0x18] sm:$0xff]   ;;  %v6433_v33 = vld [vmem:[%s6906_s24 + $0x28] sm:$0xff]  }
  0x85   : > { %5659 = vmatprep.subr.bf16.mxu1 %v6390_v34 }
  0x88   : > { %5660 = vmatpush3.bf16.msra.mxu1 %v6390_v34  ;;  %v6435_v34 = vld [vmem:[%s6866_s21 + $0x70] sm:$0xff]  }
  0x89   : > { %5693 = vmatprep.subr.bf16.mxu1 %v6882_v36 }
  0x8a   : > { %5630 = vmatmul.mubr.bf16.gmra.mrb[16].mxu1 %v6371_v35  ;;  %v6436_v35 = vld [vmem:[%s6906_s24 + $0x30] sm:$0xff]  }
  0x8b   : > { %5854 = vmatmul.mubr.bf16.vlgmr.msra.gmra.mrb[0].mxu0 %v6373_v37  ;;  %5633 = vmatprep.mubr.bf16.mxu1 %v6375_v38  ;;  %v6437_v37 = vld [vmem:[%s6866_s21 + $0x78] sm:$0xff]   ;;  %v6455_v38 = vld [vmem:[%s7188_s17 + $0x30] sm:$0xff]  }
  0x8c   : > { %5886 = vmatpush3.bf16.msra.mxu0 %v6374_v16  ;;  %5857 = vmatprep.mubr.bf16.mxu0 %v6376_v39  ;;  %v6417_v16 = vld [vmem:[%s6866_s21 + $0x40] sm:$0xff]   ;;  %v6439_v39 = vld [vmem:[%s6906_s24 + $0x38] sm:$0xff]  }
  0x8d   : > { %5887 = vmatprep.subr.bf16.mxu0 %v6380_v40 }
  0x90   : > { %5888 = vmatpush3.bf16.msra.mxu0 %v6380_v40  ;;  %v6441_v40 = vld [vmem:[%s6945_s28] sm:$0xff]  }
  0x91   : > { %5889 = vmatprep.subr.bf16.mxu0 %v6386_v42 }
  0x92   : > { %5634 = vmatmul.mubr.bf16.gmra.mrb[20].mxu1 %v6377_v41  ;;  %v6442_v41 = vld [vmem:[%s6906_s24 + $0x40] sm:$0xff]  }
  0x93   : > { %5858 = vmatmul.mubr.bf16.gmra.mrb[4].mxu0 %v6379_v43  ;;  %5637 = vmatprep.mubr.bf16.mxu1 %v6381_v44  ;;  %v6443_v43 = vld [vmem:[%s6945_s28 + $0x8] sm:$0xff]  }
  0x94   : > { %5861 = vmatprep.mubr.bf16.mxu0 %v6382_v45  ;;  %5890 = vmatpush3.bf16.msra.mxu0 %v6386_v42  ;;  %v6460_v42 = vld [vmem:[%s7188_s17 + $0x38] sm:$0xff]   ;;  %v6444_v44 = vld [vmem:[%s6906_s24 + $0x48] sm:$0xff]   ;;  %v6446_v45 = vld [vmem:[%s6945_s28 + $0x10] sm:$0xff]  }
  0x95   : > { %5891 = vmatprep.subr.bf16.mxu0 %v6392_v46 }
  0x98   : > { %5892 = vmatpush3.bf16.msra.mxu0 %v6392_v46  ;;  %v6447_v46 = vld [vmem:[%s6906_s24 + $0x50] sm:$0xff]  }
  0x99   : > { %5893 = vmatprep.subr.bf16.mxu0 %v6398_v48 }
  0x9a   : > { %5638 = vmatmul.mubr.bf16.gmra.mrb[24].mxu1 %v6383_v47  ;;  %v6494_v47 = vld [vmem:[%s7184_s13 + $0x8] sm:$0xff]  }
  0x9b   : > { %5862 = vmatmul.mubr.bf16.gmra.mrb[8].mxu0 %v6385_v49  ;;  %5641 = vmatprep.mubr.bf16.mxu1 %v6387_v50  ;;  %v6449_v49 = vld [vmem:[%s6906_s24 + $0x58] sm:$0xff]   ;;  %v6451_v50 = vld [vmem:[%s6945_s28 + $0x20] sm:$0xff]  }
  0x9c   : > { %5865 = vmatprep.mubr.bf16.mxu0 %v6388_v51  ;;  %5894 = vmatpush3.bf16.msra.mxu0 %v6398_v48  ;;  %v6448_v48 = vld [vmem:[%s6945_s28 + $0x18] sm:$0xff]   ;;  %v6452_v51 = vld [vmem:[%s6906_s24 + $0x60] sm:$0xff]  }
  0x9d   : > { %5895 = vmatprep.subr.bf16.mxu0 %v6404_v52 }
  0xa0   : > { %5896 = vmatpush3.bf16.msra.mxu0 %v6404_v52  ;;  %v6495_v52 = vld [vmem:[%s7184_s13 + $0x10] sm:$0xff]  }
  0xa1   : > { %5897 = vmatprep.subr.bf16.mxu0 %v6410_v54 }
  0xa2   : > { %5642 = vmatmul.mubr.bf16.gmra.mrb[28].mxu1 %v6389_v53  ;;  %v6496_v53 = vld [vmem:[%s7184_s13 + $0x18] sm:$0xff]  }
  0xa3   : > { %5866 = vmatmul.mubr.bf16.gmra.mrb[12].mxu0 %v6391_v55  ;;  %5661 = vmatprep.mubr.bf16.mxu1 %v6393_v56  ;;  %v6454_v55 = vld [vmem:[%s6906_s24 + $0x68] sm:$0xff]   ;;  %v6456_v56 = vld [vmem:[%s6945_s28 + $0x30] sm:$0xff]  }
  0xa4   : > { %5869 = vmatprep.mubr.bf16.mxu0 %v6394_v57  ;;  %5898 = vmatpush3.bf16.msra.mxu0 %v6410_v54  ;;  %v6453_v54 = vld [vmem:[%s6945_s28 + $0x28] sm:$0xff]   ;;  %v6457_v57 = vld [vmem:[%s6906_s24 + $0x70] sm:$0xff]  }
  0xa5   : > { %5899 = vmatprep.subr.bf16.mxu0 %v6416_v58 }
  0xa8   : > { %5900 = vmatpush3.bf16.msra.mxu0 %v6416_v58  ;;  %v6497_v58 = vld [vmem:[%s7184_s13 + $0x20] sm:$0xff]  }
  0xa9   : > { %5933 = vmatprep.subr.bf16.mxu0 %v6931_v60 }
  0xaa   : > { %5662 = vmatmul.mubr.bf16.vlgmr.msra.gmra.mrb[0].mxu1 %v6395_v59  ;;  %v6498_v59 = vld [vmem:[%s7184_s13 + $0x28] sm:$0xff]  }
  0xab   : > { %5870 = vmatmul.mubr.bf16.gmra.mrb[16].mxu0 %v6397_v61  ;;  %5694 = vmatpush3.bf16.msra.mxu1 %v6882_v36  ;;  %v6450_v36 = vld [vmem:[%s7188_s17 + $0x28] sm:$0xff]   ;;  %v6459_v61 = vld [vmem:[%s6906_s24 + $0x78] sm:$0xff]  }
  0xac   : > { %5665 = vmatprep.mubr.bf16.mxu1 %v6399_v62  ;;  %5873 = vmatprep.mubr.bf16.mxu0 %v6400_v63  ;;  %v6461_v62 = vld [vmem:[%s6945_s28 + $0x40] sm:$0xff]  }
  0xad   : > { %5695 = vmatprep.subr.bf16.mxu1 %v6402_v0  ;;  %v6462_v63 = vld [vmem:[%s6978_s27] sm:$0xff]  }
  0xaf   : > { %5696 = vmatpush3.bf16.msra.mxu1 %v6402_v0  ;;  %v6499_v0 = vld [vmem:[%s7184_s13 + $0x30] sm:$0xff]  }
  0xb0   : > { %5697 = vmatprep.subr.bf16.mxu1 %v6408_v1 }
  0xb2   : > { %5666 = vmatmul.mubr.bf16.gmra.mrb[4].mxu1 %v6401_v2  ;;  %v6463_v2 = vld [vmem:[%s6945_s28 + $0x48] sm:$0xff]  }
  0xb3   : > { %5874 = vmatmul.mubr.bf16.gmra.mrb[20].mxu0 %v6403_v3  ;;  %5669 = vmatprep.mubr.bf16.mxu1 %v6405_v4  ;;  %v6464_v3 = vld [vmem:[%s6978_s27 + $0x8] sm:$0xff]   ;;  %v6465_v4 = vld [vmem:[%s6945_s28 + $0x50] sm:$0xff]  }
  0xb4   : > { %5877 = vmatprep.mubr.bf16.mxu0 %v6406_v5  ;;  %5698 = vmatpush3.bf16.msra.mxu1 %v6408_v1  ;;  %v6500_v1 = vld [vmem:[%s7184_s13 + $0x38] sm:$0xff]   ;;  %v6466_v5 = vld [vmem:[%s6978_s27 + $0x10] sm:$0xff]  }
  0xb5   : > { %5699 = vmatprep.subr.bf16.mxu1 %v6414_v6 }
  0xb8   : > { %5700 = vmatpush3.bf16.msra.mxu1 %v6414_v6  ;;  %v6467_v6 = vld [vmem:[%s6945_s28 + $0x58] sm:$0xff]  }
  0xb9   : > { %5701 = vmatprep.subr.bf16.mxu1 %v6420_v8 }
  0xba   : > { %5670 = vmatmul.mubr.bf16.gmra.mrb[8].mxu1 %v6407_v7  ;;  %v6468_v7 = vld [vmem:[%s6978_s27 + $0x18] sm:$0xff]  }
  0xbb   : > { %5878 = vmatmul.mubr.bf16.gmra.mrb[24].mxu0 %v6409_v9  ;;  %5673 = vmatprep.mubr.bf16.mxu1 %v6411_v10  ;;  %v6470_v9 = vld [vmem:[%s6978_s27 + $0x20] sm:$0xff]   ;;  %v6471_v10 = vld [vmem:[%s6945_s28 + $0x68] sm:$0xff]  }
  0xbc   : > { %5881 = vmatprep.mubr.bf16.mxu0 %v6412_v11  ;;  %5702 = vmatpush3.bf16.msra.mxu1 %v6420_v8  ;;  %v6469_v8 = vld [vmem:[%s6945_s28 + $0x60] sm:$0xff]   ;;  %v6472_v11 = vld [vmem:[%s6978_s27 + $0x28] sm:$0xff]  }
  0xbd   : > { %5703 = vmatprep.subr.bf16.mxu1 %v6426_v12 }
  0xc0   : > { %5704 = vmatpush3.bf16.msra.mxu1 %v6426_v12  ;;  %v6473_v12 = vld [vmem:[%s6945_s28 + $0x70] sm:$0xff]  }
  0xc1   : > { %5705 = vmatprep.subr.bf16.mxu1 %v6432_v14 }
  0xc2   : > { %5674 = vmatmul.mubr.bf16.gmra.mrb[12].mxu1 %v6413_v13  ;;  %v6474_v13 = vld [vmem:[%s6978_s27 + $0x30] sm:$0xff]  }
  0xc3   : > { %5882 = vmatmul.mubr.bf16.gmra.mrb[28].mxu0 %v6415_v15  ;;  %5677 = vmatprep.mubr.bf16.mxu1 %v6417_v16  ;;  %v6476_v15 = vld [vmem:[%s6978_s27 + $0x38] sm:$0xff]   ;;  %v6477_v16 = vld [vmem:[%s6688_s26 + $0x40] sm:$0xff]  }
  0xc4   : > { %5901 = vmatprep.mubr.bf16.mxu0 %v6418_v17  ;;  %5706 = vmatpush3.bf16.msra.mxu1 %v6432_v14  ;;  %v6475_v14 = vld [vmem:[%s6945_s28 + $0x78] sm:$0xff]   ;;  %v6478_v17 = vld [vmem:[%s6978_s27 + $0x40] sm:$0xff]  }
  0xc5   : > { %5707 = vmatprep.subr.bf16.mxu1 %v6438_v18 }
  0xc8   : > { %5708 = vmatpush3.bf16.msra.mxu1 %v6438_v18  ;;  %v6479_v18 = vld [vmem:[%s6688_s26 + $0x48] sm:$0xff]  }
  0xc9   : > { %5981 = vmatprep.subr.bf16.mxu1 %v6493_v24 }
  0xca   : > { %5678 = vmatmul.mubr.bf16.gmra.mrb[16].mxu1 %v6419_v19  ;;  %v6480_v19 = vld [vmem:[%s6978_s27 + $0x48] sm:$0xff]  }
  0xcb   : > { %5902 = vmatmul.mubr.bf16.vlgmr.msra.gmra.mrb[0].mxu0 %v6421_v20  ;;  %5681 = vmatprep.mubr.bf16.mxu1 %v6423_v21  ;;  %v6481_v20 = vld [vmem:[%s6688_s26 + $0x50] sm:$0xff]  }
  0xcc   : > { %5934 = vmatpush3.bf16.msra.mxu0 %v6931_v60  ;;  %5905 = vmatprep.mubr.bf16.mxu0 %v6424_v22  ;;  %v6458_v60 = vld [vmem:[%s6945_s28 + $0x38] sm:$0xff]   ;;  %v6482_v21 = vld [vmem:[%s6978_s27 + $0x50] sm:$0xff]  }
  0xcd   : > { %5935 = vmatprep.subr.bf16.mxu0 %v6428_v23  ;;  %v6483_v22 = vld [vmem:[%s6688_s26 + $0x58] sm:$0xff]  }
  0xd0   : > { %5936 = vmatpush3.bf16.msra.mxu0 %v6428_v23  ;;  %v6484_v23 = vld [vmem:[%s6978_s27 + $0x58] sm:$0xff]  }
  0xd1   : > { %5937 = vmatprep.subr.bf16.mxu0 %v6434_v26 }
  0xd2   : > { %5682 = vmatmul.mubr.bf16.gmra.mrb[20].mxu1 %v6425_v25  ;;  %v6486_v25 = vld [vmem:[%s6978_s27 + $0x60] sm:$0xff]  }
  0xd3   : > { %5906 = vmatmul.mubr.bf16.gmra.mrb[4].mxu0 %v6427_v27  ;;  %5685 = vmatprep.mubr.bf16.mxu1 %v6429_v28  ;;  %v6488_v27 = vld [vmem:[%s6978_s27 + $0x68] sm:$0xff]   ;;  %v6489_v28 = vld [vmem:[%s6688_s26 + $0x70] sm:$0xff]  }
  0xd4   : > { %5909 = vmatprep.mubr.bf16.mxu0 %v6430_v29  ;;  %5938 = vmatpush3.bf16.msra.mxu0 %v6434_v26  ;;  %v6487_v26 = vld [vmem:[%s6688_s26 + $0x68] sm:$0xff]   ;;  %v6490_v29 = vld [vmem:[%s6978_s27 + $0x70] sm:$0xff]  }
  0xd5   : > { %5939 = vmatprep.subr.bf16.mxu0 %v6440_v30 }
  0xd8   : > { %5940 = vmatpush3.bf16.msra.mxu0 %v6440_v30  ;;  %v6491_v30 = vld [vmem:[%s6688_s26 + $0x78] sm:$0xff]  }
  0xd9   : > { %5941 = vmatprep.subr.bf16.mxu0 %v6445_v32 }
  0xda   : > { %5686 = vmatmul.mubr.bf16.gmra.mrb[24].mxu1 %v6431_v31  ;;  %v6492_v31 = vld [vmem:[%s6978_s27 + $0x78] sm:$0xff]  }
  0xdb   : > { %5910 = vmatmul.mubr.bf16.gmra.mrb[8].mxu0 %v6433_v33  ;;  %5689 = vmatprep.mubr.bf16.mxu1 %v6435_v34 }
  0xdc   : > { %5913 = vmatprep.mubr.bf16.mxu0 %v6436_v35  ;;  %5942 = vmatpush3.bf16.msra.mxu0 %v6445_v32 }
  0xdd   : > { %5943 = vmatprep.subr.bf16.mxu0 %v6450_v36 }
  0xe0   : > { %5944 = vmatpush3.bf16.msra.mxu0 %v6450_v36 }
  0xe1   : > { %5945 = vmatprep.subr.bf16.mxu0 %v6455_v38 }
  0xe2   : > { %5690 = vmatmul.mubr.bf16.gmra.mrb[28].mxu1 %v6437_v37 }
  0xe3   : > { %5914 = vmatmul.mubr.bf16.gmra.mrb[12].mxu0 %v6439_v39  ;;  %5709 = vmatprep.mubr.bf16.mxu1 %v6441_v40 }
  0xe4   : > { %5917 = vmatprep.mubr.bf16.mxu0 %v6442_v41  ;;  %5946 = vmatpush3.bf16.msra.mxu0 %v6455_v38 }
  0xe5   : > { %5947 = vmatprep.subr.bf16.mxu0 %v6460_v42 }
  0xe8   : > { %5948 = vmatpush3.bf16.msra.mxu0 %v6460_v42 }
  0xea   : > { %5710 = vmatmul.mubr.bf16.vlgmr.msra.gmra.mrb[0].mxu1 %v6443_v43 }
  0xeb   : > { %5918 = vmatmul.mubr.bf16.gmra.mrb[16].mxu0 %v6444_v44  ;;  %5989 = vmatpush3.bf16.msra.mxu1 %v6493_v24  ;;  %v6485_v24 = vld [vmem:[%s6688_s26 + $0x60] sm:$0xff]  }
  0xec   : > { %5713 = vmatprep.mubr.bf16.mxu1 %v6446_v45  ;;  %5921 = vmatprep.mubr.bf16.mxu0 %v6447_v46 }
  0xed   : > { %5982 = vmatprep.subr.bf16.mxu1 %v6494_v47 }
  0xef   : > { %5990 = vmatpush3.bf16.msra.mxu1 %v6494_v47 }
  0xf0   : > { %5983 = vmatprep.subr.bf16.mxu1 %v6495_v52 }
  0xf2   : > { %5714 = vmatmul.mubr.bf16.gmra.mrb[4].mxu1 %v6448_v48 }
  0xf3   : > { %5922 = vmatmul.mubr.bf16.gmra.mrb[20].mxu0 %v6449_v49  ;;  %5717 = vmatprep.mubr.bf16.mxu1 %v6451_v50  ;;  %v7102_v49 = vld [vmem:[%s7189_s18] ss:$0 sm:$0xff] }
  0xf4   : > { %5925 = vmatprep.mubr.bf16.mxu0 %v6452_v51  ;;  %5991 = vmatpush3.bf16.msra.mxu1 %v6495_v52 }
  0xf5   : > { %5984 = vmatprep.subr.bf16.mxu1 %v6496_v53 }
  0xf8   : > { %5992 = vmatpush3.bf16.msra.mxu1 %v6496_v53 }
  0xf9   : > { %5985 = vmatprep.subr.bf16.mxu1 %v6497_v58 }
  0xfa   : > { %5718 = vmatmul.mubr.bf16.gmra.mrb[8].mxu1 %v6453_v54 }
  0xfb   : > { %5926 = vmatmul.mubr.bf16.gmra.mrb[24].mxu0 %v6454_v55  ;;  %5721 = vmatprep.mubr.bf16.mxu1 %v6456_v56 }
  0xfc   : > { %5929 = vmatprep.mubr.bf16.mxu0 %v6457_v57  ;;  %5993 = vmatpush3.bf16.msra.mxu1 %v6497_v58 }
  0xfd   : > { %5986 = vmatprep.subr.bf16.mxu1 %v6498_v59 }
 0x100   : > { %5994 = vmatpush3.bf16.msra.mxu1 %v6498_v59 }
 0x101   : > { %5987 = vmatprep.subr.bf16.mxu1 %v6499_v0 }
 0x102   : > { %5722 = vmatmul.mubr.bf16.gmra.mrb[12].mxu1 %v6458_v60 }
 0x103   : > { %5930 = vmatmul.mubr.bf16.gmra.mrb[28].mxu0 %v6459_v61  ;;  %5725 = vmatprep.mubr.bf16.mxu1 %v6461_v62 }
 0x104   : > { %5949 = vmatprep.mubr.bf16.mxu0 %v6462_v63  ;;  %5995 = vmatpush3.bf16.msra.mxu1 %v6499_v0 }
 0x105   : > { %5988 = vmatprep.subr.bf16.mxu1 %v6500_v1 }
 0x108   : > { %5996 = vmatpush3.bf16.msra.mxu1 %v6500_v1 }
 0x10a   : > { %5726 = vmatmul.mubr.bf16.gmra.mrb[16].mxu1 %v6463_v2 }
 0x10b   : > { %5950 = vmatmul.mubr.bf16.vlgmr.msra.gmra.mrb[0].mxu0 %v6464_v3  ;;  %5729 = vmatprep.mubr.bf16.mxu1 %v6465_v4 }
 0x10c   : > { %5953 = vmatprep.mubr.bf16.mxu0 %v6466_v5 }
 0x112   : > { %5730 = vmatmul.mubr.bf16.gmra.mrb[20].mxu1 %v6467_v6 }
 0x113   : > { %5954 = vmatmul.mubr.bf16.gmra.mrb[4].mxu0 %v6468_v7  ;;  %5733 = vmatprep.mubr.bf16.mxu1 %v6469_v8 }
 0x114   : > { %5957 = vmatprep.mubr.bf16.mxu0 %v6470_v9 }
 0x11a   : > { %5734 = vmatmul.mubr.bf16.gmra.mrb[24].mxu1 %v6471_v10 }
 0x11b   : > { %5958 = vmatmul.mubr.bf16.gmra.mrb[8].mxu0 %v6472_v11  ;;  %5737 = vmatprep.mubr.bf16.mxu1 %v6473_v12 }
 0x11c   : > { %5961 = vmatprep.mubr.bf16.mxu0 %v6474_v13 }
 0x122   : > { %5738 = vmatmul.mubr.bf16.gmra.mrb[28].mxu1 %v6475_v14 }
 0x123   : > { %5962 = vmatmul.mubr.bf16.gmra.mrb[12].mxu0 %v6476_v15  ;;  %5773 = vmatprep.mubr.bf16.mxu1 %v6477_v16 }
 0x124   : > { %5965 = vmatprep.mubr.bf16.mxu0 %v6478_v17 }
 0x12a   : > { %5774 = vmatmul.mubr.bf16.vlgmr.msra.gmra.mrb[16].mxu1 %v6479_v18 }
 0x12b   : > { %5966 = vmatmul.mubr.bf16.gmra.mrb[16].mxu0 %v6480_v19  ;;  %5777 = vmatprep.mubr.bf16.mxu1 %v6481_v20 }
 0x12c   : > { %5969 = vmatprep.mubr.bf16.mxu0 %v6482_v21 }
 0x132   : > { %5778 = vmatmul.mubr.bf16.gmra.mrb[20].mxu1 %v6483_v22 }
 0x133   : > { %5970 = vmatmul.mubr.bf16.gmra.mrb[20].mxu0 %v6484_v23  ;;  %5781 = vmatprep.mubr.bf16.mxu1 %v6485_v24 }
 0x134   : > { %5973 = vmatprep.mubr.bf16.mxu0 %v6486_v25 }
 0x13a   : > { %5782 = vmatmul.mubr.bf16.gmra.mrb[24].mxu1 %v6487_v26 }
 0x13b   : > { %5974 = vmatmul.mubr.bf16.gmra.mrb[24].mxu0 %v6488_v27  ;;  %5785 = vmatprep.mubr.bf16.mxu1 %v6489_v28 }
 0x13c   : > { %5977 = vmatprep.mubr.bf16.mxu0 %v6490_v29 }
 0x142   : > { %5786 = vmatmul.mubr.bf16.gmra.mrb[28].mxu1 %v6491_v30 }
 0x143   : > { %5978 = vmatmul.mubr.bf16.gmra.mrb[28].mxu0 %v6492_v31 }
 0x1bd   : > { %v5711_v32 = vpop.f32.mrb[0].mxu1 }
 0x1be   : > { %v2287_v33 = vpop.f32.mrb[1].mxu1 }
 0x1bf   : > { %v5712_v34 = vpop.f32.mrb[2].mxu1 }
 0x1c0   : > { %v2290_v35 = vpop.f32.mrb[3].mxu1 }
 0x1c5   : > { %v5715_v36 = vpop.f32.mrb[4].mxu1 }
 0x1c6   : > { %v2303_v37 = vpop.f32.mrb[5].mxu1 }
 0x1c7   : > { %v5716_v38 = vpop.f32.mrb[6].mxu1 }
 0x1c8   : > { %v2306_v39 = vpop.f32.mrb[7].mxu1 }
 0x1cd   : > { %v5719_v40 = vpop.f32.mrb[8].mxu1 }
 0x1ce   : > { %v2319_v41 = vpop.f32.mrb[9].mxu1 }
 0x1cf   : > { %v5720_v42 = vpop.f32.mrb[10].mxu1 }
 0x1d0   : > { %v2322_v43 = vpop.f32.mrb[11].mxu1 }
 0x1d5   : > { %v7091_v44 = vpop.f32.mrb[12].mxu1 }
 0x1d6   : > { %v7093_v45 = vpop.f32.mrb[13].mxu1 }
 0x1d7   : > { %v7095_v46 = vpop.f32.mrb[14].mxu1 }
 0x1d8   : > { %v7097_v47 = vpop.f32.mrb[15].mxu1 }
 0x1de   : > { %v5951_v48 = vpop.f32.mrb[0].mxu0 }
 0x1df   : > { %v5997_v50 = vadd.f32 %v5951_v48, %v5711_v32  ;;  %v4212_v51 = vpop.f32.mrb[1].mxu0 }
 0x1e0   : > { %v5998_v52 = vadd.f32 %v4212_v51, %v2287_v33  ;;  %v5952_v53 = vpop.f32.mrb[2].mxu0 }
 0x1e1   : > { %v4380_v54 = vadd.f32 %v5997_v50, %v7102_v49  ;;  %v5999_v55 = vadd.f32 %v5952_v53, %v5712_v34  ;;  %v4215_v56 = vpop.f32.mrb[3].mxu0 }
 0x1e2   : > { %v4378_v57 = vadd.f32 %v5998_v52, %v7102_v49  ;;  %v6000_v58 = vadd.f32 %v4215_v56, %v2290_v35 }
 0x1e3   : > { %v4381_v59 = vadd.f32 %v5999_v55, %v7102_v49  ;;  %v4412_v61 = vmax.f32 %v4380_v54, 0.0 }
 0x1e4   : > { %v4379_v60 = vadd.f32 %v6000_v58, %v7102_v49  ;;  %v4410_v63 = vmax.f32 %v4378_v57, 0.0 }
 0x1e5   : > { %v4413_v62 = vmax.f32 %v4381_v59, 0.0 }
 0x1e6   : > { %v4411_v0 = vmax.f32 %v4379_v60, 0.0  ;;  %v5955_v1 = vpop.f32.mrb[4].mxu0 }
 0x1e7   : > { %v5246_v2 = vpack.c.bf16 %v4413_v62, %v4412_v61  ;;  %v6001_v3 = vadd.f32 %v5955_v1, %v5715_v36  ;;  %v4228_v4 = vpop.f32.mrb[5].mxu0 }
 0x1e8   : > { %v5241_v5 = vpack.c.bf16 %v4411_v0, %v4410_v63  ;;  %v6002_v6 = vadd.f32 %v4228_v4, %v2303_v37  ;;  %v5956_v7 = vpop.f32.mrb[6].mxu0 }
 0x1e9   : > { %5318 = vst [vmem:[%s7112_s29 + $0x8] sm:$0xff] %v5246_v2   ;;  %v4384_v8 = vadd.f32 %v6001_v3, %v7102_v49  ;;  %v6003_v9 = vadd.f32 %v5956_v7, %v5716_v38  ;;  %v4231_v10 = vpop.f32.mrb[7].mxu0 }
 0x1ea   : > { %5242 = vst [vmem:[%s7112_s29] sm:$0xff] %v5241_v5   ;;  %v4382_v11 = vadd.f32 %v6002_v6, %v7102_v49  ;;  %v6004_v12 = vadd.f32 %v4231_v10, %v2306_v39 }
 0x1eb   : > { %v4385_v13 = vadd.f32 %v6003_v9, %v7102_v49  ;;  %v4416_v15 = vmax.f32 %v4384_v8, 0.0 }
 0x1ec   : > { %v4383_v14 = vadd.f32 %v6004_v12, %v7102_v49  ;;  %v4414_v17 = vmax.f32 %v4382_v11, 0.0 }
 0x1ed   : > { %v4417_v16 = vmax.f32 %v4385_v13, 0.0 }
 0x1ee   : > { %v4415_v18 = vmax.f32 %v4383_v14, 0.0  ;;  %v5959_v19 = vpop.f32.mrb[8].mxu0 }
 0x1ef   : > { %v5256_v20 = vpack.c.bf16 %v4417_v16, %v4416_v15  ;;  %v6005_v21 = vadd.f32 %v5959_v19, %v5719_v40  ;;  %v4244_v22 = vpop.f32.mrb[9].mxu0 }
 0x1f0   : > { %v5251_v23 = vpack.c.bf16 %v4415_v18, %v4414_v17  ;;  %v6006_v24 = vadd.f32 %v4244_v22, %v2319_v41  ;;  %v5960_v25 = vpop.f32.mrb[10].mxu0 }
 0x1f1   : > { %5320 = vst [vmem:[%s7112_s29 + $0x18] sm:$0xff] %v5256_v20   ;;  %v4388_v26 = vadd.f32 %v6005_v21, %v7102_v49  ;;  %v6007_v27 = vadd.f32 %v5960_v25, %v5720_v42  ;;  %v4247_v28 = vpop.f32.mrb[11].mxu0 }
 0x1f2   : > { %5319 = vst [vmem:[%s7112_s29 + $0x10] sm:$0xff] %v5251_v23   ;;  %v4386_v29 = vadd.f32 %v6006_v24, %v7102_v49  ;;  %v6008_v30 = vadd.f32 %v4247_v28, %v2322_v43 }
 0x1f3   : > { %v4389_v31 = vadd.f32 %v6007_v27, %v7102_v49  ;;  %v4420_v33 = vmax.f32 %v4388_v26, 0.0 }
 0x1f4   : > { %v4387_v32 = vadd.f32 %v6008_v30, %v7102_v49  ;;  %v4418_v35 = vmax.f32 %v4386_v29, 0.0 }
 0x1f5   : > { %v4421_v34 = vmax.f32 %v4389_v31, 0.0 }
 0x1f6   : > { %v4419_v36 = vmax.f32 %v4387_v32, 0.0  ;;  %v5963_v37 = vpop.f32.mrb[12].mxu0 }
 0x1f7   : > { %v5266_v38 = vpack.c.bf16 %v4421_v34, %v4420_v33  ;;  %v6009_v39 = vadd.f32 %v5963_v37, %v7091_v44  ;;  %v4260_v40 = vpop.f32.mrb[13].mxu0 }
 0x1f8   : > { %v5261_v41 = vpack.c.bf16 %v4419_v36, %v4418_v35  ;;  %v6010_v42 = vadd.f32 %v4260_v40, %v7093_v45  ;;  %v5964_v48 = vpop.f32.mrb[14].mxu0 }
 0x1f9   : > { %5322 = vst [vmem:[%s7112_s29 + $0x28] sm:$0xff] %v5266_v38   ;;  %v4392_v43 = vadd.f32 %v6009_v39, %v7102_v49  ;;  %v6011_v50 = vadd.f32 %v5964_v48, %v7095_v46  ;;  %v4263_v51 = vpop.f32.mrb[15].mxu0 }
 0x1fa   : > { %5321 = vst [vmem:[%s7112_s29 + $0x20] sm:$0xff] %v5261_v41   ;;  %v4390_v52 = vadd.f32 %v6010_v42, %v7102_v49  ;;  %v6012_v53 = vadd.f32 %v4263_v51, %v7097_v47 }
 0x1fb   : > { %v4393_v54 = vadd.f32 %v6011_v50, %v7102_v49  ;;  %v4424_v55 = vmax.f32 %v4392_v43, 0.0 }
 0x1fc   : > { %v4391_v44 = vadd.f32 %v6012_v53, %v7102_v49  ;;  %v4422_v57 = vmax.f32 %v4390_v52, 0.0 }
 0x1fd   : > { %v4425_v56 = vmax.f32 %v4393_v54, 0.0  ;;  %v5775_v45 = vpop.f32.mrb[16].mxu1 }
 0x1fe   : > { %v4423_v58 = vmax.f32 %v4391_v44, 0.0  ;;  %v5967_v59 = vpop.f32.mrb[16].mxu0  ;;  %v2736_v60 = vpop.f32.mrb[17].mxu1 }
 0x1ff   : > { %v5276_v46 = vpack.c.bf16 %v4425_v56, %v4424_v55  ;;  %v6013_v61 = vadd.f32 %v5967_v59, %v5775_v45  ;;  %v4276_v62 = vpop.f32.mrb[17].mxu0  ;;  %v5776_v63 = vpop.f32.mrb[18].mxu1 }
 0x200   : > { %v5271_v0 = vpack.c.bf16 %v4423_v58, %v4422_v57  ;;  %v6014_v1 = vadd.f32 %v4276_v62, %v2736_v60  ;;  %v5968_v47 = vpop.f32.mrb[18].mxu0  ;;  %v2739_v2 = vpop.f32.mrb[19].mxu1 }
 0x201   : > { %5324 = vst [vmem:[%s7112_s29 + $0x38] sm:$0xff] %v5276_v46   ;;  %v4396_v3 = vadd.f32 %v6013_v61, %v7102_v49  ;;  %v6015_v4 = vadd.f32 %v5968_v47, %v5776_v63  ;;  %v4279_v5 = vpop.f32.mrb[19].mxu0 }
 0x202   : > { %5323 = vst [vmem:[%s7112_s29 + $0x30] sm:$0xff] %v5271_v0   ;;  %v4394_v6 = vadd.f32 %v6014_v1, %v7102_v49  ;;  %v6016_v7 = vadd.f32 %v4279_v5, %v2739_v2 }
 0x203   : > { %v4397_v8 = vadd.f32 %v6015_v4, %v7102_v49  ;;  %v4428_v10 = vmax.f32 %v4396_v3, 0.0 }
 0x204   : > { %v4395_v9 = vadd.f32 %v6016_v7, %v7102_v49  ;;  %v4426_v13 = vmax.f32 %v4394_v6, 0.0 }
 0x205   : > { %v4429_v11 = vmax.f32 %v4397_v8, 0.0  ;;  %v5779_v12 = vpop.f32.mrb[20].mxu1 }
 0x206   : > { %v4427_v14 = vmax.f32 %v4395_v9, 0.0  ;;  %v5971_v15 = vpop.f32.mrb[20].mxu0  ;;  %v2752_v16 = vpop.f32.mrb[21].mxu1 }
 0x207   : > { %v5286_v17 = vpack.c.bf16 %v4429_v11, %v4428_v10  ;;  %v6017_v18 = vadd.f32 %v5971_v15, %v5779_v12  ;;  %v4292_v19 = vpop.f32.mrb[21].mxu0  ;;  %v5780_v20 = vpop.f32.mrb[22].mxu1 }
 0x208   : > { %v5281_v21 = vpack.c.bf16 %v4427_v14, %v4426_v13  ;;  %v6018_v22 = vadd.f32 %v4292_v19, %v2752_v16  ;;  %v5972_v23 = vpop.f32.mrb[22].mxu0  ;;  %v2755_v24 = vpop.f32.mrb[23].mxu1 }
 0x209   : > { %5326 = vst [vmem:[%s7112_s29 + $0x48] sm:$0xff] %v5286_v17   ;;  %v4400_v25 = vadd.f32 %v6017_v18, %v7102_v49  ;;  %v6019_v26 = vadd.f32 %v5972_v23, %v5780_v20  ;;  %v4295_v27 = vpop.f32.mrb[23].mxu0 }
 0x20a   : > { %5325 = vst [vmem:[%s7112_s29 + $0x40] sm:$0xff] %v5281_v21   ;;  %v4398_v28 = vadd.f32 %v6018_v22, %v7102_v49  ;;  %v6020_v29 = vadd.f32 %v4295_v27, %v2755_v24 }
 0x20b   : > { %v4401_v30 = vadd.f32 %v6019_v26, %v7102_v49  ;;  %v4432_v32 = vmax.f32 %v4400_v25, 0.0 }
 0x20c   : > { %v4399_v31 = vadd.f32 %v6020_v29, %v7102_v49  ;;  %v4430_v35 = vmax.f32 %v4398_v28, 0.0 }
 0x20d   : > { %v4433_v33 = vmax.f32 %v4401_v30, 0.0  ;;  %v5783_v34 = vpop.f32.mrb[24].mxu1 }
 0x20e   : > { %v4431_v36 = vmax.f32 %v4399_v31, 0.0  ;;  %v5975_v37 = vpop.f32.mrb[24].mxu0  ;;  %v2768_v38 = vpop.f32.mrb[25].mxu1 }
 0x20f   : > { %v5296_v39 = vpack.c.bf16 %v4433_v33, %v4432_v32  ;;  %v6021_v40 = vadd.f32 %v5975_v37, %v5783_v34  ;;  %v4308_v41 = vpop.f32.mrb[25].mxu0  ;;  %v5784_v42 = vpop.f32.mrb[26].mxu1 }
 0x210   : > { %v5291_v48 = vpack.c.bf16 %v4431_v36, %v4430_v35  ;;  %v6022_v43 = vadd.f32 %v4308_v41, %v2768_v38  ;;  %v5976_v50 = vpop.f32.mrb[26].mxu0  ;;  %v2771_v51 = vpop.f32.mrb[27].mxu1 }
 0x211   : > { %5328 = vst [vmem:[%s7112_s29 + $0x58] sm:$0xff] %v5296_v39   ;;  %v4404_v52 = vadd.f32 %v6021_v40, %v7102_v49  ;;  %v6023_v53 = vadd.f32 %v5976_v50, %v5784_v42  ;;  %v4311_v54 = vpop.f32.mrb[27].mxu0 }
 0x212   : > { %5327 = vst [vmem:[%s7112_s29 + $0x50] sm:$0xff] %v5291_v48   ;;  %v4402_v44 = vadd.f32 %v6022_v43, %v7102_v49  ;;  %v6024_v55 = vadd.f32 %v4311_v54, %v2771_v51 }
 0x213   : > { %v4405_v56 = vadd.f32 %v6023_v53, %v7102_v49  ;;  %v4436_v57 = vmax.f32 %v4404_v52, 0.0 }
 0x214   : > { %v4403_v45 = vadd.f32 %v6024_v55, %v7102_v49  ;;  %v4434_v60 = vmax.f32 %v4402_v44, 0.0 }
 0x215   : > { %v4437_v58 = vmax.f32 %v4405_v56, 0.0  ;;  %v5787_v59 = vpop.f32.mrb[28].mxu1 }
 0x216   : > { %v4435_v46 = vmax.f32 %v4403_v45, 0.0  ;;  %v5979_v61 = vpop.f32.mrb[28].mxu0  ;;  %v2784_v62 = vpop.f32.mrb[29].mxu1 }
 0x217   : > { %v5306_v63 = vpack.c.bf16 %v4437_v58, %v4436_v57  ;;  %v6025_v0 = vadd.f32 %v5979_v61, %v5787_v59  ;;  %v4324_v1 = vpop.f32.mrb[29].mxu0  ;;  %v5788_v47 = vpop.f32.mrb[30].mxu1 }
 0x218   : > { %v5301_v2 = vpack.c.bf16 %v4435_v46, %v4434_v60  ;;  %v6026_v3 = vadd.f32 %v4324_v1, %v2784_v62  ;;  %v5980_v4 = vpop.f32.mrb[30].mxu0  ;;  %v2787_v5 = vpop.f32.mrb[31].mxu1 }
 0x219   : > { %5330 = vst [vmem:[%s7112_s29 + $0x68] sm:$0xff] %v5306_v63   ;;  %v4408_v6 = vadd.f32 %v6025_v0, %v7102_v49  ;;  %v6027_v7 = vadd.f32 %v5980_v4, %v5788_v47  ;;  %v4327_v8 = vpop.f32.mrb[31].mxu0 }
 0x21a   : > { %5329 = vst [vmem:[%s7112_s29 + $0x60] sm:$0xff] %v5301_v2   ;;  %v4406_v9 = vadd.f32 %v6026_v3, %v7102_v49  ;;  %v6028_v10 = vadd.f32 %v4327_v8, %v2787_v5 }
 0x21b   : > { %v4409_v11 = vadd.f32 %v6027_v7, %v7102_v49  ;;  %v4440_v13 = vmax.f32 %v4408_v6, 0.0 }
 0x21c   : > { %v4407_v12 = vadd.f32 %v6028_v10, %v7102_v49  ;;  %v4438_v15 = vmax.f32 %v4406_v9, 0.0 }
 0x21d   : > { %v4441_v14 = vmax.f32 %v4409_v11, 0.0 }
 0x21e   : > { %v4439_v16 = vmax.f32 %v4407_v12, 0.0 }
 0x21f   : > { %v5316_v17 = vpack.c.bf16 %v4441_v14, %v4440_v13 }
 0x220   : > { %v5311_v18 = vpack.c.bf16 %v4439_v16, %v4438_v15 }
 0x221   : > { %5332 = vst [vmem:[%s7112_s29 + $0x78] sm:$0xff] %v5316_v17  }
 0x222   : > { %5331 = vst [vmem:[%s7112_s29 + $0x70] sm:$0xff] %v5311_v18  }
 0x223 PF: > { %s29_s20 = sadd.s32 1, %s6523_s20   ;;  %s7200_s3 = sld [smem:[#allocation2_spill]] }
 0x224   : > { %p26_p5 = scmp.ge.s32.totalorder %s29_s20, 4   ;;  %s7201_s0 = smov %s6519_s30 }
 0x226   :  { %28 = sbr.rel (!%p26_p5) target bundleno = 5 (0x5), region = 180 }
 0x229   : > { %s7202_s30 = smov %s7200_s3 }

// kernel: resnext_block_forward.3
= control target key start
LH: loop header
LB: loop body
LE: loop exit
PB: predicated region body
PF: predicated region fallthrough
CT: control target
= control target key end

     0   :  { %s1198_s12 = smov 0   ;;  %s1200_s13 = smov 0   ;;  %s1330_s0 = inlined_call_operand.vmem [shape: bf16[512,4], index: 0, kind: input, shape index: {}]   ;;  %s1331_s1 = inlined_call_operand.vmem [shape: bf16[4,128], index: 1, kind: input, shape index: {}]   ;;  %s1332_s2 = inlined_call_operand.vmem [shape: f32[1,128], index: 2, kind: input, shape index: {}]   ;;  %s1333_s3 = inlined_call_operand.vmem [shape: bf16[512,128], index: 3, kind: output, shape index: {}]  }
   0x1   :  { %s1202_s14 = smov 0  }
   0x2 LB: > { %s22_s15 = sadd.s32 1, %s1172_s13  ;;  %p860_p0 = scmp.ge.s32.totalorder %s1176_s14, 1  ;;  %s1176_s14 = sphi %s1202_s14, %s13_s14   ;;  %s1172_s13 = sphi %s1200_s13, %s1335_s13   ;;  %s1168_s12 = sphi %s1198_s12, %s1334_s12  }
   0x3   : > { %p23_p1 = scmp.ge.s32.totalorder %s22_s15, 2  ;;  %p169_p2 = scmp.lt.s32.totalorder %s1176_s14, 3 }
   0x5   : > { %s1337_s15 = smov (%p23_p1, %s22_s15), 0  ;;  %p170_p3 = pnand %p860_p0, %p169_p2 }
   0x6   : > { %v258_v0 = vld [vmem:[%s1331_s1] sm:$0x3] (!%p170_p3)  ;;  %vm395_vm0 = vcmask (!%p170_p3), 1041408   ;;  %s861_s18 = sshll.u32 (!%p170_p3), %s1168_s12, 5  ;;  %vm346_vm1 = vcmask (!%p170_p3), 31744  }
   0x7   : > { %173 = sbr.rel (%p170_p3) target bundleno = 266 (0x10a), region = 32  ;;  %1112 = vmatprep.subr.msk.bf16.mxu0 (!%p170_p3), %vm395_vm0, %v258_v0  ;;  %1113 = vmatprep.subr.msk.bf16.mxu1 (!%p170_p3), %vm395_vm0, %v258_v0  ;;  %v397_v1 = vsel (!%p170_p3), %vm395_vm0, %v258_v0, 0  ;;  %p204_p4 = scmp.lt.s32.totalorder (!%p170_p3), %s861_s18, 63  ;;  %v1264_v18 = vld [vmem:[%s1332_s2] ss:$0 sm:$0xff] (!%p170_p3) }
   0x8   : > { %1077 = vmatpush3.bf16.msra.mxu0 (!%p170_p3), %v397_v1  ;;  %1111 = vmatpush3.bf16.msra.mxu1 (!%p170_p3), %v397_v1 }
   0xe   : > { %s1339_s18 = smov (!%p204_p4, %s861_s18), 63 }
   0xf   : > { %s862_s19 = sshll.u32 %s1339_s18, 2 }
  0x10   : > { %s1227_s22 = scalar_lea.vmem %s1330_s0, %s862_s19  ;;  %s1279_s27 = scalar_lea.vmem %s1333_s3, %s862_s19 }
  0x11   : > { %v1138_v2 = vld [vmem:[%s1227_s22] sm:$0xff]   ;;  %v1140_v4 = vld [vmem:[%s1227_s22 + $0x8] sm:$0xff]   ;;  %v1142_v6 = vld [vmem:[%s1227_s22 + $0x10] sm:$0xff]  }
  0x12   : > { %v1139_v3 = vld [vmem:[%s1227_s22 + $0x40] sm:$0xff]   ;;  %1078 = vmatprep.mubr.msk.bf16.mxu0 %vm346_vm1, %v1138_v2  ;;  %v1141_v5 = vld [vmem:[%s1227_s22 + $0x48] sm:$0xff]   ;;  %v1143_v7 = vld [vmem:[%s1227_s22 + $0x50] sm:$0xff]  }
  0x13   : > { %1094 = vmatprep.mubr.msk.bf16.mxu1 %vm346_vm1, %v1139_v3  ;;  %1079 = vmatmul.mubr.msk.bf16.vlgmr.msra.gmra.mrb[0].mxu0 %vm346_vm1, %v1140_v4  ;;  %v1144_v8 = vld [vmem:[%s1227_s22 + $0x18] sm:$0xff]   ;;  %v1146_v10 = vld [vmem:[%s1227_s22 + $0x20] sm:$0xff]   ;;  %v1148_v12 = vld [vmem:[%s1227_s22 + $0x28] sm:$0xff]  }
  0x14   : > { %1095 = vmatmul.mubr.msk.bf16.vlgmr.msra.gmra.mrb[0].mxu1 %vm346_vm1, %v1141_v5  ;;  %1082 = vmatprep.mubr.msk.bf16.mxu0 %vm346_vm1, %v1142_v6  ;;  %v1145_v9 = vld [vmem:[%s1227_s22 + $0x58] sm:$0xff]   ;;  %v1147_v11 = vld [vmem:[%s1227_s22 + $0x60] sm:$0xff]   ;;  %v1149_v13 = vld [vmem:[%s1227_s22 + $0x68] sm:$0xff]  }
  0x15   : > { %1098 = vmatprep.mubr.msk.bf16.mxu1 %vm346_vm1, %v1143_v7  ;;  %v1150_v14 = vld [vmem:[%s1227_s22 + $0x30] sm:$0xff]   ;;  %v1152_v16 = vld [vmem:[%s1227_s22 + $0x38] sm:$0xff]  }
  0x16   : > { %v1151_v15 = vld [vmem:[%s1227_s22 + $0x70] sm:$0xff]   ;;  %v1153_v17 = vld [vmem:[%s1227_s22 + $0x78] sm:$0xff]  }
  0x1b   : > { %1083 = vmatmul.mubr.msk.bf16.gmra.mrb[4].mxu0 %vm346_vm1, %v1144_v8 }
  0x1c   : > { %1099 = vmatmul.mubr.msk.bf16.gmra.mrb[4].mxu1 %vm346_vm1, %v1145_v9  ;;  %1086 = vmatprep.mubr.msk.bf16.mxu0 %vm346_vm1, %v1146_v10 }
  0x1d   : > { %1102 = vmatprep.mubr.msk.bf16.mxu1 %vm346_vm1, %v1147_v11 }
  0x23   : > { %1087 = vmatmul.mubr.msk.bf16.gmra.mrb[8].mxu0 %vm346_vm1, %v1148_v12 }
  0x24   : > { %1103 = vmatmul.mubr.msk.bf16.gmra.mrb[8].mxu1 %vm346_vm1, %v1149_v13  ;;  %1090 = vmatprep.mubr.msk.bf16.mxu0 %vm346_vm1, %v1150_v14 }
  0x25   : > { %1106 = vmatprep.mubr.msk.bf16.mxu1 %vm346_vm1, %v1151_v15 }
  0x2b   : > { %1091 = vmatmul.mubr.msk.bf16.gmra.mrb[12].mxu0 %vm346_vm1, %v1152_v16 }
  0x2c   : > { %1107 = vmatmul.mubr.msk.bf16.gmra.mrb[12].mxu1 %vm346_vm1, %v1153_v17 }
  0xe6   : > { %v1080_v19 = vpop.f32.mrb[0].mxu0 }
  0xe7   : > { %v442_v20 = vadd.f32 %v1080_v19, %v1264_v18  ;;  %v1096_v21 = vpop.f32.mrb[0].mxu1  ;;  %v433_v22 = vpop.f32.mrb[1].mxu0 }
  0xe8   : > { %v506_v23 = vadd.f32 %v1096_v21, %v1264_v18  ;;  %v434_v24 = vadd.f32 %v1264_v18, %v433_v22  ;;  %v497_v25 = vpop.f32.mrb[1].mxu1  ;;  %v1081_v26 = vpop.f32.mrb[2].mxu0 }
  0xe9   : > { %v498_v27 = vadd.f32 %v1264_v18, %v497_v25  ;;  %v445_v28 = vadd.f32 %v1081_v26, %v1264_v18  ;;  %v1097_v29 = vpop.f32.mrb[2].mxu1  ;;  %v436_v30 = vpop.f32.mrb[3].mxu0  ;;  %v562_v34 = vmax.f32 %v442_v20, 0.0 }
  0xea   : > { %v509_v31 = vadd.f32 %v1097_v29, %v1264_v18  ;;  %v437_v32 = vadd.f32 %v1264_v18, %v436_v30  ;;  %v500_v33 = vpop.f32.mrb[3].mxu1  ;;  %v578_v37 = vmax.f32 %v506_v23, 0.0  ;;  %v560_v38 = vmax.f32 %v434_v24, 0.0 }
  0xeb   : > { %v563_v35 = vmax.f32 %v445_v28, 0.0  ;;  %v501_v36 = vadd.f32 %v1264_v18, %v500_v33  ;;  %v576_v41 = vmax.f32 %v498_v27, 0.0 }
  0xec   : > { %v579_v39 = vmax.f32 %v509_v31, 0.0  ;;  %v561_v40 = vmax.f32 %v437_v32, 0.0 }
  0xed   : > { %v972_v42 = vpack.c.bf16 %v563_v35, %v562_v34  ;;  %v577_v43 = vmax.f32 %v501_v36, 0.0 }
  0xee   : > { %v1012_v44 = vpack.c.bf16 %v579_v39, %v578_v37  ;;  %v967_v45 = vpack.c.bf16 %v561_v40, %v560_v38  ;;  %v1084_v46 = vpop.f32.mrb[4].mxu0 }
  0xef   : > { %1044 = vst [vmem:[%s1279_s27 + $0x8] sm:$0xff] %v972_v42   ;;  %v1007_v47 = vpack.c.bf16 %v577_v43, %v576_v41  ;;  %v458_v48 = vadd.f32 %v1084_v46, %v1264_v18  ;;  %v1100_v49 = vpop.f32.mrb[4].mxu1  ;;  %v449_v50 = vpop.f32.mrb[5].mxu0 }
  0xf0   : > { %1052 = vst [vmem:[%s1279_s27 + $0x48] sm:$0xff] %v1012_v44   ;;  %968 = vst [vmem:[%s1279_s27] sm:$0xff] %v967_v45   ;;  %v522_v51 = vadd.f32 %v1100_v49, %v1264_v18  ;;  %v450_v52 = vadd.f32 %v1264_v18, %v449_v50  ;;  %v513_v53 = vpop.f32.mrb[5].mxu1  ;;  %v1085_v54 = vpop.f32.mrb[6].mxu0 }
  0xf1   : > { %1051 = vst [vmem:[%s1279_s27 + $0x40] sm:$0xff] %v1007_v47   ;;  %v514_v55 = vadd.f32 %v1264_v18, %v513_v53  ;;  %v461_v56 = vadd.f32 %v1085_v54, %v1264_v18  ;;  %v1101_v57 = vpop.f32.mrb[6].mxu1  ;;  %v452_v58 = vpop.f32.mrb[7].mxu0  ;;  %v566_v62 = vmax.f32 %v458_v48, 0.0 }
  0xf2   : > { %v525_v59 = vadd.f32 %v1101_v57, %v1264_v18  ;;  %v453_v60 = vadd.f32 %v1264_v18, %v452_v58  ;;  %v516_v61 = vpop.f32.mrb[7].mxu1  ;;  %v582_v1 = vmax.f32 %v522_v51, 0.0  ;;  %v564_v2 = vmax.f32 %v450_v52, 0.0 }
  0xf3   : > { %v567_v63 = vmax.f32 %v461_v56, 0.0  ;;  %v517_v0 = vadd.f32 %v1264_v18, %v516_v61  ;;  %v580_v5 = vmax.f32 %v514_v55, 0.0 }
  0xf4   : > { %v583_v3 = vmax.f32 %v525_v59, 0.0  ;;  %v565_v4 = vmax.f32 %v453_v60, 0.0 }
  0xf5   : > { %v982_v6 = vpack.c.bf16 %v567_v63, %v566_v62  ;;  %v581_v7 = vmax.f32 %v517_v0, 0.0 }
  0xf6   : > { %v1022_v8 = vpack.c.bf16 %v583_v3, %v582_v1  ;;  %v977_v9 = vpack.c.bf16 %v565_v4, %v564_v2  ;;  %v1088_v10 = vpop.f32.mrb[8].mxu0 }
  0xf7   : > { %1046 = vst [vmem:[%s1279_s27 + $0x18] sm:$0xff] %v982_v6   ;;  %v1017_v11 = vpack.c.bf16 %v581_v7, %v580_v5  ;;  %v474_v12 = vadd.f32 %v1088_v10, %v1264_v18  ;;  %v1104_v13 = vpop.f32.mrb[8].mxu1  ;;  %v465_v14 = vpop.f32.mrb[9].mxu0 }
  0xf8   : > { %1054 = vst [vmem:[%s1279_s27 + $0x58] sm:$0xff] %v1022_v8   ;;  %1045 = vst [vmem:[%s1279_s27 + $0x10] sm:$0xff] %v977_v9   ;;  %v538_v15 = vadd.f32 %v1104_v13, %v1264_v18  ;;  %v466_v16 = vadd.f32 %v1264_v18, %v465_v14  ;;  %v529_v17 = vpop.f32.mrb[9].mxu1  ;;  %v1089_v19 = vpop.f32.mrb[10].mxu0 }
  0xf9   : > { %1053 = vst [vmem:[%s1279_s27 + $0x50] sm:$0xff] %v1017_v11   ;;  %v530_v20 = vadd.f32 %v1264_v18, %v529_v17  ;;  %v477_v21 = vadd.f32 %v1089_v19, %v1264_v18  ;;  %v1105_v22 = vpop.f32.mrb[10].mxu1  ;;  %v468_v23 = vpop.f32.mrb[11].mxu0  ;;  %v570_v27 = vmax.f32 %v474_v12, 0.0 }
  0xfa   : > { %v541_v24 = vadd.f32 %v1105_v22, %v1264_v18  ;;  %v469_v25 = vadd.f32 %v1264_v18, %v468_v23  ;;  %v532_v26 = vpop.f32.mrb[11].mxu1  ;;  %v586_v30 = vmax.f32 %v538_v15, 0.0  ;;  %v568_v31 = vmax.f32 %v466_v16, 0.0 }
  0xfb   : > { %v571_v28 = vmax.f32 %v477_v21, 0.0  ;;  %v533_v29 = vadd.f32 %v1264_v18, %v532_v26  ;;  %v584_v34 = vmax.f32 %v530_v20, 0.0 }
  0xfc   : > { %v587_v32 = vmax.f32 %v541_v24, 0.0  ;;  %v569_v33 = vmax.f32 %v469_v25, 0.0 }
  0xfd   : > { %v992_v35 = vpack.c.bf16 %v571_v28, %v570_v27  ;;  %v585_v36 = vmax.f32 %v533_v29, 0.0 }
  0xfe   : > { %v1032_v37 = vpack.c.bf16 %v587_v32, %v586_v30  ;;  %v987_v38 = vpack.c.bf16 %v569_v33, %v568_v31  ;;  %v1092_v39 = vpop.f32.mrb[12].mxu0 }
  0xff   : > { %1048 = vst [vmem:[%s1279_s27 + $0x28] sm:$0xff] %v992_v35   ;;  %v1027_v40 = vpack.c.bf16 %v585_v36, %v584_v34  ;;  %v490_v41 = vadd.f32 %v1092_v39, %v1264_v18  ;;  %v1108_v42 = vpop.f32.mrb[12].mxu1  ;;  %v481_v43 = vpop.f32.mrb[13].mxu0 }
 0x100   : > { %1056 = vst [vmem:[%s1279_s27 + $0x68] sm:$0xff] %v1032_v37   ;;  %1047 = vst [vmem:[%s1279_s27 + $0x20] sm:$0xff] %v987_v38   ;;  %v554_v44 = vadd.f32 %v1108_v42, %v1264_v18  ;;  %v482_v45 = vadd.f32 %v1264_v18, %v481_v43  ;;  %v545_v46 = vpop.f32.mrb[13].mxu1  ;;  %v1093_v47 = vpop.f32.mrb[14].mxu0 }
 0x101   : > { %1055 = vst [vmem:[%s1279_s27 + $0x60] sm:$0xff] %v1027_v40   ;;  %v546_v48 = vadd.f32 %v1264_v18, %v545_v46  ;;  %v493_v49 = vadd.f32 %v1093_v47, %v1264_v18  ;;  %v1109_v50 = vpop.f32.mrb[14].mxu1  ;;  %v484_v51 = vpop.f32.mrb[15].mxu0  ;;  %v574_v55 = vmax.f32 %v490_v41, 0.0 }
 0x102   : > { %v557_v52 = vadd.f32 %v1109_v50, %v1264_v18  ;;  %v485_v53 = vadd.f32 %v1264_v18, %v484_v51  ;;  %v548_v54 = vpop.f32.mrb[15].mxu1  ;;  %v590_v58 = vmax.f32 %v554_v44, 0.0  ;;  %v572_v59 = vmax.f32 %v482_v45, 0.0 }
 0x103   : > { %v575_v56 = vmax.f32 %v493_v49, 0.0  ;;  %v549_v57 = vadd.f32 %v1264_v18, %v548_v54  ;;  %v588_v62 = vmax.f32 %v546_v48, 0.0 }
 0x104   : > { %v591_v60 = vmax.f32 %v557_v52, 0.0  ;;  %v573_v61 = vmax.f32 %v485_v53, 0.0 }
 0x105   : > { %v1002_v63 = vpack.c.bf16 %v575_v56, %v574_v55  ;;  %v589_v0 = vmax.f32 %v549_v57, 0.0 }
 0x106   : > { %v1042_v1 = vpack.c.bf16 %v591_v60, %v590_v58  ;;  %v997_v2 = vpack.c.bf16 %v573_v61, %v572_v59 }
 0x107   : > { %1050 = vst [vmem:[%s1279_s27 + $0x38] sm:$0xff] %v1002_v63   ;;  %v1037_v3 = vpack.c.bf16 %v589_v0, %v588_v62 }
 0x108   : > { %1058 = vst [vmem:[%s1279_s27 + $0x78] sm:$0xff] %v1042_v1   ;;  %1049 = vst [vmem:[%s1279_s27 + $0x30] sm:$0xff] %v997_v2  }
 0x109   : > { %1057 = vst [vmem:[%s1279_s27 + $0x70] sm:$0xff] %v1037_v3  }
 0x10a PF: > { %s13_s14 = sadd.s32 1, %s1176_s14   ;;  %s1334_s12 = smov %s1172_s13 }
 0x10b   : > { %p10_p5 = scmp.ge.s32.totalorder %s13_s14, 4   ;;  %s1335_s13 = smov %s1337_s15 }
 0x10d   :  { %12 = sbr.rel (!%p10_p5) target bundleno = 2 (0x2), region = 68 }

// kernel: resnext_block_forward.5
= control target key start
LH: loop header
LB: loop body
LE: loop exit
PB: predicated region body
PF: predicated region fallthrough
CT: control target
= control target key end

     0   :  { %s1116_s15 = smov 0   ;;  %s1118_s16 = smov 0   ;;  %s1303_s0 = inlined_call_operand.vmem [shape: bf16[512,128], index: 0, kind: input, shape index: {}]   ;;  %s1304_s1 = inlined_call_operand.vmem [shape: bf16[128,128], index: 1, kind: input, shape index: {}]   ;;  %s1305_s2 = inlined_call_operand.vmem [shape: f32[512,128], index: 2, kind: input, shape index: {}]   ;;  %s1306_s3 = inlined_call_operand.vmem [shape: f32[1,128], index: 3, kind: input, shape index: {}]   ;;  %s1307_s4 = inlined_call_operand.vmem [shape: f32[512,128], index: 4, kind: output, shape index: {}]  }
   0x1   :  { %s1120_s17 = smov 0  }
   0x2 LB: > { %s23_s18 = sadd.s32 1, %s1085_s16  ;;  %p897_p0 = scmp.ge.s32.totalorder %s1089_s17, 1  ;;  %s1089_s17 = sphi %s1120_s17, %s14_s17   ;;  %s1085_s16 = sphi %s1118_s16, %s1309_s16   ;;  %s1081_s15 = sphi %s1116_s15, %s1308_s15  }
   0x3   : > { %p24_p1 = scmp.ge.s32.totalorder %s23_s18, 2  ;;  %p210_p2 = scmp.lt.s32.totalorder %s1089_s17, 3 }
   0x5   : > { %s1311_s18 = smov (%p24_p1, %s23_s18), 0  ;;  %p211_p3 = pnand %p897_p0, %p210_p2 }
   0x6   : > { %v1043_v0 = vld [vmem:[%s1304_s1] sm:$0xff] (!%p211_p3)   ;;  %s898_s21 = sshll.u32 (!%p211_p3), %s1081_s15, 5  ;;  %v1044_v1 = vld [vmem:[%s1304_s1 + $0x8] sm:$0xff] (!%p211_p3)   ;;  %v1045_v2 = vld [vmem:[%s1304_s1 + $0x10] sm:$0xff] (!%p211_p3)  }
   0x7   : > { %214 = sbr.rel (%p211_p3) target bundleno = 285 (0x11d), region = 36  ;;  %p255_p4 = scmp.lt.s32.totalorder (!%p211_p3), %s898_s21, 63  ;;  %955 = vmatprep.subr.bf16.mxu0 (!%p211_p3), %v1043_v0  ;;  %1003 = vmatprep.subr.bf16.mxu1 (!%p211_p3), %v1043_v0  ;;  %v1046_v3 = vld [vmem:[%s1304_s1 + $0x18] sm:$0xff] (!%p211_p3)   ;;  %v1047_v6 = vld [vmem:[%s1304_s1 + $0x20] sm:$0xff] (!%p211_p3)   ;;  %v1048_v7 = vld [vmem:[%s1304_s1 + $0x28] sm:$0xff] (!%p211_p3)  }
   0x8   : > { %956 = vmatpush3.bf16.msra.mxu0 (!%p211_p3), %v1043_v0  ;;  %1011 = vmatpush3.bf16.msra.mxu1 (!%p211_p3), %v1043_v0  ;;  %v1049_v8 = vld [vmem:[%s1304_s1 + $0x30] sm:$0xff] (!%p211_p3)   ;;  %v1050_v9 = vld [vmem:[%s1304_s1 + $0x38] sm:$0xff] (!%p211_p3)   ;;  %v1195_v29 = vld [vmem:[%s1306_s3] ss:$0 sm:$0xff] (!%p211_p3) }
   0x9   : > { %957 = vmatprep.subr.bf16.mxu0 (!%p211_p3), %v1044_v1  ;;  %1004 = vmatprep.subr.bf16.mxu1 (!%p211_p3), %v1044_v1 }
   0xc   : > { %958 = vmatpush3.bf16.msra.mxu0 (!%p211_p3), %v1044_v1  ;;  %1012 = vmatpush3.bf16.msra.mxu1 (!%p211_p3), %v1044_v1 }
   0xd   : > { %959 = vmatprep.subr.bf16.mxu0 (!%p211_p3), %v1045_v2  ;;  %1005 = vmatprep.subr.bf16.mxu1 (!%p211_p3), %v1045_v2 }
   0xe   : > { %s1313_s21 = smov (!%p255_p4, %s898_s21), 63 }
   0xf   : > { %s899_s26 = sshll.u32 %s1313_s21, 2  ;;  %s901_s14 = sshll.u32 %s1313_s21, 3 }
  0x10   : > { %s1149_s29 = scalar_lea.vmem %s1303_s0, %s899_s26  ;;  %960 = vmatpush3.bf16.msra.mxu0 %v1045_v2  ;;  %1013 = vmatpush3.bf16.msra.mxu1 %v1045_v2  ;;  %s1186_s20 = scalar_lea.vmem %s1305_s2, %s901_s14 }
  0x11   : > { %v1051_v4 = vld [vmem:[%s1149_s29] sm:$0xff]   ;;  %961 = vmatprep.subr.bf16.mxu0 %v1046_v3  ;;  %1006 = vmatprep.subr.bf16.mxu1 %v1046_v3  ;;  %v1053_v10 = vld [vmem:[%s1149_s29 + $0x8] sm:$0xff]   ;;  %v1055_v12 = vld [vmem:[%s1149_s29 + $0x10] sm:$0xff]   ;;  %s1206_s25 = scalar_lea.vmem %s1307_s4, %s901_s14 }
  0x12   : > { %v1052_v5 = vld [vmem:[%s1149_s29 + $0x40] sm:$0xff]   ;;  %971 = vmatprep.mubr.bf16.mxu0 %v1051_v4  ;;  %v1054_v11 = vld [vmem:[%s1149_s29 + $0x48] sm:$0xff]   ;;  %v1056_v13 = vld [vmem:[%s1149_s29 + $0x50] sm:$0xff]  }
  0x13   : > { %987 = vmatprep.mubr.bf16.mxu1 %v1052_v5  ;;  %v1057_v14 = vld [vmem:[%s1149_s29 + $0x18] sm:$0xff]   ;;  %v1059_v16 = vld [vmem:[%s1149_s29 + $0x20] sm:$0xff]   ;;  %v1061_v18 = vld [vmem:[%s1149_s29 + $0x28] sm:$0xff]  }
  0x14   : > { %962 = vmatpush3.bf16.msra.mxu0 %v1046_v3  ;;  %1014 = vmatpush3.bf16.msra.mxu1 %v1046_v3  ;;  %v1058_v15 = vld [vmem:[%s1149_s29 + $0x58] sm:$0xff]   ;;  %v1060_v17 = vld [vmem:[%s1149_s29 + $0x60] sm:$0xff]   ;;  %v1062_v19 = vld [vmem:[%s1149_s29 + $0x68] sm:$0xff]  }
  0x15   : > { %963 = vmatprep.subr.bf16.mxu0 %v1047_v6  ;;  %1007 = vmatprep.subr.bf16.mxu1 %v1047_v6  ;;  %v1063_v20 = vld [vmem:[%s1149_s29 + $0x30] sm:$0xff]   ;;  %v1065_v22 = vld [vmem:[%s1149_s29 + $0x38] sm:$0xff]   ;;  %v334_v26 = vld [vmem:[%s1186_s20] sm:$0xff] }
  0x16   : > { %v1064_v21 = vld [vmem:[%s1149_s29 + $0x70] sm:$0xff]   ;;  %v1066_v23 = vld [vmem:[%s1149_s29 + $0x78] sm:$0xff]   ;;  %v350_v27 = vld [vmem:[%s1186_s20 + $0x80] sm:$0xff] }
  0x17   : > { %v336_v24 = vld [vmem:[%s1186_s20 + $0x10] sm:$0xff]  ;;  %v337_v31 = vld [vmem:[%s1186_s20 + $0x18] sm:$0xff]  ;;  %v335_v37 = vld [vmem:[%s1186_s20 + $0x8] sm:$0xff] }
  0x18   : > { %964 = vmatpush3.bf16.msra.mxu0 %v1047_v6  ;;  %1015 = vmatpush3.bf16.msra.mxu1 %v1047_v6  ;;  %v352_v25 = vld [vmem:[%s1186_s20 + $0x90] sm:$0xff]  ;;  %v353_v32 = vld [vmem:[%s1186_s20 + $0x98] sm:$0xff]  ;;  %v351_v38 = vld [vmem:[%s1186_s20 + $0x88] sm:$0xff] }
  0x19   : > { %965 = vmatprep.subr.bf16.mxu0 %v1048_v7  ;;  %1008 = vmatprep.subr.bf16.mxu1 %v1048_v7  ;;  %v340_v61 = vld [vmem:[%s1186_s20 + $0x30] sm:$0xff]  ;;  %v338_v1 = vld [vmem:[%s1186_s20 + $0x20] sm:$0xff] }
  0x1a   : > { %v356_v62 = vld [vmem:[%s1186_s20 + $0xb0] sm:$0xff]  ;;  %v354_v2 = vld [vmem:[%s1186_s20 + $0xa0] sm:$0xff] }
  0x1c   : > { %966 = vmatpush3.bf16.msra.mxu0 %v1048_v7  ;;  %1016 = vmatpush3.bf16.msra.mxu1 %v1048_v7  ;;  %v341_v7 = vld [vmem:[%s1186_s20 + $0x38] sm:$0xff] }
  0x1d   : > { %967 = vmatprep.subr.bf16.mxu0 %v1049_v8  ;;  %1009 = vmatprep.subr.bf16.mxu1 %v1049_v8 }
  0x20   : > { %968 = vmatpush3.bf16.msra.mxu0 %v1049_v8  ;;  %1017 = vmatpush3.bf16.msra.mxu1 %v1049_v8  ;;  %v357_v8 = vld [vmem:[%s1186_s20 + $0xb8] sm:$0xff] }
  0x21   : > { %969 = vmatprep.subr.bf16.mxu0 %v1050_v9  ;;  %1010 = vmatprep.subr.bf16.mxu1 %v1050_v9 }
  0x24   : > { %970 = vmatpush3.bf16.msra.mxu0 %v1050_v9  ;;  %1018 = vmatpush3.bf16.msra.mxu1 %v1050_v9 }
  0x27   : > { %972 = vmatmul.mubr.bf16.vlgmr.msra.gmra.mrb[0].mxu0 %v1053_v10  ;;  %988 = vmatmul.mubr.bf16.vlgmr.msra.gmra.mrb[0].mxu1 %v1054_v11 }
  0x28   : > { %975 = vmatprep.mubr.bf16.mxu0 %v1055_v12  ;;  %991 = vmatprep.mubr.bf16.mxu1 %v1056_v13  ;;  %v339_v13 = vld [vmem:[%s1186_s20 + $0x28] sm:$0xff] }
  0x2f   : > { %976 = vmatmul.mubr.bf16.gmra.mrb[4].mxu0 %v1057_v14  ;;  %992 = vmatmul.mubr.bf16.gmra.mrb[4].mxu1 %v1058_v15  ;;  %v355_v14 = vld [vmem:[%s1186_s20 + $0xa8] sm:$0xff] }
  0x30   : > { %979 = vmatprep.mubr.bf16.mxu0 %v1059_v16  ;;  %995 = vmatprep.mubr.bf16.mxu1 %v1060_v17 }
  0x37   : > { %980 = vmatmul.mubr.bf16.gmra.mrb[8].mxu0 %v1061_v18  ;;  %996 = vmatmul.mubr.bf16.gmra.mrb[8].mxu1 %v1062_v19 }
  0x38   : > { %983 = vmatprep.mubr.bf16.mxu0 %v1063_v20  ;;  %999 = vmatprep.mubr.bf16.mxu1 %v1064_v21 }
  0x3f   : > { %984 = vmatmul.mubr.bf16.gmra.mrb[12].mxu0 %v1065_v22  ;;  %1000 = vmatmul.mubr.bf16.gmra.mrb[12].mxu1 %v1066_v23 }
  0xfa   : > { %v973_v28 = vpop.f32.mrb[0].mxu0  ;;  %v989_v30 = vpop.f32.mrb[0].mxu1 }
  0xfb   : > { %v553_v33 = vadd.f32 %v973_v28, %v336_v24  ;;  %v617_v34 = vadd.f32 %v989_v30, %v352_v25  ;;  %v544_v35 = vpop.f32.mrb[1].mxu0  ;;  %v608_v36 = vpop.f32.mrb[1].mxu1 }
  0xfc   : > { %v545_v39 = vadd.f32 %v544_v35, %v334_v26  ;;  %v609_v40 = vadd.f32 %v608_v36, %v350_v27  ;;  %v974_v41 = vpop.f32.mrb[2].mxu0  ;;  %v990_v42 = vpop.f32.mrb[2].mxu1 }
  0xfd   : > { %v680_v43 = vadd.f32 %v1195_v29, %v553_v33  ;;  %v696_v44 = vadd.f32 %v1195_v29, %v617_v34  ;;  %v556_v45 = vadd.f32 %v974_v41, %v337_v31  ;;  %v620_v46 = vadd.f32 %v990_v42, %v353_v32  ;;  %v547_v47 = vpop.f32.mrb[3].mxu0  ;;  %v611_v48 = vpop.f32.mrb[3].mxu1  ;;  %v342_v42 = vld [vmem:[%s1186_s20 + $0x40] sm:$0xff] }
  0xfe   : > { %v678_v49 = vadd.f32 %v1195_v29, %v545_v39  ;;  %v694_v50 = vadd.f32 %v1195_v29, %v609_v40  ;;  %v548_v51 = vadd.f32 %v547_v47, %v335_v37  ;;  %v612_v52 = vadd.f32 %v611_v48, %v351_v38  ;;  %v344_v38 = vld [vmem:[%s1186_s20 + $0x50] sm:$0xff]  ;;  %v345_v48 = vld [vmem:[%s1186_s20 + $0x58] sm:$0xff] }
  0xff   : > { %v712_v53 = vmax.f32 %v680_v43, 0.0  ;;  %v728_v54 = vmax.f32 %v696_v44, 0.0  ;;  %v681_v55 = vadd.f32 %v1195_v29, %v556_v45  ;;  %v697_v56 = vadd.f32 %v1195_v29, %v620_v46  ;;  %v360_v39 = vld [vmem:[%s1186_s20 + $0xd0] sm:$0xff]  ;;  %v358_v43 = vld [vmem:[%s1186_s20 + $0xc0] sm:$0xff] }
 0x100   : > { %v710_v57 = vmax.f32 %v678_v49, 0.0  ;;  %v726_v58 = vmax.f32 %v694_v50, 0.0  ;;  %v679_v59 = vadd.f32 %v1195_v29, %v548_v51  ;;  %v695_v60 = vadd.f32 %v1195_v29, %v612_v52  ;;  %v361_v49 = vld [vmem:[%s1186_s20 + $0xd8] sm:$0xff] }
 0x101   : > { %744 = vst [vmem:[%s1206_s25 + $0x10] sm:$0xff] %v712_v53  ;;  %760 = vst [vmem:[%s1206_s25 + $0x90] sm:$0xff] %v728_v54  ;;  %v713_v63 = vmax.f32 %v681_v55, 0.0  ;;  %v729_v0 = vmax.f32 %v697_v56, 0.0  ;;  %v343_v54 = vld [vmem:[%s1186_s20 + $0x48] sm:$0xff] }
 0x102   : > { %742 = vst [vmem:[%s1206_s25] sm:$0xff] %v710_v57  ;;  %758 = vst [vmem:[%s1206_s25 + $0x80] sm:$0xff] %v726_v58  ;;  %v711_v3 = vmax.f32 %v679_v59, 0.0  ;;  %v727_v4 = vmax.f32 %v695_v60, 0.0  ;;  %v977_v5 = vpop.f32.mrb[4].mxu0  ;;  %v993_v6 = vpop.f32.mrb[4].mxu1  ;;  %v359_v55 = vld [vmem:[%s1186_s20 + $0xc8] sm:$0xff] }
 0x103   : > { %745 = vst [vmem:[%s1206_s25 + $0x18] sm:$0xff] %v713_v63  ;;  %761 = vst [vmem:[%s1206_s25 + $0x98] sm:$0xff] %v729_v0  ;;  %v569_v9 = vadd.f32 %v977_v5, %v340_v61  ;;  %v633_v10 = vadd.f32 %v993_v6, %v356_v62  ;;  %v560_v11 = vpop.f32.mrb[5].mxu0  ;;  %v624_v12 = vpop.f32.mrb[5].mxu1 }
 0x104   : > { %743 = vst [vmem:[%s1206_s25 + $0x8] sm:$0xff] %v711_v3  ;;  %759 = vst [vmem:[%s1206_s25 + $0x88] sm:$0xff] %v727_v4  ;;  %v561_v15 = vadd.f32 %v560_v11, %v338_v1  ;;  %v625_v16 = vadd.f32 %v624_v12, %v354_v2  ;;  %v978_v17 = vpop.f32.mrb[6].mxu0  ;;  %v994_v18 = vpop.f32.mrb[6].mxu1 }
 0x105   : > { %v684_v19 = vadd.f32 %v1195_v29, %v569_v9  ;;  %v700_v20 = vadd.f32 %v1195_v29, %v633_v10  ;;  %v572_v21 = vadd.f32 %v978_v17, %v341_v7  ;;  %v636_v22 = vadd.f32 %v994_v18, %v357_v8  ;;  %v563_v23 = vpop.f32.mrb[7].mxu0  ;;  %v627_v24 = vpop.f32.mrb[7].mxu1  ;;  %v346_v18 = vld [vmem:[%s1186_s20 + $0x60] sm:$0xff] }
 0x106   : > { %v682_v25 = vadd.f32 %v1195_v29, %v561_v15  ;;  %v698_v26 = vadd.f32 %v1195_v29, %v625_v16  ;;  %v564_v27 = vadd.f32 %v563_v23, %v339_v13  ;;  %v628_v28 = vadd.f32 %v627_v24, %v355_v14  ;;  %v348_v14 = vld [vmem:[%s1186_s20 + $0x70] sm:$0xff]  ;;  %v349_v24 = vld [vmem:[%s1186_s20 + $0x78] sm:$0xff] }
 0x107   : > { %v716_v30 = vmax.f32 %v684_v19, 0.0  ;;  %v732_v31 = vmax.f32 %v700_v20, 0.0  ;;  %v685_v32 = vadd.f32 %v1195_v29, %v572_v21  ;;  %v701_v33 = vadd.f32 %v1195_v29, %v636_v22  ;;  %v364_v15 = vld [vmem:[%s1186_s20 + $0xf0] sm:$0xff]  ;;  %v362_v19 = vld [vmem:[%s1186_s20 + $0xe0] sm:$0xff] }
 0x108   : > { %v714_v34 = vmax.f32 %v682_v25, 0.0  ;;  %v730_v35 = vmax.f32 %v698_v26, 0.0  ;;  %v683_v36 = vadd.f32 %v1195_v29, %v564_v27  ;;  %v699_v37 = vadd.f32 %v1195_v29, %v628_v28  ;;  %v365_v25 = vld [vmem:[%s1186_s20 + $0xf8] sm:$0xff] }
 0x109   : > { %748 = vst [vmem:[%s1206_s25 + $0x30] sm:$0xff] %v716_v30  ;;  %764 = vst [vmem:[%s1206_s25 + $0xb0] sm:$0xff] %v732_v31  ;;  %v717_v40 = vmax.f32 %v685_v32, 0.0  ;;  %v733_v41 = vmax.f32 %v701_v33, 0.0  ;;  %v347_v31 = vld [vmem:[%s1186_s20 + $0x68] sm:$0xff] }
 0x10a   : > { %746 = vst [vmem:[%s1206_s25 + $0x20] sm:$0xff] %v714_v34  ;;  %762 = vst [vmem:[%s1206_s25 + $0xa0] sm:$0xff] %v730_v35  ;;  %v715_v44 = vmax.f32 %v683_v36, 0.0  ;;  %v731_v45 = vmax.f32 %v699_v37, 0.0  ;;  %v981_v46 = vpop.f32.mrb[8].mxu0  ;;  %v997_v47 = vpop.f32.mrb[8].mxu1 }
 0x10b   : > { %749 = vst [vmem:[%s1206_s25 + $0x38] sm:$0xff] %v717_v40  ;;  %765 = vst [vmem:[%s1206_s25 + $0xb8] sm:$0xff] %v733_v41  ;;  %v585_v50 = vadd.f32 %v981_v46, %v344_v38  ;;  %v649_v51 = vadd.f32 %v997_v47, %v360_v39  ;;  %v576_v52 = vpop.f32.mrb[9].mxu0  ;;  %v640_v53 = vpop.f32.mrb[9].mxu1  ;;  %v363_v32 = vld [vmem:[%s1186_s20 + $0xe8] sm:$0xff] }
 0x10c   : > { %747 = vst [vmem:[%s1206_s25 + $0x28] sm:$0xff] %v715_v44  ;;  %763 = vst [vmem:[%s1206_s25 + $0xa8] sm:$0xff] %v731_v45  ;;  %v577_v56 = vadd.f32 %v576_v52, %v342_v42  ;;  %v641_v57 = vadd.f32 %v640_v53, %v358_v43  ;;  %v982_v58 = vpop.f32.mrb[10].mxu0  ;;  %v998_v59 = vpop.f32.mrb[10].mxu1 }
 0x10d   : > { %v688_v60 = vadd.f32 %v1195_v29, %v585_v50  ;;  %v704_v61 = vadd.f32 %v1195_v29, %v649_v51  ;;  %v588_v62 = vadd.f32 %v982_v58, %v345_v48  ;;  %v652_v63 = vadd.f32 %v998_v59, %v361_v49  ;;  %v579_v0 = vpop.f32.mrb[11].mxu0  ;;  %v643_v1 = vpop.f32.mrb[11].mxu1 }
 0x10e   : > { %v686_v2 = vadd.f32 %v1195_v29, %v577_v56  ;;  %v702_v3 = vadd.f32 %v1195_v29, %v641_v57  ;;  %v580_v4 = vadd.f32 %v579_v0, %v343_v54  ;;  %v644_v5 = vadd.f32 %v643_v1, %v359_v55 }
 0x10f   : > { %v720_v6 = vmax.f32 %v688_v60, 0.0  ;;  %v736_v7 = vmax.f32 %v704_v61, 0.0  ;;  %v689_v8 = vadd.f32 %v1195_v29, %v588_v62  ;;  %v705_v9 = vadd.f32 %v1195_v29, %v652_v63 }
 0x110   : > { %v718_v10 = vmax.f32 %v686_v2, 0.0  ;;  %v734_v11 = vmax.f32 %v702_v3, 0.0  ;;  %v687_v12 = vadd.f32 %v1195_v29, %v580_v4  ;;  %v703_v13 = vadd.f32 %v1195_v29, %v644_v5 }
 0x111   : > { %752 = vst [vmem:[%s1206_s25 + $0x50] sm:$0xff] %v720_v6  ;;  %768 = vst [vmem:[%s1206_s25 + $0xd0] sm:$0xff] %v736_v7  ;;  %v721_v16 = vmax.f32 %v689_v8, 0.0  ;;  %v737_v17 = vmax.f32 %v705_v9, 0.0 }
 0x112   : > { %750 = vst [vmem:[%s1206_s25 + $0x40] sm:$0xff] %v718_v10  ;;  %766 = vst [vmem:[%s1206_s25 + $0xc0] sm:$0xff] %v734_v11  ;;  %v719_v20 = vmax.f32 %v687_v12, 0.0  ;;  %v735_v21 = vmax.f32 %v703_v13, 0.0  ;;  %v985_v22 = vpop.f32.mrb[12].mxu0  ;;  %v1001_v23 = vpop.f32.mrb[12].mxu1 }
 0x113   : > { %753 = vst [vmem:[%s1206_s25 + $0x58] sm:$0xff] %v721_v16  ;;  %769 = vst [vmem:[%s1206_s25 + $0xd8] sm:$0xff] %v737_v17  ;;  %v601_v26 = vadd.f32 %v985_v22, %v348_v14  ;;  %v665_v27 = vadd.f32 %v1001_v23, %v364_v15  ;;  %v592_v28 = vpop.f32.mrb[13].mxu0  ;;  %v656_v30 = vpop.f32.mrb[13].mxu1 }
 0x114   : > { %751 = vst [vmem:[%s1206_s25 + $0x48] sm:$0xff] %v719_v20  ;;  %767 = vst [vmem:[%s1206_s25 + $0xc8] sm:$0xff] %v735_v21  ;;  %v593_v33 = vadd.f32 %v592_v28, %v346_v18  ;;  %v657_v34 = vadd.f32 %v656_v30, %v362_v19  ;;  %v986_v35 = vpop.f32.mrb[14].mxu0  ;;  %v1002_v36 = vpop.f32.mrb[14].mxu1 }
 0x115   : > { %v692_v37 = vadd.f32 %v1195_v29, %v601_v26  ;;  %v708_v38 = vadd.f32 %v1195_v29, %v665_v27  ;;  %v604_v39 = vadd.f32 %v986_v35, %v349_v24  ;;  %v668_v40 = vadd.f32 %v1002_v36, %v365_v25  ;;  %v595_v41 = vpop.f32.mrb[15].mxu0  ;;  %v659_v42 = vpop.f32.mrb[15].mxu1 }
 0x116   : > { %v690_v43 = vadd.f32 %v1195_v29, %v593_v33  ;;  %v706_v44 = vadd.f32 %v1195_v29, %v657_v34  ;;  %v596_v45 = vadd.f32 %v595_v41, %v347_v31  ;;  %v660_v46 = vadd.f32 %v659_v42, %v363_v32 }
 0x117   : > { %v724_v47 = vmax.f32 %v692_v37, 0.0  ;;  %v740_v48 = vmax.f32 %v708_v38, 0.0  ;;  %v693_v49 = vadd.f32 %v1195_v29, %v604_v39  ;;  %v709_v50 = vadd.f32 %v1195_v29, %v668_v40 }
 0x118   : > { %v722_v51 = vmax.f32 %v690_v43, 0.0  ;;  %v738_v52 = vmax.f32 %v706_v44, 0.0  ;;  %v691_v53 = vadd.f32 %v1195_v29, %v596_v45  ;;  %v707_v54 = vadd.f32 %v1195_v29, %v660_v46 }
 0x119   : > { %756 = vst [vmem:[%s1206_s25 + $0x70] sm:$0xff] %v724_v47  ;;  %772 = vst [vmem:[%s1206_s25 + $0xf0] sm:$0xff] %v740_v48  ;;  %v725_v55 = vmax.f32 %v693_v49, 0.0  ;;  %v741_v56 = vmax.f32 %v709_v50, 0.0 }
 0x11a   : > { %754 = vst [vmem:[%s1206_s25 + $0x60] sm:$0xff] %v722_v51  ;;  %770 = vst [vmem:[%s1206_s25 + $0xe0] sm:$0xff] %v738_v52  ;;  %v723_v57 = vmax.f32 %v691_v53, 0.0  ;;  %v739_v58 = vmax.f32 %v707_v54, 0.0 }
 0x11b   : > { %757 = vst [vmem:[%s1206_s25 + $0x78] sm:$0xff] %v725_v55  ;;  %773 = vst [vmem:[%s1206_s25 + $0xf8] sm:$0xff] %v741_v56 }
 0x11c   : > { %755 = vst [vmem:[%s1206_s25 + $0x68] sm:$0xff] %v723_v57  ;;  %771 = vst [vmem:[%s1206_s25 + $0xe8] sm:$0xff] %v739_v58 }
 0x11d PF: > { %s14_s17 = sadd.s32 1, %s1089_s17   ;;  %s1308_s15 = smov %s1085_s16 }
 0x11e   : > { %p11_p5 = scmp.ge.s32.totalorder %s14_s17, 4   ;;  %s1309_s16 = smov %s1311_s18 }
 0x120   :  { %13 = sbr.rel (!%p11_p5) target bundleno = 2 (0x2), region = 75 }

// kernel: resnext_block_forward.4
= control target key start
LH: loop header
LB: loop body
LE: loop exit
PB: predicated region body
PF: predicated region fallthrough
CT: control target
= control target key end

     0   :  { %s6627_s30 = smov 0   ;;  %s6629_s20 = smov 0   ;;  %s7171_s0 = inlined_call_operand.vmem [shape: bf16[512,128], index: 0, kind: input, shape index: {}]   ;;  %s7172_s1 = inlined_call_operand.vmem [shape: bf16[512,128], index: 1, kind: input, shape index: {}]   ;;  %s7173_s2 = inlined_call_operand.vmem [shape: bf16[512,128], index: 2, kind: input, shape index: {}]   ;;  %s7174_s3 = inlined_call_operand.vmem [shape: bf16[512,128], index: 3, kind: input, shape index: {}]   ;;  %s7175_s4 = inlined_call_operand.vmem [shape: bf16[512,128], index: 4, kind: input, shape index: {}]   ;;  %s7176_s5 = inlined_call_operand.vmem [shape: bf16[512,128], index: 5, kind: input, shape index: {}]   ;;  %s7177_s6 = inlined_call_operand.vmem [shape: bf16[512,128], index: 6, kind: input, shape index: {}]   ;;  %s7178_s7 = inlined_call_operand.vmem [shape: bf16[512,128], index: 7, kind: input, shape index: {}]   ;;  %s7179_s8 = inlined_call_operand.vmem [shape: bf16[512,128], index: 8, kind: input, shape index: {}]   ;;  %s7180_s9 = inlined_call_operand.vmem [shape: bf16[128,128], index: 9, kind: input, shape index: {}]   ;;  %s7181_s10 = inlined_call_operand.vmem [shape: bf16[128,128], index: 10, kind: input, shape index: {}]   ;;  %s7182_s11 = inlined_call_operand.vmem [shape: bf16[128,128], index: 11, kind: input, shape index: {}]   ;;  %s7183_s12 = inlined_call_operand.vmem [shape: bf16[128,128], index: 12, kind: input, shape index: {}]   ;;  %s7184_s13 = inlined_call_operand.vmem [shape: bf16[128,128], index: 13, kind: input, shape index: {}]   ;;  %s7185_s14 = inlined_call_operand.vmem [shape: bf16[128,128], index: 14, kind: input, shape index: {}]   ;;  %s7186_s15 = inlined_call_operand.vmem [shape: bf16[128,128], index: 15, kind: input, shape index: {}]   ;;  %s7187_s16 = inlined_call_operand.vmem [shape: bf16[128,128], index: 16, kind: input, shape index: {}]   ;;  %s7188_s17 = inlined_call_operand.vmem [shape: bf16[128,128], index: 17, kind: input, shape index: {}]   ;;  %s7189_s18 = inlined_call_operand.vmem [shape: f32[1,128], index: 18, kind: input, shape index: {}]   ;;  %s7190_s19 = inlined_call_operand.vmem [shape: bf16[512,128], index: 19, kind: output, shape index: {}]  }
   0x1   :  { %7191 = sst [smem:[#allocation3_spill]] %s7171_s0  ;;  %s6625_s0 = smov 0  }
   0x2   :  { %7192 = sst [smem:[#allocation4_spill]] %s7172_s1 }
   0x3   :  { %7193 = sst [smem:[#allocation5_spill]] %s7173_s2 }
   0x4   :  { %7194 = sst [smem:[#allocation6_spill]] %s7174_s3 }
   0x5 LB: > { %s38_s21 = sadd.s32 1, %s6519_s30  ;;  %p4934_p0 = scmp.ge.s32.totalorder %s6523_s20, 1  ;;  %s6523_s20 = sphi %s6629_s20, %s29_s20   ;;  %s6519_s30 = sphi %s6627_s30, %s7202_s30   ;;  %s6515_s0 = sphi %s6625_s0, %s7201_s0  }
   0x6   : > { %p39_p1 = scmp.ge.s32.totalorder %s38_s21, 2  ;;  %p729_p2 = scmp.lt.s32.totalorder %s6523_s20, 3 }
   0x8   : > { %s7204_s21 = smov (%p39_p1, %s38_s21), 0  ;;  %p730_p3 = pnand %p4934_p0, %p729_p2 }
   0x9   : > { %7195 = sst [smem:[#allocation2_spill]] %s7204_s21  ;;  %v6277_v0 = vld [vmem:[%s7181_s10] sm:$0xff] (!%p730_p3)   ;;  %s4935_s2 = sshll.u32 (!%p730_p3), %s6515_s0, 5  ;;  %v6279_v2 = vld [vmem:[%s7181_s10 + $0x8] sm:$0xff] (!%p730_p3)   ;;  %v6281_v4 = vld [vmem:[%s7181_s10 + $0x10] sm:$0xff] (!%p730_p3)  }
   0xa   : > { %733 = sbr.rel (%p730_p3) target bundleno = 547 (0x223), region = 96  ;;  %v6278_v1 = vld [vmem:[%s7184_s13] sm:$0xff] (!%p730_p3)   ;;  %5549 = vmatprep.subr.bf16.mxu1 (!%p730_p3), %v6277_v0  ;;  %p868_p4 = scmp.lt.s32.totalorder (!%p730_p3), %s4935_s2, 63  ;;  %v6280_v3 = vld [vmem:[%s7184_s13 + $0x8] sm:$0xff] (!%p730_p3)   ;;  %v6282_v5 = vld [vmem:[%s7184_s13 + $0x10] sm:$0xff] (!%p730_p3)  }
   0xb   : > { %5741 = vmatprep.subr.bf16.mxu0 (!%p730_p3), %v6278_v1  ;;  %5550 = vmatpush3.bf16.msra.mxu1 (!%p730_p3), %v6277_v0  ;;  %v6283_v6 = vld [vmem:[%s7181_s10 + $0x18] sm:$0xff] (!%p730_p3)   ;;  %v6285_v8 = vld [vmem:[%s7181_s10 + $0x20] sm:$0xff] (!%p730_p3)   ;;  %s7196_s22 = sld [smem:[#allocation4_spill]] (!%p730_p3)  ;;  %v6287_v10 = vld [vmem:[%s7181_s10 + $0x28] sm:$0xff] (!%p730_p3)   ;;  %s7197_s29 = sld [smem:[#allocation3_spill]] (!%p730_p3) }
   0xc   : > { %5742 = vmatpush3.bf16.msra.mxu0 (!%p730_p3), %v6278_v1  ;;  %5551 = vmatprep.subr.bf16.mxu1 (!%p730_p3), %v6279_v2  ;;  %v6284_v7 = vld [vmem:[%s7184_s13 + $0x18] sm:$0xff] (!%p730_p3)   ;;  %v6286_v9 = vld [vmem:[%s7184_s13 + $0x20] sm:$0xff] (!%p730_p3)   ;;  %v6288_v11 = vld [vmem:[%s7184_s13 + $0x28] sm:$0xff] (!%p730_p3)   ;;  %s7198_s28 = sld [smem:[#allocation5_spill]] (!%p730_p3) }
   0xd   : > { %5743 = vmatprep.subr.bf16.mxu0 (!%p730_p3), %v6280_v3  ;;  %v6289_v14 = vld [vmem:[%s7181_s10 + $0x30] sm:$0xff] (!%p730_p3)   ;;  %v6291_v16 = vld [vmem:[%s7181_s10 + $0x38] sm:$0xff] (!%p730_p3)   ;;  %v6296_v19 = vld [vmem:[%s7180_s9] sm:$0xff] (!%p730_p3)  }
   0xe   : > { %v6290_v15 = vld [vmem:[%s7184_s13 + $0x30] sm:$0xff] (!%p730_p3)   ;;  %v6292_v17 = vld [vmem:[%s7184_s13 + $0x38] sm:$0xff] (!%p730_p3)   ;;  %v6298_v20 = vld [vmem:[%s7185_s14] sm:$0xff] (!%p730_p3)  }
   0xf   : > { %5552 = vmatpush3.bf16.msra.mxu1 (!%p730_p3), %v6279_v2  ;;  %v6299_v22 = vld [vmem:[%s7185_s14 + $0x8] sm:$0xff] (!%p730_p3)   ;;  %v6310_v27 = vld [vmem:[%s7180_s9 + $0x10] sm:$0xff] (!%p730_p3)   ;;  %v6306_v32 = vld [vmem:[%s7185_s14 + $0x18] sm:$0xff] (!%p730_p3)  }
  0x10   : > { %5744 = vmatpush3.bf16.msra.mxu0 (!%p730_p3), %v6280_v3  ;;  %5553 = vmatprep.subr.bf16.mxu1 (!%p730_p3), %v6281_v4  ;;  %v6303_v25 = vld [vmem:[%s7180_s9 + $0x8] sm:$0xff] (!%p730_p3)   ;;  %v6305_v28 = vld [vmem:[%s7185_s14 + $0x10] sm:$0xff] (!%p730_p3)   ;;  %v6317_v33 = vld [vmem:[%s7180_s9 + $0x18] sm:$0xff] (!%p730_p3)  }
  0x11   : > { %s7206_s2 = smov (!%p868_p4, %s4935_s2), 63  ;;  %5745 = vmatprep.subr.bf16.mxu0 %v6282_v5  ;;  %v6312_v36 = vld [vmem:[%s7185_s14 + $0x20] sm:$0xff]   ;;  %v6313_v40 = vld [vmem:[%s7185_s14 + $0x28] sm:$0xff]   ;;  %v6319_v42 = vld [vmem:[%s7185_s14 + $0x30] sm:$0xff]  }
  0x12   : > { %s6667_s3 = sshll.u32 %s7206_s2, 2  ;;  %v6324_v38 = vld [vmem:[%s7180_s9 + $0x20] sm:$0xff]   ;;  %v6330_v43 = vld [vmem:[%s7180_s9 + $0x28] sm:$0xff]   ;;  %v6320_v47 = vld [vmem:[%s7185_s14 + $0x38] sm:$0xff]  }
  0x13   : > { %5554 = vmatpush3.bf16.msra.mxu1 %v6281_v4  ;;  %s6679_s23 = scalar_lea.vmem %s7196_s22, %s6667_s3  ;;  %s6688_s26 = scalar_lea.vmem %s7175_s4, %s6667_s3  ;;  %v6336_v48 = vld [vmem:[%s7180_s9 + $0x30] sm:$0xff]   ;;  %v6326_v51 = vld [vmem:[%s7186_s15] sm:$0xff]   ;;  %v6332_v54 = vld [vmem:[%s7186_s15 + $0x8] sm:$0xff]  }
  0x14   : > { %5746 = vmatpush3.bf16.msra.mxu0 %v6282_v5  ;;  %5555 = vmatprep.subr.bf16.mxu1 %v6283_v6  ;;  %v6293_v12 = vld [vmem:[%s6679_s23] sm:$0xff]   ;;  %v6295_v18 = vld [vmem:[%s6679_s23 + $0x8] sm:$0xff]   ;;  %v6300_v23 = vld [vmem:[%s6679_s23 + $0x10] sm:$0xff]   ;;  %s6744_s24 = scalar_lea.vmem %s7176_s5, %s6667_s3  ;;  %s6791_s0 = scalar_lea.vmem %s7197_s29, %s6667_s3 }
  0x15   : > { %5747 = vmatprep.subr.bf16.mxu0 %v6284_v7  ;;  %v6294_v13 = vld [vmem:[%s6688_s26] sm:$0xff]   ;;  %5565 = vmatprep.mubr.bf16.mxu1 %v6293_v12  ;;  %v6297_v21 = vld [vmem:[%s6688_s26 + $0x8] sm:$0xff]   ;;  %v6301_v24 = vld [vmem:[%s6688_s26 + $0x10] sm:$0xff]   ;;  %s6831_s29 = scalar_lea.vmem %s7177_s6, %s6667_s3  ;;  %s6866_s21 = scalar_lea.vmem %s7198_s28, %s6667_s3 }
  0x16   : > { %5757 = vmatprep.mubr.bf16.mxu0 %v6294_v13  ;;  %v6302_v26 = vld [vmem:[%s6679_s23 + $0x18] sm:$0xff]   ;;  %v6307_v30 = vld [vmem:[%s6679_s23 + $0x20] sm:$0xff]   ;;  %v6309_v34 = vld [vmem:[%s6679_s23 + $0x28] sm:$0xff]   ;;  %s6978_s27 = scalar_lea.vmem %s7179_s8, %s6667_s3 }
  0x17   : > { %5556 = vmatpush3.bf16.msra.mxu1 %v6283_v6  ;;  %v6304_v29 = vld [vmem:[%s6688_s26 + $0x18] sm:$0xff]   ;;  %v6308_v31 = vld [vmem:[%s6688_s26 + $0x20] sm:$0xff]   ;;  %v6311_v35 = vld [vmem:[%s6688_s26 + $0x28] sm:$0xff]  }
  0x18   : > { %5748 = vmatpush3.bf16.msra.mxu0 %v6284_v7  ;;  %5557 = vmatprep.subr.bf16.mxu1 %v6285_v8  ;;  %v6314_v37 = vld [vmem:[%s6679_s23 + $0x30] sm:$0xff]   ;;  %v6316_v41 = vld [vmem:[%s6679_s23 + $0x38] sm:$0xff]   ;;  %v6321_v45 = vld [vmem:[%s6679_s23 + $0x40] sm:$0xff]  }
  0x19   : > { %5749 = vmatprep.subr.bf16.mxu0 %v6286_v9  ;;  %v6315_v39 = vld [vmem:[%s6688_s26 + $0x30] sm:$0xff]   ;;  %v6318_v44 = vld [vmem:[%s6688_s26 + $0x38] sm:$0xff]   ;;  %v6322_v46 = vld [vmem:[%s6744_s24] sm:$0xff]  }
  0x1a   : > { %v6323_v49 = vld [vmem:[%s6679_s23 + $0x48] sm:$0xff]   ;;  %v6327_v52 = vld [vmem:[%s6679_s23 + $0x50] sm:$0xff]   ;;  %v6342_v55 = vld [vmem:[%s7180_s9 + $0x38] sm:$0xff]  }
  0x1b   : > { %5558 = vmatpush3.bf16.msra.mxu1 %v6285_v8  ;;  %v6325_v50 = vld [vmem:[%s6744_s24 + $0x8] sm:$0xff]   ;;  %v6328_v53 = vld [vmem:[%s6744_s24 + $0x10] sm:$0xff]   ;;  %v6329_v56 = vld [vmem:[%s6679_s23 + $0x58] sm:$0xff]  }
  0x1c   : > { %5750 = vmatpush3.bf16.msra.mxu0 %v6286_v9  ;;  %5559 = vmatprep.subr.bf16.mxu1 %v6287_v10  ;;  %v6331_v57 = vld [vmem:[%s6744_s24 + $0x18] sm:$0xff]   ;;  %v6338_v58 = vld [vmem:[%s7186_s15 + $0x10] sm:$0xff]   ;;  %v6333_v59 = vld [vmem:[%s6679_s23 + $0x60] sm:$0xff]  }
  0x1d   : > { %5751 = vmatprep.subr.bf16.mxu0 %v6288_v11  ;;  %v6348_v60 = vld [vmem:[%s7182_s11] sm:$0xff]   ;;  %v6344_v62 = vld [vmem:[%s7186_s15 + $0x18] sm:$0xff]   ;;  %v6335_v63 = vld [vmem:[%s6679_s23 + $0x68] sm:$0xff]  }
  0x1e   : > { %v6334_v61 = vld [vmem:[%s6744_s24 + $0x20] sm:$0xff]   ;;  %v6337_v1 = vld [vmem:[%s6744_s24 + $0x28] sm:$0xff]   ;;  %v6339_v2 = vld [vmem:[%s6679_s23 + $0x70] sm:$0xff]  }
  0x1f   : > { %5560 = vmatpush3.bf16.msra.mxu1 %v6287_v10  ;;  %v6350_v0 = vld [vmem:[%s7186_s15 + $0x20] sm:$0xff]   ;;  %v6340_v3 = vld [vmem:[%s6744_s24 + $0x30] sm:$0xff]   ;;  %v6356_v4 = vld [vmem:[%s7186_s15 + $0x28] sm:$0xff]  }
  0x20   : > { %5752 = vmatpush3.bf16.msra.mxu0 %v6288_v11  ;;  %5561 = vmatprep.subr.bf16.mxu1 %v6289_v14  ;;  %v6341_v5 = vld [vmem:[%s6679_s23 + $0x78] sm:$0xff]   ;;  %v6362_v6 = vld [vmem:[%s7186_s15 + $0x30] sm:$0xff]   ;;  %v6345_v8 = vld [vmem:[%s6791_s0] sm:$0xff]   ;;  %s7199_s23 = sld [smem:[#allocation6_spill]] }
  0x21   : > { %5753 = vmatprep.subr.bf16.mxu0 %v6290_v15  ;;  %v6343_v7 = vld [vmem:[%s6744_s24 + $0x38] sm:$0xff]   ;;  %v6346_v9 = vld [vmem:[%s6744_s24 + $0x40] sm:$0xff]   ;;  %v6347_v11 = vld [vmem:[%s6791_s0 + $0x8] sm:$0xff]  }
  0x22   : > { %v6368_v10 = vld [vmem:[%s7186_s15 + $0x38] sm:$0xff]   ;;  %v6349_v12 = vld [vmem:[%s6744_s24 + $0x48] sm:$0xff]   ;;  %v6351_v13 = vld [vmem:[%s6791_s0 + $0x10] sm:$0xff]  }
  0x23   : > { %5562 = vmatpush3.bf16.msra.mxu1 %v6289_v14  ;;  %v6352_v14 = vld [vmem:[%s6744_s24 + $0x50] sm:$0xff]  }
  0x24   : > { %5754 = vmatpush3.bf16.msra.mxu0 %v6290_v15  ;;  %5563 = vmatprep.subr.bf16.mxu1 %v6291_v16  ;;  %v6354_v15 = vld [vmem:[%s7182_s11 + $0x8] sm:$0xff]  }
  0x25   : > { %5755 = vmatprep.subr.bf16.mxu0 %v6292_v17 }
  0x26   : > { %s6945_s28 = scalar_lea.vmem %s7199_s23, %s6667_s3 }
  0x27   : > { %5564 = vmatpush3.bf16.msra.mxu1 %v6291_v16  ;;  %v6374_v16 = vld [vmem:[%s7187_s16] sm:$0xff]  }
  0x28   : > { %5756 = vmatpush3.bf16.msra.mxu0 %v6292_v17  ;;  %5597 = vmatprep.subr.bf16.mxu1 %v6296_v19  ;;  %v6360_v17 = vld [vmem:[%s7182_s11 + $0x10] sm:$0xff]  }
  0x29   : > { %5789 = vmatprep.subr.bf16.mxu0 %v6298_v20 }
  0x2a   : > { %5566 = vmatmul.mubr.bf16.vlgmr.msra.gmra.mrb[0].mxu1 %v6295_v18  ;;  %v6353_v18 = vld [vmem:[%s6791_s0 + $0x18] sm:$0xff]  }
  0x2b   : > { %5758 = vmatmul.mubr.bf16.vlgmr.msra.gmra.mrb[0].mxu0 %v6297_v21  ;;  %5598 = vmatpush3.bf16.msra.mxu1 %v6296_v19  ;;  %v6355_v19 = vld [vmem:[%s6744_s24 + $0x58] sm:$0xff]   ;;  %v6358_v21 = vld [vmem:[%s6744_s24 + $0x60] sm:$0xff]  }
  0x2c   : > { %5790 = vmatpush3.bf16.msra.mxu0 %v6298_v20  ;;  %5569 = vmatprep.mubr.bf16.mxu1 %v6300_v23  ;;  %v6357_v20 = vld [vmem:[%s6791_s0 + $0x20] sm:$0xff]   ;;  %v6359_v23 = vld [vmem:[%s6791_s0 + $0x28] sm:$0xff]  }
  0x2d   : > { %5791 = vmatprep.subr.bf16.mxu0 %v6299_v22  ;;  %5761 = vmatprep.mubr.bf16.mxu0 %v6301_v24  ;;  %v6372_v24 = vld [vmem:[%s7182_s11 + $0x20] sm:$0xff]  }
  0x2e   : > { %5599 = vmatprep.subr.bf16.mxu1 %v6303_v25 }
  0x2f   : > { %5600 = vmatpush3.bf16.msra.mxu1 %v6303_v25  ;;  %v6361_v25 = vld [vmem:[%s6744_s24 + $0x68] sm:$0xff]  }
  0x30   : > { %5792 = vmatpush3.bf16.msra.mxu0 %v6299_v22  ;;  %5601 = vmatprep.subr.bf16.mxu1 %v6310_v27  ;;  %v6366_v22 = vld [vmem:[%s7182_s11 + $0x18] sm:$0xff]  }
  0x31   : > { %5793 = vmatprep.subr.bf16.mxu0 %v6305_v28 }
  0x32   : > { %5570 = vmatmul.mubr.bf16.gmra.mrb[4].mxu1 %v6302_v26  ;;  %v6363_v26 = vld [vmem:[%s6791_s0 + $0x30] sm:$0xff]  }
  0x33   : > { %5762 = vmatmul.mubr.bf16.gmra.mrb[4].mxu0 %v6304_v29  ;;  %5573 = vmatprep.mubr.bf16.mxu1 %v6307_v30  ;;  %v6365_v29 = vld [vmem:[%s6791_s0 + $0x38] sm:$0xff]   ;;  %v6384_v30 = vld [vmem:[%s7182_s11 + $0x30] sm:$0xff]  }
  0x34   : > { %5794 = vmatpush3.bf16.msra.mxu0 %v6305_v28  ;;  %5765 = vmatprep.mubr.bf16.mxu0 %v6308_v31  ;;  %v6378_v28 = vld [vmem:[%s7182_s11 + $0x28] sm:$0xff]   ;;  %v6367_v31 = vld [vmem:[%s6744_s24 + $0x78] sm:$0xff]  }
  0x35   : > { %5795 = vmatprep.subr.bf16.mxu0 %v6306_v32  ;;  %5602 = vmatpush3.bf16.msra.mxu1 %v6310_v27  ;;  %v6364_v27 = vld [vmem:[%s6744_s24 + $0x70] sm:$0xff]   ;;  %s6906_s24 = scalar_lea.vmem %s7178_s7, %s6667_s3 }
  0x36   : > { %5603 = vmatprep.subr.bf16.mxu1 %v6317_v33 }
  0x38   : > { %5796 = vmatpush3.bf16.msra.mxu0 %v6306_v32  ;;  %v6369_v32 = vld [vmem:[%s6791_s0 + $0x40] sm:$0xff]  }
  0x39   : > { %5797 = vmatprep.subr.bf16.mxu0 %v6312_v36  ;;  %5604 = vmatpush3.bf16.msra.mxu1 %v6317_v33  ;;  %v6370_v33 = vld [vmem:[%s6831_s29] sm:$0xff]  }
  0x3a   : > { %5574 = vmatmul.mubr.bf16.gmra.mrb[8].mxu1 %v6309_v34  ;;  %5605 = vmatprep.subr.bf16.mxu1 %v6324_v38  ;;  %v6390_v34 = vld [vmem:[%s7182_s11 + $0x38] sm:$0xff]  }
  0x3b   : > { %5766 = vmatmul.mubr.bf16.gmra.mrb[8].mxu0 %v6311_v35  ;;  %5577 = vmatprep.mubr.bf16.mxu1 %v6314_v37  ;;  %v6371_v35 = vld [vmem:[%s6791_s0 + $0x48] sm:$0xff]  }
  0x3c   : > { %5798 = vmatpush3.bf16.msra.mxu0 %v6312_v36  ;;  %5769 = vmatprep.mubr.bf16.mxu0 %v6315_v39  ;;  %v6882_v36 = vld [vmem:[%s7183_s12] sm:$0xff]   ;;  %v6373_v37 = vld [vmem:[%s6831_s29 + $0x8] sm:$0xff]   ;;  %v6376_v39 = vld [vmem:[%s6831_s29 + $0x10] sm:$0xff]  }
  0x3d   : > { %5799 = vmatprep.subr.bf16.mxu0 %v6313_v40  ;;  %5606 = vmatpush3.bf16.msra.mxu1 %v6324_v38  ;;  %v6375_v38 = vld [vmem:[%s6791_s0 + $0x50] sm:$0xff]  }
  0x3e   : > { %5607 = vmatprep.subr.bf16.mxu1 %v6330_v43 }
  0x40   : > { %5800 = vmatpush3.bf16.msra.mxu0 %v6313_v40  ;;  %v6380_v40 = vld [vmem:[%s7187_s16 + $0x8] sm:$0xff]  }
  0x41   : > { %5801 = vmatprep.subr.bf16.mxu0 %v6319_v42  ;;  %5608 = vmatpush3.bf16.msra.mxu1 %v6330_v43  ;;  %v6379_v43 = vld [vmem:[%s6831_s29 + $0x18] sm:$0xff]  }
  0x42   : > { %5578 = vmatmul.mubr.bf16.gmra.mrb[12].mxu1 %v6316_v41  ;;  %5609 = vmatprep.subr.bf16.mxu1 %v6336_v48  ;;  %v6377_v41 = vld [vmem:[%s6791_s0 + $0x58] sm:$0xff]  }
  0x43   : > { %5770 = vmatmul.mubr.bf16.gmra.mrb[12].mxu0 %v6318_v44  ;;  %5581 = vmatprep.mubr.bf16.mxu1 %v6321_v45  ;;  %v6381_v44 = vld [vmem:[%s6791_s0 + $0x60] sm:$0xff]  }
  0x44   : > { %5802 = vmatpush3.bf16.msra.mxu0 %v6319_v42  ;;  %5805 = vmatprep.mubr.bf16.mxu0 %v6322_v46  ;;  %v6386_v42 = vld [vmem:[%s7187_s16 + $0x10] sm:$0xff]   ;;  %v6382_v45 = vld [vmem:[%s6831_s29 + $0x20] sm:$0xff]   ;;  %v6392_v46 = vld [vmem:[%s7187_s16 + $0x18] sm:$0xff]  }
  0x45   : > { %5803 = vmatprep.subr.bf16.mxu0 %v6320_v47  ;;  %5610 = vmatpush3.bf16.msra.mxu1 %v6336_v48  ;;  %v6398_v48 = vld [vmem:[%s7187_s16 + $0x20] sm:$0xff]  }
  0x46   : > { %5611 = vmatprep.subr.bf16.mxu1 %v6342_v55 }
  0x48   : > { %5804 = vmatpush3.bf16.msra.mxu0 %v6320_v47  ;;  %v6383_v47 = vld [vmem:[%s6791_s0 + $0x68] sm:$0xff]  }
  0x49   : > { %5837 = vmatprep.subr.bf16.mxu0 %v6326_v51  ;;  %5612 = vmatpush3.bf16.msra.mxu1 %v6342_v55  ;;  %v6391_v55 = vld [vmem:[%s6831_s29 + $0x38] sm:$0xff]  }
  0x4a   : > { %5582 = vmatmul.mubr.bf16.gmra.mrb[16].mxu1 %v6323_v49  ;;  %5645 = vmatprep.subr.bf16.mxu1 %v6348_v60  ;;  %v6385_v49 = vld [vmem:[%s6831_s29 + $0x28] sm:$0xff]  }
  0x4b   : > { %5806 = vmatmul.mubr.bf16.vlgmr.msra.gmra.mrb[0].mxu0 %v6325_v50  ;;  %5585 = vmatprep.mubr.bf16.mxu1 %v6327_v52  ;;  %v6387_v50 = vld [vmem:[%s6791_s0 + $0x70] sm:$0xff]   ;;  %v6404_v52 = vld [vmem:[%s7187_s16 + $0x28] sm:$0xff]  }
  0x4c   : > { %5838 = vmatpush3.bf16.msra.mxu0 %v6326_v51  ;;  %5809 = vmatprep.mubr.bf16.mxu0 %v6328_v53  ;;  %v6388_v51 = vld [vmem:[%s6831_s29 + $0x30] sm:$0xff]   ;;  %v6389_v53 = vld [vmem:[%s6791_s0 + $0x78] sm:$0xff]  }
  0x4d   : > { %5839 = vmatprep.subr.bf16.mxu0 %v6332_v54 }
  0x50   : > { %5840 = vmatpush3.bf16.msra.mxu0 %v6332_v54  ;;  %v6410_v54 = vld [vmem:[%s7187_s16 + $0x30] sm:$0xff]  }
  0x51   : > { %5841 = vmatprep.subr.bf16.mxu0 %v6338_v58 }
  0x52   : > { %5586 = vmatmul.mubr.bf16.gmra.mrb[20].mxu1 %v6329_v56  ;;  %v6393_v56 = vld [vmem:[%s6866_s21] sm:$0xff]  }
  0x53   : > { %5810 = vmatmul.mubr.bf16.gmra.mrb[4].mxu0 %v6331_v57  ;;  %5589 = vmatprep.mubr.bf16.mxu1 %v6333_v59  ;;  %v6394_v57 = vld [vmem:[%s6831_s29 + $0x40] sm:$0xff]   ;;  %v6395_v59 = vld [vmem:[%s6866_s21 + $0x8] sm:$0xff]  }
  0x54   : > { %5813 = vmatprep.mubr.bf16.mxu0 %v6334_v61  ;;  %5842 = vmatpush3.bf16.msra.mxu0 %v6338_v58  ;;  %v6416_v58 = vld [vmem:[%s7187_s16 + $0x38] sm:$0xff]   ;;  %v6397_v61 = vld [vmem:[%s6831_s29 + $0x48] sm:$0xff]  }
  0x55   : > { %5843 = vmatprep.subr.bf16.mxu0 %v6344_v62 }
  0x58   : > { %5844 = vmatpush3.bf16.msra.mxu0 %v6344_v62  ;;  %v6399_v62 = vld [vmem:[%s6866_s21 + $0x10] sm:$0xff]  }
  0x59   : > { %5845 = vmatprep.subr.bf16.mxu0 %v6350_v0 }
  0x5a   : > { %5590 = vmatmul.mubr.bf16.gmra.mrb[24].mxu1 %v6335_v63  ;;  %v6400_v63 = vld [vmem:[%s6831_s29 + $0x50] sm:$0xff]  }
  0x5b   : > { %5814 = vmatmul.mubr.bf16.gmra.mrb[8].mxu0 %v6337_v1  ;;  %5593 = vmatprep.mubr.bf16.mxu1 %v6339_v2  ;;  %v6408_v1 = vld [vmem:[%s7183_s12 + $0x10] sm:$0xff]   ;;  %v6401_v2 = vld [vmem:[%s6866_s21 + $0x18] sm:$0xff]  }
  0x5c   : > { %5817 = vmatprep.mubr.bf16.mxu0 %v6340_v3  ;;  %5846 = vmatpush3.bf16.msra.mxu0 %v6350_v0  ;;  %v6402_v0 = vld [vmem:[%s7183_s12 + $0x8] sm:$0xff]   ;;  %v6403_v3 = vld [vmem:[%s6831_s29 + $0x58] sm:$0xff]  }
  0x5d   : > { %5847 = vmatprep.subr.bf16.mxu0 %v6356_v4 }
  0x60   : > { %5848 = vmatpush3.bf16.msra.mxu0 %v6356_v4  ;;  %v6405_v4 = vld [vmem:[%s6866_s21 + $0x20] sm:$0xff]  }
  0x61   : > { %5849 = vmatprep.subr.bf16.mxu0 %v6362_v6 }
  0x62   : > { %5594 = vmatmul.mubr.bf16.gmra.mrb[28].mxu1 %v6341_v5  ;;  %v6406_v5 = vld [vmem:[%s6831_s29 + $0x60] sm:$0xff]  }
  0x63   : > { %5818 = vmatmul.mubr.bf16.gmra.mrb[12].mxu0 %v6343_v7  ;;  %5613 = vmatprep.mubr.bf16.mxu1 %v6345_v8  ;;  %v6407_v7 = vld [vmem:[%s6866_s21 + $0x28] sm:$0xff]   ;;  %v6420_v8 = vld [vmem:[%s7183_s12 + $0x20] sm:$0xff]  }
  0x64   : > { %5821 = vmatprep.mubr.bf16.mxu0 %v6346_v9  ;;  %5850 = vmatpush3.bf16.msra.mxu0 %v6362_v6  ;;  %v6414_v6 = vld [vmem:[%s7183_s12 + $0x18] sm:$0xff]   ;;  %v6409_v9 = vld [vmem:[%s6831_s29 + $0x68] sm:$0xff]  }
  0x65   : > { %5851 = vmatprep.subr.bf16.mxu0 %v6368_v10 }
  0x68   : > { %5852 = vmatpush3.bf16.msra.mxu0 %v6368_v10  ;;  %v6411_v10 = vld [vmem:[%s6866_s21 + $0x30] sm:$0xff]  }
  0x69   : > { %5885 = vmatprep.subr.bf16.mxu0 %v6374_v16 }
  0x6a   : > { %5614 = vmatmul.mubr.bf16.vlgmr.msra.gmra.mrb[0].mxu1 %v6347_v11  ;;  %v6412_v11 = vld [vmem:[%s6831_s29 + $0x70] sm:$0xff]  }
  0x6b   : > { %5822 = vmatmul.mubr.bf16.gmra.mrb[16].mxu0 %v6349_v12  ;;  %5646 = vmatpush3.bf16.msra.mxu1 %v6348_v60  ;;  %v6931_v60 = vld [vmem:[%s7188_s17] sm:$0xff]   ;;  %v6426_v12 = vld [vmem:[%s7183_s12 + $0x28] sm:$0xff]  }
  0x6c   : > { %5617 = vmatprep.mubr.bf16.mxu1 %v6351_v13  ;;  %5825 = vmatprep.mubr.bf16.mxu0 %v6352_v14  ;;  %v6413_v13 = vld [vmem:[%s6866_s21 + $0x38] sm:$0xff]   ;;  %v6432_v14 = vld [vmem:[%s7183_s12 + $0x30] sm:$0xff]  }
  0x6d   : > { %5647 = vmatprep.subr.bf16.mxu1 %v6354_v15 }
  0x6f   : > { %5648 = vmatpush3.bf16.msra.mxu1 %v6354_v15  ;;  %v6415_v15 = vld [vmem:[%s6831_s29 + $0x78] sm:$0xff]   ;;  %s7112_s29 = scalar_lea.vmem %s7190_s19, %s6667_s3 }
  0x70   : > { %5649 = vmatprep.subr.bf16.mxu1 %v6360_v17 }
  0x72   : > { %5618 = vmatmul.mubr.bf16.gmra.mrb[4].mxu1 %v6353_v18  ;;  %v6438_v18 = vld [vmem:[%s7183_s12 + $0x38] sm:$0xff]  }
  0x73   : > { %5826 = vmatmul.mubr.bf16.gmra.mrb[20].mxu0 %v6355_v19  ;;  %5621 = vmatprep.mubr.bf16.mxu1 %v6357_v20  ;;  %v6419_v19 = vld [vmem:[%s6866_s21 + $0x48] sm:$0xff]  }
  0x74   : > { %5829 = vmatprep.mubr.bf16.mxu0 %v6358_v21  ;;  %5650 = vmatpush3.bf16.msra.mxu1 %v6360_v17  ;;  %v6418_v17 = vld [vmem:[%s6906_s24] sm:$0xff]   ;;  %v6421_v20 = vld [vmem:[%s6906_s24 + $0x8] sm:$0xff]   ;;  %v6423_v21 = vld [vmem:[%s6866_s21 + $0x50] sm:$0xff]  }
  0x75   : > { %5651 = vmatprep.subr.bf16.mxu1 %v6366_v22 }
  0x78   : > { %5652 = vmatpush3.bf16.msra.mxu1 %v6366_v22  ;;  %v6424_v22 = vld [vmem:[%s6906_s24 + $0x10] sm:$0xff]  }
  0x79   : > { %5653 = vmatprep.subr.bf16.mxu1 %v6372_v24 }
  0x7a   : > { %5622 = vmatmul.mubr.bf16.gmra.mrb[8].mxu1 %v6359_v23  ;;  %v6428_v23 = vld [vmem:[%s7188_s17 + $0x8] sm:$0xff]  }
  0x7b   : > { %5830 = vmatmul.mubr.bf16.gmra.mrb[24].mxu0 %v6361_v25  ;;  %5625 = vmatprep.mubr.bf16.mxu1 %v6363_v26  ;;  %v6425_v25 = vld [vmem:[%s6866_s21 + $0x58] sm:$0xff]   ;;  %v6434_v26 = vld [vmem:[%s7188_s17 + $0x10] sm:$0xff]  }
  0x7c   : > { %5833 = vmatprep.mubr.bf16.mxu0 %v6364_v27  ;;  %5654 = vmatpush3.bf16.msra.mxu1 %v6372_v24  ;;  %v6493_v24 = vld [vmem:[%s7184_s13] sm:$0xff]   ;;  %v6427_v27 = vld [vmem:[%s6906_s24 + $0x18] sm:$0xff]  }
  0x7d   : > { %5655 = vmatprep.subr.bf16.mxu1 %v6378_v28 }
  0x80   : > { %5656 = vmatpush3.bf16.msra.mxu1 %v6378_v28  ;;  %v6429_v28 = vld [vmem:[%s6866_s21 + $0x60] sm:$0xff]  }
  0x81   : > { %5657 = vmatprep.subr.bf16.mxu1 %v6384_v30 }
  0x82   : > { %5626 = vmatmul.mubr.bf16.gmra.mrb[12].mxu1 %v6365_v29  ;;  %v6430_v29 = vld [vmem:[%s6906_s24 + $0x20] sm:$0xff]  }
  0x83   : > { %5834 = vmatmul.mubr.bf16.gmra.mrb[28].mxu0 %v6367_v31  ;;  %5629 = vmatprep.mubr.bf16.mxu1 %v6369_v32  ;;  %v6431_v31 = vld [vmem:[%s6866_s21 + $0x68] sm:$0xff]   ;;  %v6445_v32 = vld [vmem:[%s7188_s17 + $0x20] sm:$0xff]  }
  0x84   : > { %5853 = vmatprep.mubr.bf16.mxu0 %v6370_v33  ;;  %5658 = vmatpush3.bf16.msra.mxu1 %v6384_v30  ;;  %v6440_v30 = vld [vmem:[%s7188_s17 + $0x18] sm:$0xff]   ;;  %v6433_v33 = vld [vmem:[%s6906_s24 + $0x28] sm:$0xff]  }
  0x85   : > { %5659 = vmatprep.subr.bf16.mxu1 %v6390_v34 }
  0x88   : > { %5660 = vmatpush3.bf16.msra.mxu1 %v6390_v34  ;;  %v6435_v34 = vld [vmem:[%s6866_s21 + $0x70] sm:$0xff]  }
  0x89   : > { %5693 = vmatprep.subr.bf16.mxu1 %v6882_v36 }
  0x8a   : > { %5630 = vmatmul.mubr.bf16.gmra.mrb[16].mxu1 %v6371_v35  ;;  %v6436_v35 = vld [vmem:[%s6906_s24 + $0x30] sm:$0xff]  }
  0x8b   : > { %5854 = vmatmul.mubr.bf16.vlgmr.msra.gmra.mrb[0].mxu0 %v6373_v37  ;;  %5633 = vmatprep.mubr.bf16.mxu1 %v6375_v38  ;;  %v6437_v37 = vld [vmem:[%s6866_s21 + $0x78] sm:$0xff]   ;;  %v6455_v38 = vld [vmem:[%s7188_s17 + $0x30] sm:$0xff]  }
  0x8c   : > { %5886 = vmatpush3.bf16.msra.mxu0 %v6374_v16  ;;  %5857 = vmatprep.mubr.bf16.mxu0 %v6376_v39  ;;  %v6417_v16 = vld [vmem:[%s6866_s21 + $0x40] sm:$0xff]   ;;  %v6439_v39 = vld [vmem:[%s6906_s24 + $0x38] sm:$0xff]  }
  0x8d   : > { %5887 = vmatprep.subr.bf16.mxu0 %v6380_v40 }
  0x90   : > { %5888 = vmatpush3.bf16.msra.mxu0 %v6380_v40  ;;  %v6441_v40 = vld [vmem:[%s6945_s28] sm:$0xff]  }
  0x91   : > { %5889 = vmatprep.subr.bf16.mxu0 %v6386_v42 }
  0x92   : > { %5634 = vmatmul.mubr.bf16.gmra.mrb[20].mxu1 %v6377_v41  ;;  %v6442_v41 = vld [vmem:[%s6906_s24 + $0x40] sm:$0xff]  }
  0x93   : > { %5858 = vmatmul.mubr.bf16.gmra.mrb[4].mxu0 %v6379_v43  ;;  %5637 = vmatprep.mubr.bf16.mxu1 %v6381_v44  ;;  %v6443_v43 = vld [vmem:[%s6945_s28 + $0x8] sm:$0xff]  }
  0x94   : > { %5861 = vmatprep.mubr.bf16.mxu0 %v6382_v45  ;;  %5890 = vmatpush3.bf16.msra.mxu0 %v6386_v42  ;;  %v6460_v42 = vld [vmem:[%s7188_s17 + $0x38] sm:$0xff]   ;;  %v6444_v44 = vld [vmem:[%s6906_s24 + $0x48] sm:$0xff]   ;;  %v6446_v45 = vld [vmem:[%s6945_s28 + $0x10] sm:$0xff]  }
  0x95   : > { %5891 = vmatprep.subr.bf16.mxu0 %v6392_v46 }
  0x98   : > { %5892 = vmatpush3.bf16.msra.mxu0 %v6392_v46  ;;  %v6447_v46 = vld [vmem:[%s6906_s24 + $0x50] sm:$0xff]  }
  0x99   : > { %5893 = vmatprep.subr.bf16.mxu0 %v6398_v48 }
  0x9a   : > { %5638 = vmatmul.mubr.bf16.gmra.mrb[24].mxu1 %v6383_v47  ;;  %v6494_v47 = vld [vmem:[%s7184_s13 + $0x8] sm:$0xff]  }
  0x9b   : > { %5862 = vmatmul.mubr.bf16.gmra.mrb[8].mxu0 %v6385_v49  ;;  %5641 = vmatprep.mubr.bf16.mxu1 %v6387_v50  ;;  %v6449_v49 = vld [vmem:[%s6906_s24 + $0x58] sm:$0xff]   ;;  %v6451_v50 = vld [vmem:[%s6945_s28 + $0x20] sm:$0xff]  }
  0x9c   : > { %5865 = vmatprep.mubr.bf16.mxu0 %v6388_v51  ;;  %5894 = vmatpush3.bf16.msra.mxu0 %v6398_v48  ;;  %v6448_v48 = vld [vmem:[%s6945_s28 + $0x18] sm:$0xff]   ;;  %v6452_v51 = vld [vmem:[%s6906_s24 + $0x60] sm:$0xff]  }
  0x9d   : > { %5895 = vmatprep.subr.bf16.mxu0 %v6404_v52 }
  0xa0   : > { %5896 = vmatpush3.bf16.msra.mxu0 %v6404_v52  ;;  %v6495_v52 = vld [vmem:[%s7184_s13 + $0x10] sm:$0xff]  }
  0xa1   : > { %5897 = vmatprep.subr.bf16.mxu0 %v6410_v54 }
  0xa2   : > { %5642 = vmatmul.mubr.bf16.gmra.mrb[28].mxu1 %v6389_v53  ;;  %v6496_v53 = vld [vmem:[%s7184_s13 + $0x18] sm:$0xff]  }
  0xa3   : > { %5866 = vmatmul.mubr.bf16.gmra.mrb[12].mxu0 %v6391_v55  ;;  %5661 = vmatprep.mubr.bf16.mxu1 %v6393_v56  ;;  %v6454_v55 = vld [vmem:[%s6906_s24 + $0x68] sm:$0xff]   ;;  %v6456_v56 = vld [vmem:[%s6945_s28 + $0x30] sm:$0xff]  }
  0xa4   : > { %5869 = vmatprep.mubr.bf16.mxu0 %v6394_v57  ;;  %5898 = vmatpush3.bf16.msra.mxu0 %v6410_v54  ;;  %v6453_v54 = vld [vmem:[%s6945_s28 + $0x28] sm:$0xff]   ;;  %v6457_v57 = vld [vmem:[%s6906_s24 + $0x70] sm:$0xff]  }
  0xa5   : > { %5899 = vmatprep.subr.bf16.mxu0 %v6416_v58 }
  0xa8   : > { %5900 = vmatpush3.bf16.msra.mxu0 %v6416_v58  ;;  %v6497_v58 = vld [vmem:[%s7184_s13 + $0x20] sm:$0xff]  }
  0xa9   : > { %5933 = vmatprep.subr.bf16.mxu0 %v6931_v60 }
  0xaa   : > { %5662 = vmatmul.mubr.bf16.vlgmr.msra.gmra.mrb[0].mxu1 %v6395_v59  ;;  %v6498_v59 = vld [vmem:[%s7184_s13 + $0x28] sm:$0xff]  }
  0xab   : > { %5870 = vmatmul.mubr.bf16.gmra.mrb[16].mxu0 %v6397_v61  ;;  %5694 = vmatpush3.bf16.msra.mxu1 %v6882_v36  ;;  %v6450_v36 = vld [vmem:[%s7188_s17 + $0x28] sm:$0xff]   ;;  %v6459_v61 = vld [vmem:[%s6906_s24 + $0x78] sm:$0xff]  }
  0xac   : > { %5665 = vmatprep.mubr.bf16.mxu1 %v6399_v62  ;;  %5873 = vmatprep.mubr.bf16.mxu0 %v6400_v63  ;;  %v6461_v62 = vld [vmem:[%s6945_s28 + $0x40] sm:$0xff]  }
  0xad   : > { %5695 = vmatprep.subr.bf16.mxu1 %v6402_v0  ;;  %v6462_v63 = vld [vmem:[%s6978_s27] sm:$0xff]  }
  0xaf   : > { %5696 = vmatpush3.bf16.msra.mxu1 %v6402_v0  ;;  %v6499_v0 = vld [vmem:[%s7184_s13 + $0x30] sm:$0xff]  }
  0xb0   : > { %5697 = vmatprep.subr.bf16.mxu1 %v6408_v1 }
  0xb2   : > { %5666 = vmatmul.mubr.bf16.gmra.mrb[4].mxu1 %v6401_v2  ;;  %v6463_v2 = vld [vmem:[%s6945_s28 + $0x48] sm:$0xff]  }
  0xb3   : > { %5874 = vmatmul.mubr.bf16.gmra.mrb[20].mxu0 %v6403_v3  ;;  %5669 = vmatprep.mubr.bf16.mxu1 %v6405_v4  ;;  %v6464_v3 = vld [vmem:[%s6978_s27 + $0x8] sm:$0xff]   ;;  %v6465_v4 = vld [vmem:[%s6945_s28 + $0x50] sm:$0xff]  }
  0xb4   : > { %5877 = vmatprep.mubr.bf16.mxu0 %v6406_v5  ;;  %5698 = vmatpush3.bf16.msra.mxu1 %v6408_v1  ;;  %v6500_v1 = vld [vmem:[%s7184_s13 + $0x38] sm:$0xff]   ;;  %v6466_v5 = vld [vmem:[%s6978_s27 + $0x10] sm:$0xff]  }
  0xb5   : > { %5699 = vmatprep.subr.bf16.mxu1 %v6414_v6 }
  0xb8   : > { %5700 = vmatpush3.bf16.msra.mxu1 %v6414_v6  ;;  %v6467_v6 = vld [vmem:[%s6945_s28 + $0x58] sm:$0xff]  }
  0xb9   : > { %5701 = vmatprep.subr.bf16.mxu1 %v6420_v8 }
  0xba   : > { %5670 = vmatmul.mubr.bf16.gmra.mrb[8].mxu1 %v6407_v7  ;;  %v6468_v7 = vld [vmem:[%s6978_s27 + $0x18] sm:$0xff]  }
  0xbb   : > { %5878 = vmatmul.mubr.bf16.gmra.mrb[24].mxu0 %v6409_v9  ;;  %5673 = vmatprep.mubr.bf16.mxu1 %v6411_v10  ;;  %v6470_v9 = vld [vmem:[%s6978_s27 + $0x20] sm:$0xff]   ;;  %v6471_v10 = vld [vmem:[%s6945_s28 + $0x68] sm:$0xff]  }
  0xbc   : > { %5881 = vmatprep.mubr.bf16.mxu0 %v6412_v11  ;;  %5702 = vmatpush3.bf16.msra.mxu1 %v6420_v8  ;;  %v6469_v8 = vld [vmem:[%s6945_s28 + $0x60] sm:$0xff]   ;;  %v6472_v11 = vld [vmem:[%s6978_s27 + $0x28] sm:$0xff]  }
  0xbd   : > { %5703 = vmatprep.subr.bf16.mxu1 %v6426_v12 }
  0xc0   : > { %5704 = vmatpush3.bf16.msra.mxu1 %v6426_v12  ;;  %v6473_v12 = vld [vmem:[%s6945_s28 + $0x70] sm:$0xff]  }
  0xc1   : > { %5705 = vmatprep.subr.bf16.mxu1 %v6432_v14 }
  0xc2   : > { %5674 = vmatmul.mubr.bf16.gmra.mrb[12].mxu1 %v6413_v13  ;;  %v6474_v13 = vld [vmem:[%s6978_s27 + $0x30] sm:$0xff]  }
  0xc3   : > { %5882 = vmatmul.mubr.bf16.gmra.mrb[28].mxu0 %v6415_v15  ;;  %5677 = vmatprep.mubr.bf16.mxu1 %v6417_v16  ;;  %v6476_v15 = vld [vmem:[%s6978_s27 + $0x38] sm:$0xff]   ;;  %v6477_v16 = vld [vmem:[%s6688_s26 + $0x40] sm:$0xff]  }
  0xc4   : > { %5901 = vmatprep.mubr.bf16.mxu0 %v6418_v17  ;;  %5706 = vmatpush3.bf16.msra.mxu1 %v6432_v14  ;;  %v6475_v14 = vld [vmem:[%s6945_s28 + $0x78] sm:$0xff]   ;;  %v6478_v17 = vld [vmem:[%s6978_s27 + $0x40] sm:$0xff]  }
  0xc5   : > { %5707 = vmatprep.subr.bf16.mxu1 %v6438_v18 }
  0xc8   : > { %5708 = vmatpush3.bf16.msra.mxu1 %v6438_v18  ;;  %v6479_v18 = vld [vmem:[%s6688_s26 + $0x48] sm:$0xff]  }
  0xc9   : > { %5981 = vmatprep.subr.bf16.mxu1 %v6493_v24 }
  0xca   : > { %5678 = vmatmul.mubr.bf16.gmra.mrb[16].mxu1 %v6419_v19  ;;  %v6480_v19 = vld [vmem:[%s6978_s27 + $0x48] sm:$0xff]  }
  0xcb   : > { %5902 = vmatmul.mubr.bf16.vlgmr.msra.gmra.mrb[0].mxu0 %v6421_v20  ;;  %5681 = vmatprep.mubr.bf16.mxu1 %v6423_v21  ;;  %v6481_v20 = vld [vmem:[%s6688_s26 + $0x50] sm:$0xff]  }
  0xcc   : > { %5934 = vmatpush3.bf16.msra.mxu0 %v6931_v60  ;;  %5905 = vmatprep.mubr.bf16.mxu0 %v6424_v22  ;;  %v6458_v60 = vld [vmem:[%s6945_s28 + $0x38] sm:$0xff]   ;;  %v6482_v21 = vld [vmem:[%s6978_s27 + $0x50] sm:$0xff]  }
  0xcd   : > { %5935 = vmatprep.subr.bf16.mxu0 %v6428_v23  ;;  %v6483_v22 = vld [vmem:[%s6688_s26 + $0x58] sm:$0xff]  }
  0xd0   : > { %5936 = vmatpush3.bf16.msra.mxu0 %v6428_v23  ;;  %v6484_v23 = vld [vmem:[%s6978_s27 + $0x58] sm:$0xff]  }
  0xd1   : > { %5937 = vmatprep.subr.bf16.mxu0 %v6434_v26 }
  0xd2   : > { %5682 = vmatmul.mubr.bf16.gmra.mrb[20].mxu1 %v6425_v25  ;;  %v6486_v25 = vld [vmem:[%s6978_s27 + $0x60] sm:$0xff]  }
  0xd3   : > { %5906 = vmatmul.mubr.bf16.gmra.mrb[4].mxu0 %v6427_v27  ;;  %5685 = vmatprep.mubr.bf16.mxu1 %v6429_v28  ;;  %v6488_v27 = vld [vmem:[%s6978_s27 + $0x68] sm:$0xff]   ;;  %v6489_v28 = vld [vmem:[%s6688_s26 + $0x70] sm:$0xff]  }
  0xd4   : > { %5909 = vmatprep.mubr.bf16.mxu0 %v6430_v29  ;;  %5938 = vmatpush3.bf16.msra.mxu0 %v6434_v26  ;;  %v6487_v26 = vld [vmem:[%s6688_s26 + $0x68] sm:$0xff]   ;;  %v6490_v29 = vld [vmem:[%s6978_s27 + $0x70] sm:$0xff]  }
  0xd5   : > { %5939 = vmatprep.subr.bf16.mxu0 %v6440_v30 }
  0xd8   : > { %5940 = vmatpush3.bf16.msra.mxu0 %v6440_v30  ;;  %v6491_v30 = vld [vmem:[%s6688_s26 + $0x78] sm:$0xff]  }
  0xd9   : > { %5941 = vmatprep.subr.bf16.mxu0 %v6445_v32 }
  0xda   : > { %5686 = vmatmul.mubr.bf16.gmra.mrb[24].mxu1 %v6431_v31  ;;  %v6492_v31 = vld [vmem:[%s6978_s27 + $0x78] sm:$0xff]  }
  0xdb   : > { %5910 = vmatmul.mubr.bf16.gmra.mrb[8].mxu0 %v6433_v33  ;;  %5689 = vmatprep.mubr.bf16.mxu1 %v6435_v34 }
  0xdc   : > { %5913 = vmatprep.mubr.bf16.mxu0 %v6436_v35  ;;  %5942 = vmatpush3.bf16.msra.mxu0 %v6445_v32 }
  0xdd   : > { %5943 = vmatprep.subr.bf16.mxu0 %v6450_v36 }
  0xe0   : > { %5944 = vmatpush3.bf16.msra.mxu0 %v6450_v36 }
  0xe1   : > { %5945 = vmatprep.subr.bf16.mxu0 %v6455_v38 }
  0xe2   : > { %5690 = vmatmul.mubr.bf16.gmra.mrb[28].mxu1 %v6437_v37 }
  0xe3   : > { %5914 = vmatmul.mubr.bf16.gmra.mrb[12].mxu0 %v6439_v39  ;;  %5709 = vmatprep.mubr.bf16.mxu1 %v6441_v40 }
  0xe4   : > { %5917 = vmatprep.mubr.bf16.mxu0 %v6442_v41  ;;  %5946 = vmatpush3.bf16.msra.mxu0 %v6455_v38 }
  0xe5   : > { %5947 = vmatprep.subr.bf16.mxu0 %v6460_v42 }
  0xe8   : > { %5948 = vmatpush3.bf16.msra.mxu0 %v6460_v42 }
  0xea   : > { %5710 = vmatmul.mubr.bf16.vlgmr.msra.gmra.mrb[0].mxu1 %v6443_v43 }
  0xeb   : > { %5918 = vmatmul.mubr.bf16.gmra.mrb[16].mxu0 %v6444_v44  ;;  %5989 = vmatpush3.bf16.msra.mxu1 %v6493_v24  ;;  %v6485_v24 = vld [vmem:[%s6688_s26 + $0x60] sm:$0xff]  }
  0xec   : > { %5713 = vmatprep.mubr.bf16.mxu1 %v6446_v45  ;;  %5921 = vmatprep.mubr.bf16.mxu0 %v6447_v46 }
  0xed   : > { %5982 = vmatprep.subr.bf16.mxu1 %v6494_v47 }
  0xef   : > { %5990 = vmatpush3.bf16.msra.mxu1 %v6494_v47 }
  0xf0   : > { %5983 = vmatprep.subr.bf16.mxu1 %v6495_v52 }
  0xf2   : > { %5714 = vmatmul.mubr.bf16.gmra.mrb[4].mxu1 %v6448_v48 }
  0xf3   : > { %5922 = vmatmul.mubr.bf16.gmra.mrb[20].mxu0 %v6449_v49  ;;  %5717 = vmatprep.mubr.bf16.mxu1 %v6451_v50  ;;  %v7102_v49 = vld [vmem:[%s7189_s18] ss:$0 sm:$0xff] }
  0xf4   : > { %5925 = vmatprep.mubr.bf16.mxu0 %v6452_v51  ;;  %5991 = vmatpush3.bf16.msra.mxu1 %v6495_v52 }
  0xf5   : > { %5984 = vmatprep.subr.bf16.mxu1 %v6496_v53 }
  0xf8   : > { %5992 = vmatpush3.bf16.msra.mxu1 %v6496_v53 }
  0xf9   : > { %5985 = vmatprep.subr.bf16.mxu1 %v6497_v58 }
  0xfa   : > { %5718 = vmatmul.mubr.bf16.gmra.mrb[8].mxu1 %v6453_v54 }
  0xfb   : > { %5926 = vmatmul.mubr.bf16.gmra.mrb[24].mxu0 %v6454_v55  ;;  %5721 = vmatprep.mubr.bf16.mxu1 %v6456_v56 }
  0xfc   : > { %5929 = vmatprep.mubr.bf16.mxu0 %v6457_v57  ;;  %5993 = vmatpush3.bf16.msra.mxu1 %v6497_v58 }
  0xfd   : > { %5986 = vmatprep.subr.bf16.mxu1 %v6498_v59 }
 0x100   : > { %5994 = vmatpush3.bf16.msra.mxu1 %v6498_v59 }
 0x101   : > { %5987 = vmatprep.subr.bf16.mxu1 %v6499_v0 }
 0x102   : > { %5722 = vmatmul.mubr.bf16.gmra.mrb[12].mxu1 %v6458_v60 }
 0x103   : > { %5930 = vmatmul.mubr.bf16.gmra.mrb[28].mxu0 %v6459_v61  ;;  %5725 = vmatprep.mubr.bf16.mxu1 %v6461_v62 }
 0x104   : > { %5949 = vmatprep.mubr.bf16.mxu0 %v6462_v63  ;;  %5995 = vmatpush3.bf16.msra.mxu1 %v6499_v0 }
 0x105   : > { %5988 = vmatprep.subr.bf16.mxu1 %v6500_v1 }
 0x108   : > { %5996 = vmatpush3.bf16.msra.mxu1 %v6500_v1 }
 0x10a   : > { %5726 = vmatmul.mubr.bf16.gmra.mrb[16].mxu1 %v6463_v2 }
 0x10b   : > { %5950 = vmatmul.mubr.bf16.vlgmr.msra.gmra.mrb[0].mxu0 %v6464_v3  ;;  %5729 = vmatprep.mubr.bf16.mxu1 %v6465_v4 }
 0x10c   : > { %5953 = vmatprep.mubr.bf16.mxu0 %v6466_v5 }
 0x112   : > { %5730 = vmatmul.mubr.bf16.gmra.mrb[20].mxu1 %v6467_v6 }
 0x113   : > { %5954 = vmatmul.mubr.bf16.gmra.mrb[4].mxu0 %v6468_v7  ;;  %5733 = vmatprep.mubr.bf16.mxu1 %v6469_v8 }
 0x114   : > { %5957 = vmatprep.mubr.bf16.mxu0 %v6470_v9 }
 0x11a   : > { %5734 = vmatmul.mubr.bf16.gmra.mrb[24].mxu1 %v6471_v10 }
 0x11b   : > { %5958 = vmatmul.mubr.bf16.gmra.mrb[8].mxu0 %v6472_v11  ;;  %5737 = vmatprep.mubr.bf16.mxu1 %v6473_v12 }
 0x11c   : > { %5961 = vmatprep.mubr.bf16.mxu0 %v6474_v13 }
 0x122   : > { %5738 = vmatmul.mubr.bf16.gmra.mrb[28].mxu1 %v6475_v14 }
 0x123   : > { %5962 = vmatmul.mubr.bf16.gmra.mrb[12].mxu0 %v6476_v15  ;;  %5773 = vmatprep.mubr.bf16.mxu1 %v6477_v16 }
 0x124   : > { %5965 = vmatprep.mubr.bf16.mxu0 %v6478_v17 }
 0x12a   : > { %5774 = vmatmul.mubr.bf16.vlgmr.msra.gmra.mrb[16].mxu1 %v6479_v18 }
 0x12b   : > { %5966 = vmatmul.mubr.bf16.gmra.mrb[16].mxu0 %v6480_v19  ;;  %5777 = vmatprep.mubr.bf16.mxu1 %v6481_v20 }
 0x12c   : > { %5969 = vmatprep.mubr.bf16.mxu0 %v6482_v21 }
 0x132   : > { %5778 = vmatmul.mubr.bf16.gmra.mrb[20].mxu1 %v6483_v22 }
 0x133   : > { %5970 = vmatmul.mubr.bf16.gmra.mrb[20].mxu0 %v6484_v23  ;;  %5781 = vmatprep.mubr.bf16.mxu1 %v6485_v24 }
 0x134   : > { %5973 = vmatprep.mubr.bf16.mxu0 %v6486_v25 }
 0x13a   : > { %5782 = vmatmul.mubr.bf16.gmra.mrb[24].mxu1 %v6487_v26 }
 0x13b   : > { %5974 = vmatmul.mubr.bf16.gmra.mrb[24].mxu0 %v6488_v27  ;;  %5785 = vmatprep.mubr.bf16.mxu1 %v6489_v28 }
 0x13c   : > { %5977 = vmatprep.mubr.bf16.mxu0 %v6490_v29 }
 0x142   : > { %5786 = vmatmul.mubr.bf16.gmra.mrb[28].mxu1 %v6491_v30 }
 0x143   : > { %5978 = vmatmul.mubr.bf16.gmra.mrb[28].mxu0 %v6492_v31 }
 0x1bd   : > { %v5711_v32 = vpop.f32.mrb[0].mxu1 }
 0x1be   : > { %v2287_v33 = vpop.f32.mrb[1].mxu1 }
 0x1bf   : > { %v5712_v34 = vpop.f32.mrb[2].mxu1 }
 0x1c0   : > { %v2290_v35 = vpop.f32.mrb[3].mxu1 }
 0x1c5   : > { %v5715_v36 = vpop.f32.mrb[4].mxu1 }
 0x1c6   : > { %v2303_v37 = vpop.f32.mrb[5].mxu1 }
 0x1c7   : > { %v5716_v38 = vpop.f32.mrb[6].mxu1 }
 0x1c8   : > { %v2306_v39 = vpop.f32.mrb[7].mxu1 }
 0x1cd   : > { %v5719_v40 = vpop.f32.mrb[8].mxu1 }
 0x1ce   : > { %v2319_v41 = vpop.f32.mrb[9].mxu1 }
 0x1cf   : > { %v5720_v42 = vpop.f32.mrb[10].mxu1 }
 0x1d0   : > { %v2322_v43 = vpop.f32.mrb[11].mxu1 }
 0x1d5   : > { %v7091_v44 = vpop.f32.mrb[12].mxu1 }
 0x1d6   : > { %v7093_v45 = vpop.f32.mrb[13].mxu1 }
 0x1d7   : > { %v7095_v46 = vpop.f32.mrb[14].mxu1 }
 0x1d8   : > { %v7097_v47 = vpop.f32.mrb[15].mxu1 }
 0x1de   : > { %v5951_v48 = vpop.f32.mrb[0].mxu0 }
 0x1df   : > { %v5997_v50 = vadd.f32 %v5951_v48, %v5711_v32  ;;  %v4212_v51 = vpop.f32.mrb[1].mxu0 }
 0x1e0   : > { %v5998_v52 = vadd.f32 %v4212_v51, %v2287_v33  ;;  %v5952_v53 = vpop.f32.mrb[2].mxu0 }
 0x1e1   : > { %v4380_v54 = vadd.f32 %v5997_v50, %v7102_v49  ;;  %v5999_v55 = vadd.f32 %v5952_v53, %v5712_v34  ;;  %v4215_v56 = vpop.f32.mrb[3].mxu0 }
 0x1e2   : > { %v4378_v57 = vadd.f32 %v5998_v52, %v7102_v49  ;;  %v6000_v58 = vadd.f32 %v4215_v56, %v2290_v35 }
 0x1e3   : > { %v4381_v59 = vadd.f32 %v5999_v55, %v7102_v49  ;;  %v4412_v61 = vmax.f32 %v4380_v54, 0.0 }
 0x1e4   : > { %v4379_v60 = vadd.f32 %v6000_v58, %v7102_v49  ;;  %v4410_v63 = vmax.f32 %v4378_v57, 0.0 }
 0x1e5   : > { %v4413_v62 = vmax.f32 %v4381_v59, 0.0 }
 0x1e6   : > { %v4411_v0 = vmax.f32 %v4379_v60, 0.0  ;;  %v5955_v1 = vpop.f32.mrb[4].mxu0 }
 0x1e7   : > { %v5246_v2 = vpack.c.bf16 %v4413_v62, %v4412_v61  ;;  %v6001_v3 = vadd.f32 %v5955_v1, %v5715_v36  ;;  %v4228_v4 = vpop.f32.mrb[5].mxu0 }
 0x1e8   : > { %v5241_v5 = vpack.c.bf16 %v4411_v0, %v4410_v63  ;;  %v6002_v6 = vadd.f32 %v4228_v4, %v2303_v37  ;;  %v5956_v7 = vpop.f32.mrb[6].mxu0 }
 0x1e9   : > { %5318 = vst [vmem:[%s7112_s29 + $0x8] sm:$0xff] %v5246_v2   ;;  %v4384_v8 = vadd.f32 %v6001_v3, %v7102_v49  ;;  %v6003_v9 = vadd.f32 %v5956_v7, %v5716_v38  ;;  %v4231_v10 = vpop.f32.mrb[7].mxu0 }
 0x1ea   : > { %5242 = vst [vmem:[%s7112_s29] sm:$0xff] %v5241_v5   ;;  %v4382_v11 = vadd.f32 %v6002_v6, %v7102_v49  ;;  %v6004_v12 = vadd.f32 %v4231_v10, %v2306_v39 }
 0x1eb   : > { %v4385_v13 = vadd.f32 %v6003_v9, %v7102_v49  ;;  %v4416_v15 = vmax.f32 %v4384_v8, 0.0 }
 0x1ec   : > { %v4383_v14 = vadd.f32 %v6004_v12, %v7102_v49  ;;  %v4414_v17 = vmax.f32 %v4382_v11, 0.0 }
 0x1ed   : > { %v4417_v16 = vmax.f32 %v4385_v13, 0.0 }
 0x1ee   : > { %v4415_v18 = vmax.f32 %v4383_v14, 0.0  ;;  %v5959_v19 = vpop.f32.mrb[8].mxu0 }
 0x1ef   : > { %v5256_v20 = vpack.c.bf16 %v4417_v16, %v4416_v15  ;;  %v6005_v21 = vadd.f32 %v5959_v19, %v5719_v40  ;;  %v4244_v22 = vpop.f32.mrb[9].mxu0 }
 0x1f0   : > { %v5251_v23 = vpack.c.bf16 %v4415_v18, %v4414_v17  ;;  %v6006_v24 = vadd.f32 %v4244_v22, %v2319_v41  ;;  %v5960_v25 = vpop.f32.mrb[10].mxu0 }
 0x1f1   : > { %5320 = vst [vmem:[%s7112_s29 + $0x18] sm:$0xff] %v5256_v20   ;;  %v4388_v26 = vadd.f32 %v6005_v21, %v7102_v49  ;;  %v6007_v27 = vadd.f32 %v5960_v25, %v5720_v42  ;;  %v4247_v28 = vpop.f32.mrb[11].mxu0 }
 0x1f2   : > { %5319 = vst [vmem:[%s7112_s29 + $0x10] sm:$0xff] %v5251_v23   ;;  %v4386_v29 = vadd.f32 %v6006_v24, %v7102_v49  ;;  %v6008_v30 = vadd.f32 %v4247_v28, %v2322_v43 }
 0x1f3   : > { %v4389_v31 = vadd.f32 %v6007_v27, %v7102_v49  ;;  %v4420_v33 = vmax.f32 %v4388_v26, 0.0 }
 0x1f4   : > { %v4387_v32 = vadd.f32 %v6008_v30, %v7102_v49  ;;  %v4418_v35 = vmax.f32 %v4386_v29, 0.0 }
 0x1f5   : > { %v4421_v34 = vmax.f32 %v4389_v31, 0.0 }
 0x1f6   : > { %v4419_v36 = vmax.f32 %v4387_v32, 0.0  ;;  %v5963_v37 = vpop.f32.mrb[12].mxu0 }
 0x1f7   : > { %v5266_v38 = vpack.c.bf16 %v4421_v34, %v4420_v33  ;;  %v6009_v39 = vadd.f32 %v5963_v37, %v7091_v44  ;;  %v4260_v40 = vpop.f32.mrb[13].mxu0 }
 0x1f8   : > { %v5261_v41 = vpack.c.bf16 %v4419_v36, %v4418_v35  ;;  %v6010_v42 = vadd.f32 %v4260_v40, %v7093_v45  ;;  %v5964_v48 = vpop.f32.mrb[14].mxu0 }
 0x1f9   : > { %5322 = vst [vmem:[%s7112_s29 + $0x28] sm:$0xff] %v5266_v38   ;;  %v4392_v43 = vadd.f32 %v6009_v39, %v7102_v49  ;;  %v6011_v50 = vadd.f32 %v5964_v48, %v7095_v46  ;;  %v4263_v51 = vpop.f32.mrb[15].mxu0 }
 0x1fa   : > { %5321 = vst [vmem:[%s7112_s29 + $0x20] sm:$0xff] %v5261_v41   ;;  %v4390_v52 = vadd.f32 %v6010_v42, %v7102_v49  ;;  %v6012_v53 = vadd.f32 %v4263_v51, %v7097_v47 }
 0x1fb   : > { %v4393_v54 = vadd.f32 %v6011_v50, %v7102_v49  ;;  %v4424_v55 = vmax.f32 %v4392_v43, 0.0 }
 0x1fc   : > { %v4391_v44 = vadd.f32 %v6012_v53, %v7102_v49  ;;  %v4422_v57 = vmax.f32 %v4390_v52, 0.0 }
 0x1fd   : > { %v4425_v56 = vmax.f32 %v4393_v54, 0.0  ;;  %v5775_v45 = vpop.f32.mrb[16].mxu1 }
 0x1fe   : > { %v4423_v58 = vmax.f32 %v4391_v44, 0.0  ;;  %v5967_v59 = vpop.f32.mrb[16].mxu0  ;;  %v2736_v60 = vpop.f32.mrb[17].mxu1 }
 0x1ff   : > { %v5276_v46 = vpack.c.bf16 %v4425_v56, %v4424_v55  ;;  %v6013_v61 = vadd.f32 %v5967_v59, %v5775_v45  ;;  %v4276_v62 = vpop.f32.mrb[17].mxu0  ;;  %v5776_v63 = vpop.f32.mrb[18].mxu1 }
 0x200   : > { %v5271_v0 = vpack.c.bf16 %v4423_v58, %v4422_v57  ;;  %v6014_v1 = vadd.f32 %v4276_v62, %v2736_v60  ;;  %v5968_v47 = vpop.f32.mrb[18].mxu0  ;;  %v2739_v2 = vpop.f32.mrb[19].mxu1 }
 0x201   : > { %5324 = vst [vmem:[%s7112_s29 + $0x38] sm:$0xff] %v5276_v46   ;;  %v4396_v3 = vadd.f32 %v6013_v61, %v7102_v49  ;;  %v6015_v4 = vadd.f32 %v5968_v47, %v5776_v63  ;;  %v4279_v5 = vpop.f32.mrb[19].mxu0 }
 0x202   : > { %5323 = vst [vmem:[%s7112_s29 + $0x30] sm:$0xff] %v5271_v0   ;;  %v4394_v6 = vadd.f32 %v6014_v1, %v7102_v49  ;;  %v6016_v7 = vadd.f32 %v4279_v5, %v2739_v2 }
 0x203   : > { %v4397_v8 = vadd.f32 %v6015_v4, %v7102_v49  ;;  %v4428_v10 = vmax.f32 %v4396_v3, 0.0 }
 0x204   : > { %v4395_v9 = vadd.f32 %v6016_v7, %v7102_v49  ;;  %v4426_v13 = vmax.f32 %v4394_v6, 0.0 }
 0x205   : > { %v4429_v11 = vmax.f32 %v4397_v8, 0.0  ;;  %v5779_v12 = vpop.f32.mrb[20].mxu1 }
 0x206   : > { %v4427_v14 = vmax.f32 %v4395_v9, 0.0  ;;  %v5971_v15 = vpop.f32.mrb[20].mxu0  ;;  %v2752_v16 = vpop.f32.mrb[21].mxu1 }
 0x207   : > { %v5286_v17 = vpack.c.bf16 %v4429_v11, %v4428_v10  ;;  %v6017_v18 = vadd.f32 %v5971_v15, %v5779_v12  ;;  %v4292_v19 = vpop.f32.mrb[21].mxu0  ;;  %v5780_v20 = vpop.f32.mrb[22].mxu1 }
 0x208   : > { %v5281_v21 = vpack.c.bf16 %v4427_v14, %v4426_v13  ;;  %v6018_v22 = vadd.f32 %v4292_v19, %v2752_v16  ;;  %v5972_v23 = vpop.f32.mrb[22].mxu0  ;;  %v2755_v24 = vpop.f32.mrb[23].mxu1 }
 0x209   : > { %5326 = vst [vmem:[%s7112_s29 + $0x48] sm:$0xff] %v5286_v17   ;;  %v4400_v25 = vadd.f32 %v6017_v18, %v7102_v49  ;;  %v6019_v26 = vadd.f32 %v5972_v23, %v5780_v20  ;;  %v4295_v27 = vpop.f32.mrb[23].mxu0 }
 0x20a   : > { %5325 = vst [vmem:[%s7112_s29 + $0x40] sm:$0xff] %v5281_v21   ;;  %v4398_v28 = vadd.f32 %v6018_v22, %v7102_v49  ;;  %v6020_v29 = vadd.f32 %v4295_v27, %v2755_v24 }
 0x20b   : > { %v4401_v30 = vadd.f32 %v6019_v26, %v7102_v49  ;;  %v4432_v32 = vmax.f32 %v4400_v25, 0.0 }
 0x20c   : > { %v4399_v31 = vadd.f32 %v6020_v29, %v7102_v49  ;;  %v4430_v35 = vmax.f32 %v4398_v28, 0.0 }
 0x20d   : > { %v4433_v33 = vmax.f32 %v4401_v30, 0.0  ;;  %v5783_v34 = vpop.f32.mrb[24].mxu1 }
 0x20e   : > { %v4431_v36 = vmax.f32 %v4399_v31, 0.0  ;;  %v5975_v37 = vpop.f32.mrb[24].mxu0  ;;  %v2768_v38 = vpop.f32.mrb[25].mxu1 }
 0x20f   : > { %v5296_v39 = vpack.c.bf16 %v4433_v33, %v4432_v32  ;;  %v6021_v40 = vadd.f32 %v5975_v37, %v5783_v34  ;;  %v4308_v41 = vpop.f32.mrb[25].mxu0  ;;  %v5784_v42 = vpop.f32.mrb[26].mxu1 }
 0x210   : > { %v5291_v48 = vpack.c.bf16 %v4431_v36, %v4430_v35  ;;  %v6022_v43 = vadd.f32 %v4308_v41, %v2768_v38  ;;  %v5976_v50 = vpop.f32.mrb[26].mxu0  ;;  %v2771_v51 = vpop.f32.mrb[27].mxu1 }
 0x211   : > { %5328 = vst [vmem:[%s7112_s29 + $0x58] sm:$0xff] %v5296_v39   ;;  %v4404_v52 = vadd.f32 %v6021_v40, %v7102_v49  ;;  %v6023_v53 = vadd.f32 %v5976_v50, %v5784_v42  ;;  %v4311_v54 = vpop.f32.mrb[27].mxu0 }
 0x212   : > { %5327 = vst [vmem:[%s7112_s29 + $0x50] sm:$0xff] %v5291_v48   ;;  %v4402_v44 = vadd.f32 %v6022_v43, %v7102_v49  ;;  %v6024_v55 = vadd.f32 %v4311_v54, %v2771_v51 }
 0x213   : > { %v4405_v56 = vadd.f32 %v6023_v53, %v7102_v49  ;;  %v4436_v57 = vmax.f32 %v4404_v52, 0.0 }
 0x214   : > { %v4403_v45 = vadd.f32 %v6024_v55, %v7102_v49  ;;  %v4434_v60 = vmax.f32 %v4402_v44, 0.0 }
 0x215   : > { %v4437_v58 = vmax.f32 %v4405_v56, 0.0  ;;  %v5787_v59 = vpop.f32.mrb[28].mxu1 }
 0x216   : > { %v4435_v46 = vmax.f32 %v4403_v45, 0.0  ;;  %v5979_v61 = vpop.f32.mrb[28].mxu0  ;;  %v2784_v62 = vpop.f32.mrb[29].mxu1 }
 0x217   : > { %v5306_v63 = vpack.c.bf16 %v4437_v58, %v4436_v57  ;;  %v6025_v0 = vadd.f32 %v5979_v61, %v5787_v59  ;;  %v4324_v1 = vpop.f32.mrb[29].mxu0  ;;  %v5788_v47 = vpop.f32.mrb[30].mxu1 }
 0x218   : > { %v5301_v2 = vpack.c.bf16 %v4435_v46, %v4434_v60  ;;  %v6026_v3 = vadd.f32 %v4324_v1, %v2784_v62  ;;  %v5980_v4 = vpop.f32.mrb[30].mxu0  ;;  %v2787_v5 = vpop.f32.mrb[31].mxu1 }
 0x219   : > { %5330 = vst [vmem:[%s7112_s29 + $0x68] sm:$0xff] %v5306_v63   ;;  %v4408_v6 = vadd.f32 %v6025_v0, %v7102_v49  ;;  %v6027_v7 = vadd.f32 %v5980_v4, %v5788_v47  ;;  %v4327_v8 = vpop.f32.mrb[31].mxu0 }
 0x21a   : > { %5329 = vst [vmem:[%s7112_s29 + $0x60] sm:$0xff] %v5301_v2   ;;  %v4406_v9 = vadd.f32 %v6026_v3, %v7102_v49  ;;  %v6028_v10 = vadd.f32 %v4327_v8, %v2787_v5 }
 0x21b   : > { %v4409_v11 = vadd.f32 %v6027_v7, %v7102_v49  ;;  %v4440_v13 = vmax.f32 %v4408_v6, 0.0 }
 0x21c   : > { %v4407_v12 = vadd.f32 %v6028_v10, %v7102_v49  ;;  %v4438_v15 = vmax.f32 %v4406_v9, 0.0 }
 0x21d   : > { %v4441_v14 = vmax.f32 %v4409_v11, 0.0 }
 0x21e   : > { %v4439_v16 = vmax.f32 %v4407_v12, 0.0 }
 0x21f   : > { %v5316_v17 = vpack.c.bf16 %v4441_v14, %v4440_v13 }
 0x220   : > { %v5311_v18 = vpack.c.bf16 %v4439_v16, %v4438_v15 }
 0x221   : > { %5332 = vst [vmem:[%s7112_s29 + $0x78] sm:$0xff] %v5316_v17  }
 0x222   : > { %5331 = vst [vmem:[%s7112_s29 + $0x70] sm:$0xff] %v5311_v18  }
 0x223 PF: > { %s29_s20 = sadd.s32 1, %s6523_s20   ;;  %s7200_s3 = sld [smem:[#allocation2_spill]] }
 0x224   : > { %p26_p5 = scmp.ge.s32.totalorder %s29_s20, 4   ;;  %s7201_s0 = smov %s6519_s30 }
 0x226   :  { %28 = sbr.rel (!%p26_p5) target bundleno = 5 (0x5), region = 180 }
 0x229   : > { %s7202_s30 = smov %s7200_s3 }

</bundles_post_ra>
